<compile_context>
chip_gen: v5e
topology: v5e:2x2
jax: 0.10.0
libtpu: 0.0.40
codegen_flags: <defaults>
</compile_context>

<pallas_src>
import functools
import math

import jax
import jax.numpy as jnp
from jax import lax
from jax.experimental import pallas as pl
from jax.experimental.pallas import tpu as pltpu


_TAPS = tuple((ky, kx) for ky in range(3) for kx in range(3))


# ----------------------------------------------------------------------------
# Fused whole-block kernel (block_b images per grid step)
# ----------------------------------------------------------------------------
def _ghost_block_kernel(ph_ref, wp1_ref, bp1_ref, wd1_ref, bd1_ref,
                        wp2_ref, bp2_ref, wd2_ref, bd2_ref,
                        out_ref, dwpad_ref, y1pad_ref, *,
                        stride, hout, wout, cin, planes, c1, c2,
                        shortcut_mode, bblk):
    m = bblk * hout * wout
    nphase = stride * stride

    # bf16 phase images, already zero-padded / polyphase-split in the wrapper.
    phases = [ph_ref[p] for p in range(nphase)]      # each (B, hph, wph, cin)
    wp1 = wp1_ref[...]                               # (9, cin, c1)    bf16
    wd1 = wd1_ref[...]                               # (9, 1, c1)      f32
    wp2 = wp2_ref[...]                               # (9, planes, c2) bf16
    wd2 = wd2_ref[...]                               # (9, 1, c2)      f32

    # Zero the padded scratch buffers once per step.  Interiors are fully
    # overwritten below; only the 1-pixel borders must be zero, but scratch is
    # per-core and uninitialized, so a program_id==0-only init would be wrong
    # when the "parallel" batch axis is split across TensorCores.
    dwpad_ref[...] = jnp.zeros_like(dwpad_ref)
    y1pad_ref[...] = jnp.zeros_like(y1pad_ref)

    # --- GhostModule 1 / primary 3x3 conv (stride s) + folded BN + ReLU -----
    acc1 = jnp.zeros((m, c1), jnp.float32)
    for t, (ky, kx) in enumerate(_TAPS):
        p = (ky % stride) * stride + (kx % stride)
        oy, ox = ky // stride, kx // stride
        win = phases[p][:, oy:oy + hout, ox:ox + wout, :]          # bf16
        acc1 = acc1 + jnp.dot(win.reshape(m, cin), wp1[t],
                              preferred_element_type=jnp.float32)
    x1a = jnp.maximum(acc1 + bp1_ref[...], 0.0).reshape(bblk, hout, wout, c1)

    # --- GhostModule 1 / cheap depthwise 3x3 + folded BN + ReLU -------------
    dwpad_ref[:, 1:hout + 1, 1:wout + 1, :] = x1a
    x1p = dwpad_ref[...]
    accd1 = jnp.zeros((bblk, hout, wout, c1), jnp.float32)
    for t, (ky, kx) in enumerate(_TAPS):
        accd1 = accd1 + x1p[:, ky:ky + hout, kx:kx + wout, :] * wd1[t]
    x1b = jnp.maximum(accd1 + bd1_ref[...], 0.0)

    # GhostModule-1 output = cat([x1a, x1b])[..., :planes], staged zero-padded
    # and in bf16: it is the window buffer for conv2's primary matmuls.
    y1 = jnp.concatenate([x1a, x1b[..., :planes - c1]], axis=-1)
    y1pad_ref[:, 1:hout + 1, 1:wout + 1, :] = y1.astype(y1pad_ref.dtype)
    y1p = y1pad_ref[...]

    # --- GhostModule 2 / primary 3x3 conv (stride 1) + folded BN, no ReLU ---
    acc2 = jnp.zeros((m, c2), jnp.float32)
    for t, (ky, kx) in enumerate(_TAPS):
        win = y1p[:, ky:ky + hout, kx:kx + wout, :]                # bf16
        acc2 = acc2 + jnp.dot(win.reshape(m, planes), wp2[t],
                              preferred_element_type=jnp.float32)
    x2a = (acc2 + bp2_ref[...]).reshape(bblk, hout, wout, c2)

    # --- GhostModule 2 / cheap depthwise 3x3 + folded BN, no ReLU -----------
    dwpad_ref[:, 1:hout + 1, 1:wout + 1, :] = x2a        # border is still zero
    x2p = dwpad_ref[...]
    accd2 = jnp.zeros((bblk, hout, wout, c2), jnp.float32)
    for t, (ky, kx) in enumerate(_TAPS):
        accd2 = accd2 + x2p[:, ky:ky + hout, kx:kx + wout, :] * wd2[t]
    x2b = accd2 + bd2_ref[...]

    # --- concat + shortcut + final ReLU: one store to out_ref ---------------
    y2 = jnp.concatenate([x2a, x2b[..., :planes - c2]], axis=-1)
    if shortcut_mode == "identity":
        sc = phases[0][:, 1:hout + 1, 1:wout + 1, :].astype(jnp.float32)  # = x
        y2 = y2 + sc
    else:  # option 'A': x[:, :, ::2, ::2] zero-padded along channels
        sc = phases[nphase - 1][:, 0:hout, 0:wout, :].astype(jnp.float32)
        pc = planes // 4
        zl = jnp.zeros((bblk, hout, wout, pc), jnp.float32)
        zr = jnp.zeros((bblk, hout, wout, planes - pc - cin), jnp.float32)
        y2 = y2 + jnp.concatenate([zl, sc, zr], axis=-1)

    out_ref[...] = jnp.maximum(y2, 0.0).astype(out_ref.dtype)


# ----------------------------------------------------------------------------
# Plain-JAX glue
# ----------------------------------------------------------------------------
def _make_phases(x_nhwc_bf16, stride):
    """Zero-pad by 1; for stride 2 split into 4 polyphase images so the kernel
    only ever needs unit-stride static slices (no strided loads, no im2col).
    Returns (nphase, N, Hph, Wph, C): phase axis leading so the kernel indexes
    it with a static int on the first ref dimension."""
    xp = jnp.pad(x_nhwc_bf16, ((0, 0), (1, 1), (1, 1), (0, 0)))
    if stride == 1:
        return xp[None]                               # (1, N, H+2, W+2, C)
    phs = [xp[:, a::2, b::2, :] for a in range(2) for b in range(2)]
    return jnp.stack(phs, axis=0)                     # (4, N, H/2+1, W/2+1, C)


def _bcast_spec(shape):
    nd = len(shape)
    return pl.BlockSpec(shape, lambda i, _nd=nd: (0,) * _nd)


def _pick_block_b(n, cap=8):
    """Largest divisor of n that is <= cap while keeping >= 2 grid steps (so
    both v7x TensorCores get work).  The cap keeps the per-step footprint,
    including lane-padded f32 temporaries, far inside the 32 MiB scoped VMEM
    default and v7x's 64 MiB physical VMEM."""
    best = 1
    for b in range(1, min(cap, n) + 1):
        if n % b == 0 and (n // b >= 2 or n == 1):
            best = b
    return best


def basic_block_gst_forward_nhwc(x_nhwc, params, *, block_b=None):
    """NHWC in -> NHWC bf16 out, matching BasicBlock_gst.forward
    (inference-mode BN folded into the conv weights)."""
    g1, g2 = params["g1"], params["g2"]
    stride, planes = params["stride"], params["planes"]
    c1, c2 = g1["init_c"], g2["init_c"]
    # Scratch reuse and concat widths rely on even `planes` and c1 == c2.
    assert c1 == c2 and planes == 2 * c1

    n, h, w, cin = x_nhwc.shape
    assert h % stride == 0 and w % stride == 0
    hout, wout = h // stride, w // stride
    m_img = hout * wout

    if block_b is None:
        block_b = _pick_block_b(n)
    assert n % block_b == 0
    grid_n = n // block_b

    phases = _make_phases(x_nhwc.astype(jnp.bfloat16), stride)
    nphase, _, hph, wph, _ = phases.shape

    kernel = functools.partial(
        _ghost_block_kernel, stride=stride, hout=hout, wout=wout, cin=cin,
        planes=planes, c1=c1, c2=c2, shortcut_mode=params["shortcut"],
        bblk=block_b)

    flops = 2 * n * m_img * 9 * (cin * c1 + planes * c2 + c1 + c2)
    bytes_acc = (n * nphase * hph * wph * cin * 2          # bf16 phase images
                 + 9 * (cin * c1 + planes * c2) * 2        # bf16 matmul weights
                 + 9 * (c1 + c2) * 4 + 2 * (c1 + c2) * 4   # dw weights + biases
                 + n * m_img * planes * 2)                 # bf16 output

    out = pl.pallas_call(
        kernel,
        grid=(grid_n,),
        out_shape=jax.ShapeDtypeStruct((n, hout, wout, planes), jnp.bfloat16),
        in_specs=[
            pl.BlockSpec((nphase, block_b, hph, wph, cin),
                         lambda i: (0, i, 0, 0, 0)),
            _bcast_spec((9, cin, c1)),       # conv1 primary weight (BN-folded)
            _bcast_spec((1, c1)),            # conv1 primary bias
            _bcast_spec((9, 1, c1)),         # conv1 depthwise weight (BN-folded)
            _bcast_spec((1, c1)),            # conv1 depthwise bias
            _bcast_spec((9, planes, c2)),    # conv2 primary weight
            _bcast_spec((1, c2)),            # conv2 primary bias
            _bcast_spec((9, 1, c2)),         # conv2 depthwise weight
            _bcast_spec((1, c2)),            # conv2 depthwise bias
        ],
        out_specs=pl.BlockSpec((block_b, hout, wout, planes),
                               lambda i: (i, 0, 0, 0)),
        scratch_shapes=[
            pltpu.VMEM((block_b, hout + 2, wout + 2, c1), jnp.float32),
            pltpu.VMEM((block_b, hout + 2, wout + 2, planes), jnp.bfloat16),
        ],
        compiler_params=pltpu.CompilerParams(
            dimension_semantics=("parallel",)),
        cost_estimate=pl.CostEstimate(flops=flops, transcendentals=0,
                                      bytes_accessed=bytes_acc),
    )(phases, g1["wp"], g1["bp"], g1["wd"], g1["bd"],
      g2["wp"], g2["bp"], g2["wd"], g2["bd"])
    return out


def basic_block_gst_forward(x_nchw, params, *, block_b=None):
    """PyTorch-layout convenience wrapper: NCHW in -> NCHW (bf16) out."""
    x = jnp.transpose(x_nchw, (0, 2, 3, 1))
    out = basic_block_gst_forward_nhwc(x, params, block_b=block_b)
    return jnp.transpose(out, (0, 3, 1, 2))


# ----------------------------------------------------------------------------
# Parameter construction (PyTorch-default-ish init, BN folded)
# ----------------------------------------------------------------------------
def _uniform(key, shape, fan_in):
    bound = 1.0 / math.sqrt(fan_in)
    return jax.random.uniform(key, shape, jnp.float32, -bound, bound)


def _fold_bn(w_taps, gamma, beta, mean, var, eps=1e-5):
    scale = gamma / jnp.sqrt(var + eps)
    return w_taps * scale[None, None, :], (beta - mean * scale)


def _ghost_module_params(key, inp, oup, ratio=2):
    # TODO(synk): only ratio=2 is supported (cheap op == plain depthwise conv).
    assert ratio == 2
    init_c = math.ceil(oup / ratio)
    new_c = init_c * (ratio - 1)
    kp, kd = jax.random.split(key)

    # primary conv (init_c, inp, 3, 3)  -> per-tap layout (9, inp, init_c)
    wp = _uniform(kp, (init_c, inp, 3, 3), fan_in=inp * 9)
    wp = jnp.transpose(wp, (2, 3, 1, 0)).reshape(9, inp, init_c)
    # cheap depthwise conv (new_c, 1, 3, 3) -> (9, 1, new_c)
    wd = _uniform(kd, (new_c, 1, 3, 3), fan_in=9)
    wd = jnp.transpose(wd, (2, 3, 1, 0)).reshape(9, 1, new_c)

    # fold inference-mode BN (fresh stats: identity) into weight + bias
    ones1 = jnp.ones((init_c,), jnp.float32)
    zer1 = jnp.zeros((init_c,), jnp.float32)
    wp, bp = _fold_bn(wp, ones1, zer1, zer1, ones1)
    ones2 = jnp.ones((new_c,), jnp.float32)
    zer2 = jnp.zeros((new_c,), jnp.float32)
    wd, bd = _fold_bn(wd, ones2, zer2, zer2, ones2)

    return dict(wp=wp.astype(jnp.bfloat16), bp=bp.reshape(1, init_c),
                wd=wd.astype(jnp.float32), bd=bd.reshape(1, new_c),
                init_c=init_c, new_c=new_c, oup=oup)


def init_basic_block_gst_params(key, in_planes, planes, stride=1, ratio=2,
                                option="A"):
    k1, k2 = jax.random.split(key)
    g1 = _ghost_module_params(k1, in_planes, planes, ratio)   # relu=True path
    g2 = _ghost_module_params(k2, planes, planes, ratio)      # relu=False path
    if stride != 1 or in_planes != planes:
        # TODO(synk): option 'B' (1x1 conv + BN shortcut) is not implemented.
        assert option == "A"
        assert stride == 2 and in_planes + 2 * (planes // 4) == planes
        shortcut = "padA"
    else:
        shortcut = "identity"
    return dict(g1=g1, g2=g2, stride=stride, in_planes=in_planes,
                planes=planes, shortcut=shortcut)


# ----------------------------------------------------------------------------
# Pure-JAX reference (for a loose numerical sanity check)
# ----------------------------------------------------------------------------
def _reference_forward(x_nchw, params):
    g1, g2 = params["g1"], params["g2"]
    stride, planes = params["stride"], params["planes"]
    x = jnp.transpose(x_nchw, (0, 2, 3, 1)).astype(jnp.float32)
    dn = ("NHWC", "HWIO", "NHWC")

    def ghost(inp, g, s, relu):
        cin = inp.shape[-1]
        wp = g["wp"].astype(jnp.float32).reshape(3, 3, cin, g["init_c"])
        x1 = lax.conv_general_dilated(inp, wp, (s, s), ((1, 1), (1, 1)),
                                      dimension_numbers=dn,
                                      precision=lax.Precision.HIGHEST)
        x1 = x1 + g["bp"][0]
        if relu:
            x1 = jnp.maximum(x1, 0.0)
        wd = g["wd"].reshape(3, 3, 1, g["new_c"])
        x2 = lax.conv_general_dilated(x1, wd, (1, 1), ((1, 1), (1, 1)),
                                      dimension_numbers=dn,
                                      feature_group_count=g["init_c"],
                                      precision=lax.Precision.HIGHEST)
        x2 = x2 + g["bd"][0]
        if relu:
            x2 = jnp.maximum(x2, 0.0)
        return jnp.concatenate([x1, x2], axis=-1)[..., :g["oup"]]

    out = ghost(x, g1, stride, True)
    out = ghost(out, g2, 1, False)
    if params["shortcut"] == "identity":
        sc = x
    else:
        sub = x[:, ::2, ::2, :]
        pc = planes // 4
        sc = jnp.pad(sub, ((0, 0), (0, 0), (0, 0),
                           (pc, planes - sub.shape[-1] - pc)))
    out = jnp.maximum(out + sc, 0.0)
    return jnp.transpose(out, (0, 3, 1, 2))


if __name__ == "__main__":
    key = jax.random.PRNGKey(0)
    kx, kp1, kp2, kx2 = jax.random.split(key, 4)

    # NCHW input, CIFAR-style sizes.
    x = jax.random.normal(kx, (2, 16, 16, 16), jnp.float32)

    # Case 1: downsampling block (stride=2, option-'A' zero-pad shortcut).
    params = init_basic_block_gst_params(kp1, in_planes=16, planes=32, stride=2)
    fwd = jax.jit(lambda xx: basic_block_gst_forward(xx, params))
    out = jax.block_until_ready(fwd(x))
    assert out.shape == (2, 32, 8, 8), out.shape
    assert bool(jnp.all(jnp.isfinite(out.astype(jnp.float32))))
    ref = _reference_forward(x, params)
    err = float(jnp.max(jnp.abs(out.astype(jnp.float32) - ref)))
    assert err < 1e-1, err   # bf16 activations + bf16 output -> loose check

    # Case 2: identity-shortcut block (stride=1, in_planes == planes).
    params2 = init_basic_block_gst_params(kp2, in_planes=16, planes=16, stride=1)
    fwd2 = jax.jit(lambda xx: basic_block_gst_forward(xx, params2))
    out2 = jax.block_until_ready(fwd2(x))
    assert out2.shape == (2, 16, 16, 16), out2.shape
    assert bool(jnp.all(jnp.isfinite(out2.astype(jnp.float32))))
    ref2 = _reference_forward(x, params2)
    err2 = float(jnp.max(jnp.abs(out2.astype(jnp.float32) - ref2)))
    assert err2 < 1e-1, err2

    # Case 3: batch-blocked path (block_b > 1 folds batch into the matmul M).
    x4 = jax.random.normal(kx2, (4, 16, 16, 16), jnp.float32)
    out4 = jax.block_until_ready(
        jax.jit(lambda xx: basic_block_gst_forward(xx, params))(x4))
    assert out4.shape == (4, 32, 8, 8), out4.shape
    ref4 = _reference_forward(x4, params)
    err4 = float(jnp.max(jnp.abs(out4.astype(jnp.float32) - ref4)))
    assert err4 < 1e-1, err4

    print("KERNEL_OK")
</pallas_src>

<mosaic_0001>
module attributes {stable_mosaic.version = 11 : i64} {
  func.func @_ghost_block_kernel(%arg0: i32, %arg1: memref<4x1x9x9x16xbf16, #tpu.memory_space<vmem>>, %arg2: memref<9x16x16xbf16, #tpu.memory_space<vmem>>, %arg3: memref<1x16xf32, #tpu.memory_space<vmem>>, %arg4: memref<9x1x16xf32, #tpu.memory_space<vmem>>, %arg5: memref<1x16xf32, #tpu.memory_space<vmem>>, %arg6: memref<9x32x16xbf16, #tpu.memory_space<vmem>>, %arg7: memref<1x16xf32, #tpu.memory_space<vmem>>, %arg8: memref<9x1x16xf32, #tpu.memory_space<vmem>>, %arg9: memref<1x16xf32, #tpu.memory_space<vmem>>, %arg10: memref<1x8x8x32xbf16, #tpu.memory_space<vmem>>, %arg11: memref<1x10x10x16xf32, #tpu.memory_space<vmem>>, %arg12: memref<1x10x10x32xbf16, #tpu.memory_space<vmem>>) attributes {dimension_semantics = [#tpu.dimension_semantics<parallel>], iteration_bounds = array<i64: 2>, scalar_prefetch = 0 : i64, scratch_operands = 2 : i64, tpu.core_type = #tpu.core_type<tc>, window_params = [{transform_indices = @transform_0, window_bounds = array<i64: 4, 1, 9, 9, 16>}, {pipeline_mode = #tpu.pipeline_mode<synchronous>, transform_indices = @transform_1, window_bounds = array<i64: 9, 16, 16>}, {pipeline_mode = #tpu.pipeline_mode<synchronous>, transform_indices = @transform_2, window_bounds = array<i64: 1, 16>}, {pipeline_mode = #tpu.pipeline_mode<synchronous>, transform_indices = @transform_3, window_bounds = array<i64: 9, 1, 16>}, {pipeline_mode = #tpu.pipeline_mode<synchronous>, transform_indices = @transform_4, window_bounds = array<i64: 1, 16>}, {pipeline_mode = #tpu.pipeline_mode<synchronous>, transform_indices = @transform_5, window_bounds = array<i64: 9, 32, 16>}, {pipeline_mode = #tpu.pipeline_mode<synchronous>, transform_indices = @transform_6, window_bounds = array<i64: 1, 16>}, {pipeline_mode = #tpu.pipeline_mode<synchronous>, transform_indices = @transform_7, window_bounds = array<i64: 9, 1, 16>}, {pipeline_mode = #tpu.pipeline_mode<synchronous>, transform_indices = @transform_8, window_bounds = array<i64: 1, 16>}, {transform_indices = @transform_9, window_bounds = array<i64: 1, 8, 8, 32>}]} {
    %c0 = arith.constant 0 : index
    %c0_0 = arith.constant 0 : index
    %c0_1 = arith.constant 0 : index
    %c0_2 = arith.constant 0 : index
    %c0_3 = arith.constant 0 : index
    %0 = vector.load %arg1[%c0, %c0_0, %c0_1, %c0_2, %c0_3] : memref<4x1x9x9x16xbf16, #tpu.memory_space<vmem>>, vector<1x1x9x9x16xbf16>
    %1 = vector.shape_cast %0 : vector<1x1x9x9x16xbf16> to vector<1x9x9x16xbf16>
    %c1 = arith.constant 1 : index
    %c0_4 = arith.constant 0 : index
    %c0_5 = arith.constant 0 : index
    %c0_6 = arith.constant 0 : index
    %c0_7 = arith.constant 0 : index
    %2 = vector.load %arg1[%c1, %c0_4, %c0_5, %c0_6, %c0_7] : memref<4x1x9x9x16xbf16, #tpu.memory_space<vmem>>, vector<1x1x9x9x16xbf16>
    %3 = vector.shape_cast %2 : vector<1x1x9x9x16xbf16> to vector<1x9x9x16xbf16>
    %c2 = arith.constant 2 : index
    %c0_8 = arith.constant 0 : index
    %c0_9 = arith.constant 0 : index
    %c0_10 = arith.constant 0 : index
    %c0_11 = arith.constant 0 : index
    %4 = vector.load %arg1[%c2, %c0_8, %c0_9, %c0_10, %c0_11] : memref<4x1x9x9x16xbf16, #tpu.memory_space<vmem>>, vector<1x1x9x9x16xbf16>
    %5 = vector.shape_cast %4 : vector<1x1x9x9x16xbf16> to vector<1x9x9x16xbf16>
    %c3 = arith.constant 3 : index
    %c0_12 = arith.constant 0 : index
    %c0_13 = arith.constant 0 : index
    %c0_14 = arith.constant 0 : index
    %c0_15 = arith.constant 0 : index
    %6 = vector.load %arg1[%c3, %c0_12, %c0_13, %c0_14, %c0_15] : memref<4x1x9x9x16xbf16, #tpu.memory_space<vmem>>, vector<1x1x9x9x16xbf16>
    %7 = vector.shape_cast %6 : vector<1x1x9x9x16xbf16> to vector<1x9x9x16xbf16>
    %c0_16 = arith.constant 0 : index
    %c0_17 = arith.constant 0 : index
    %c0_18 = arith.constant 0 : index
    %8 = vector.load %arg2[%c0_16, %c0_17, %c0_18] : memref<9x16x16xbf16, #tpu.memory_space<vmem>>, vector<9x16x16xbf16>
    %c0_19 = arith.constant 0 : index
    %c0_20 = arith.constant 0 : index
    %c0_21 = arith.constant 0 : index
    %9 = vector.load %arg4[%c0_19, %c0_20, %c0_21] : memref<9x1x16xf32, #tpu.memory_space<vmem>>, vector<9x1x16xf32>
    %c0_22 = arith.constant 0 : index
    %c0_23 = arith.constant 0 : index
    %c0_24 = arith.constant 0 : index
    %10 = vector.load %arg6[%c0_22, %c0_23, %c0_24] : memref<9x32x16xbf16, #tpu.memory_space<vmem>>, vector<9x32x16xbf16>
    %c0_25 = arith.constant 0 : index
    %c0_26 = arith.constant 0 : index
    %c0_27 = arith.constant 0 : index
    %11 = vector.load %arg8[%c0_25, %c0_26, %c0_27] : memref<9x1x16xf32, #tpu.memory_space<vmem>>, vector<9x1x16xf32>
    %cst = arith.constant 0.000000e+00 : f32
    %12 = vector.broadcast %cst : f32 to vector<1x10x10x16xf32>
    %c0_28 = arith.constant 0 : index
    %c0_29 = arith.constant 0 : index
    %c0_30 = arith.constant 0 : index
    %c0_31 = arith.constant 0 : index
    %13 = vector.load %arg11[%c0_28, %c0_29, %c0_30, %c0_31] : memref<1x10x10x16xf32, #tpu.memory_space<vmem>>, vector<1x10x10x16xf32>
    tpu.vector_store %arg11[%c0_28, %c0_29, %c0_30, %c0_31], %12 {strides = array<i32>} : memref<1x10x10x16xf32, #tpu.memory_space<vmem>>, vector<1x10x10x16xf32>,
    %cst_32 = arith.constant 0.000000e+00 : bf16
    %14 = vector.broadcast %cst_32 : bf16 to vector<1x10x10x32xbf16>
    %c0_33 = arith.constant 0 : index
    %c0_34 = arith.constant 0 : index
    %c0_35 = arith.constant 0 : index
    %c0_36 = arith.constant 0 : index
    %15 = vector.load %arg12[%c0_33, %c0_34, %c0_35, %c0_36] : memref<1x10x10x32xbf16, #tpu.memory_space<vmem>>, vector<1x10x10x32xbf16>
    tpu.vector_store %arg12[%c0_33, %c0_34, %c0_35, %c0_36], %14 {strides = array<i32>} : memref<1x10x10x32xbf16, #tpu.memory_space<vmem>>, vector<1x10x10x32xbf16>,
    %cst_37 = arith.constant 0.000000e+00 : f32
    %16 = vector.broadcast %cst_37 : f32 to vector<64x16xf32>
    %17 = vector.extract_strided_slice %1 {offsets = [0, 0, 0, 0], sizes = [1, 8, 8, 16], strides = [1, 1, 1, 1]} : vector<1x9x9x16xbf16> to vector<1x8x8x16xbf16>
    %18 = vector.shape_cast %17 : vector<1x8x8x16xbf16> to vector<64x16xbf16>
    %19 = vector.extract_strided_slice %8 {offsets = [0, 0, 0], sizes = [1, 16, 16], strides = [1, 1, 1]} : vector<9x16x16xbf16> to vector<1x16x16xbf16>
    %20 = vector.shape_cast %19 : vector<1x16x16xbf16> to vector<16x16xbf16>
    %cst_38 = arith.constant dense<0.000000e+00> : vector<64x16xf32>
    %21 = tpu.matmul %18, %20, %cst_38 {dimension_numbers = #tpu.dot_dimension_numbers<[1], [0], [0], [1], [0, 0, 1, 1], [], []>} : vector<64x16xbf16>, vector<16x16xbf16>, vector<64x16xf32> -> vector<64x16xf32>
    %22 = arith.addf %16, %21 : vector<64x16xf32>
    %23 = vector.extract_strided_slice %3 {offsets = [0, 0, 0, 0], sizes = [1, 8, 8, 16], strides = [1, 1, 1, 1]} : vector<1x9x9x16xbf16> to vector<1x8x8x16xbf16>
    %24 = vector.shape_cast %23 : vector<1x8x8x16xbf16> to vector<64x16xbf16>
    %25 = vector.extract_strided_slice %8 {offsets = [1, 0, 0], sizes = [1, 16, 16], strides = [1, 1, 1]} : vector<9x16x16xbf16> to vector<1x16x16xbf16>
    %26 = vector.shape_cast %25 : vector<1x16x16xbf16> to vector<16x16xbf16>
    %cst_39 = arith.constant dense<0.000000e+00> : vector<64x16xf32>
    %27 = tpu.matmul %24, %26, %cst_39 {dimension_numbers = #tpu.dot_dimension_numbers<[1], [0], [0], [1], [0, 0, 1, 1], [], []>} : vector<64x16xbf16>, vector<16x16xbf16>, vector<64x16xf32> -> vector<64x16xf32>
    %28 = arith.addf %22, %27 : vector<64x16xf32>
    %29 = vector.extract_strided_slice %1 {offsets = [0, 0, 1, 0], sizes = [1, 8, 8, 16], strides = [1, 1, 1, 1]} : vector<1x9x9x16xbf16> to vector<1x8x8x16xbf16>
    %30 = vector.shape_cast %29 : vector<1x8x8x16xbf16> to vector<64x16xbf16>
    %31 = vector.extract_strided_slice %8 {offsets = [2, 0, 0], sizes = [1, 16, 16], strides = [1, 1, 1]} : vector<9x16x16xbf16> to vector<1x16x16xbf16>
    %32 = vector.shape_cast %31 : vector<1x16x16xbf16> to vector<16x16xbf16>
    %cst_40 = arith.constant dense<0.000000e+00> : vector<64x16xf32>
    %33 = tpu.matmul %30, %32, %cst_40 {dimension_numbers = #tpu.dot_dimension_numbers<[1], [0], [0], [1], [0, 0, 1, 1], [], []>} : vector<64x16xbf16>, vector<16x16xbf16>, vector<64x16xf32> -> vector<64x16xf32>
    %34 = arith.addf %28, %33 : vector<64x16xf32>
    %35 = vector.extract_strided_slice %5 {offsets = [0, 0, 0, 0], sizes = [1, 8, 8, 16], strides = [1, 1, 1, 1]} : vector<1x9x9x16xbf16> to vector<1x8x8x16xbf16>
    %36 = vector.shape_cast %35 : vector<1x8x8x16xbf16> to vector<64x16xbf16>
    %37 = vector.extract_strided_slice %8 {offsets = [3, 0, 0], sizes = [1, 16, 16], strides = [1, 1, 1]} : vector<9x16x16xbf16> to vector<1x16x16xbf16>
    %38 = vector.shape_cast %37 : vector<1x16x16xbf16> to vector<16x16xbf16>
    %cst_41 = arith.constant dense<0.000000e+00> : vector<64x16xf32>
    %39 = tpu.matmul %36, %38, %cst_41 {dimension_numbers = #tpu.dot_dimension_numbers<[1], [0], [0], [1], [0, 0, 1, 1], [], []>} : vector<64x16xbf16>, vector<16x16xbf16>, vector<64x16xf32> -> vector<64x16xf32>
    %40 = arith.addf %34, %39 : vector<64x16xf32>
    %41 = vector.extract_strided_slice %7 {offsets = [0, 0, 0, 0], sizes = [1, 8, 8, 16], strides = [1, 1, 1, 1]} : vector<1x9x9x16xbf16> to vector<1x8x8x16xbf16>
    %42 = vector.shape_cast %41 : vector<1x8x8x16xbf16> to vector<64x16xbf16>
    %43 = vector.extract_strided_slice %8 {offsets = [4, 0, 0], sizes = [1, 16, 16], strides = [1, 1, 1]} : vector<9x16x16xbf16> to vector<1x16x16xbf16>
    %44 = vector.shape_cast %43 : vector<1x16x16xbf16> to vector<16x16xbf16>
    %cst_42 = arith.constant dense<0.000000e+00> : vector<64x16xf32>
    %45 = tpu.matmul %42, %44, %cst_42 {dimension_numbers = #tpu.dot_dimension_numbers<[1], [0], [0], [1], [0, 0, 1, 1], [], []>} : vector<64x16xbf16>, vector<16x16xbf16>, vector<64x16xf32> -> vector<64x16xf32>
    %46 = arith.addf %40, %45 : vector<64x16xf32>
    %47 = vector.extract_strided_slice %5 {offsets = [0, 0, 1, 0], sizes = [1, 8, 8, 16], strides = [1, 1, 1, 1]} : vector<1x9x9x16xbf16> to vector<1x8x8x16xbf16>
    %48 = vector.shape_cast %47 : vector<1x8x8x16xbf16> to vector<64x16xbf16>
    %49 = vector.extract_strided_slice %8 {offsets = [5, 0, 0], sizes = [1, 16, 16], strides = [1, 1, 1]} : vector<9x16x16xbf16> to vector<1x16x16xbf16>
    %50 = vector.shape_cast %49 : vector<1x16x16xbf16> to vector<16x16xbf16>
    %cst_43 = arith.constant dense<0.000000e+00> : vector<64x16xf32>
    %51 = tpu.matmul %48, %50, %cst_43 {dimension_numbers = #tpu.dot_dimension_numbers<[1], [0], [0], [1], [0, 0, 1, 1], [], []>} : vector<64x16xbf16>, vector<16x16xbf16>, vector<64x16xf32> -> vector<64x16xf32>
    %52 = arith.addf %46, %51 : vector<64x16xf32>
    %53 = vector.extract_strided_slice %1 {offsets = [0, 1, 0, 0], sizes = [1, 8, 8, 16], strides = [1, 1, 1, 1]} : vector<1x9x9x16xbf16> to vector<1x8x8x16xbf16>
    %54 = vector.shape_cast %53 : vector<1x8x8x16xbf16> to vector<64x16xbf16>
    %55 = vector.extract_strided_slice %8 {offsets = [6, 0, 0], sizes = [1, 16, 16], strides = [1, 1, 1]} : vector<9x16x16xbf16> to vector<1x16x16xbf16>
    %56 = vector.shape_cast %55 : vector<1x16x16xbf16> to vector<16x16xbf16>
    %cst_44 = arith.constant dense<0.000000e+00> : vector<64x16xf32>
    %57 = tpu.matmul %54, %56, %cst_44 {dimension_numbers = #tpu.dot_dimension_numbers<[1], [0], [0], [1], [0, 0, 1, 1], [], []>} : vector<64x16xbf16>, vector<16x16xbf16>, vector<64x16xf32> -> vector<64x16xf32>
    %58 = arith.addf %52, %57 : vector<64x16xf32>
    %59 = vector.extract_strided_slice %3 {offsets = [0, 1, 0, 0], sizes = [1, 8, 8, 16], strides = [1, 1, 1, 1]} : vector<1x9x9x16xbf16> to vector<1x8x8x16xbf16>
    %60 = vector.shape_cast %59 : vector<1x8x8x16xbf16> to vector<64x16xbf16>
    %61 = vector.extract_strided_slice %8 {offsets = [7, 0, 0], sizes = [1, 16, 16], strides = [1, 1, 1]} : vector<9x16x16xbf16> to vector<1x16x16xbf16>
    %62 = vector.shape_cast %61 : vector<1x16x16xbf16> to vector<16x16xbf16>
    %cst_45 = arith.constant dense<0.000000e+00> : vector<64x16xf32>
    %63 = tpu.matmul %60, %62, %cst_45 {dimension_numbers = #tpu.dot_dimension_numbers<[1], [0], [0], [1], [0, 0, 1, 1], [], []>} : vector<64x16xbf16>, vector<16x16xbf16>, vector<64x16xf32> -> vector<64x16xf32>
    %64 = arith.addf %58, %63 : vector<64x16xf32>
    %65 = vector.extract_strided_slice %1 {offsets = [0, 1, 1, 0], sizes = [1, 8, 8, 16], strides = [1, 1, 1, 1]} : vector<1x9x9x16xbf16> to vector<1x8x8x16xbf16>
    %66 = vector.shape_cast %65 : vector<1x8x8x16xbf16> to vector<64x16xbf16>
    %67 = vector.extract_strided_slice %8 {offsets = [8, 0, 0], sizes = [1, 16, 16], strides = [1, 1, 1]} : vector<9x16x16xbf16> to vector<1x16x16xbf16>
    %68 = vector.shape_cast %67 : vector<1x16x16xbf16> to vector<16x16xbf16>
    %cst_46 = arith.constant dense<0.000000e+00> : vector<64x16xf32>
    %69 = tpu.matmul %66, %68, %cst_46 {dimension_numbers = #tpu.dot_dimension_numbers<[1], [0], [0], [1], [0, 0, 1, 1], [], []>} : vector<64x16xbf16>, vector<16x16xbf16>, vector<64x16xf32> -> vector<64x16xf32>
    %70 = arith.addf %64, %69 : vector<64x16xf32>
    %c0_47 = arith.constant 0 : index
    %c0_48 = arith.constant 0 : index
    %71 = vector.load %arg3[%c0_47, %c0_48] : memref<1x16xf32, #tpu.memory_space<vmem>>, vector<1x16xf32>
    %72 = vector.broadcast %71 : vector<1x16xf32> to vector<64x16xf32>
    %73 = arith.addf %70, %72 : vector<64x16xf32>
    %cst_49 = arith.constant 0.000000e+00 : f32
    %74 = vector.broadcast %cst_49 : f32 to vector<64x16xf32>
    %75 = arith.maximumf %73, %74 : vector<64x16xf32>
    %76 = vector.shape_cast %75 : vector<64x16xf32> to vector<1x8x8x16xf32>
    %c0_50 = arith.constant 0 : index
    %c1_51 = arith.constant 1 : index
    %c1_52 = arith.constant 1 : index
    %c0_53 = arith.constant 0 : index
    %77 = vector.load %arg11[%c0_50, %c1_51, %c1_52, %c0_53] : memref<1x10x10x16xf32, #tpu.memory_space<vmem>>, vector<1x8x8x16xf32>
    tpu.vector_store %arg11[%c0_50, %c1_51, %c1_52, %c0_53], %76 {strides = array<i32>} : memref<1x10x10x16xf32, #tpu.memory_space<vmem>>, vector<1x8x8x16xf32>,
    %c0_54 = arith.constant 0 : index
    %c0_55 = arith.constant 0 : index
    %c0_56 = arith.constant 0 : index
    %c0_57 = arith.constant 0 : index
    %78 = vector.load %arg11[%c0_54, %c0_55, %c0_56, %c0_57] : memref<1x10x10x16xf32, #tpu.memory_space<vmem>>, vector<1x10x10x16xf32>
    %cst_58 = arith.constant 0.000000e+00 : f32
    %79 = vector.broadcast %cst_58 : f32 to vector<1x8x8x16xf32>
    %80 = vector.extract_strided_slice %78 {offsets = [0, 0, 0, 0], sizes = [1, 8, 8, 16], strides = [1, 1, 1, 1]} : vector<1x10x10x16xf32> to vector<1x8x8x16xf32>
    %81 = vector.extract_strided_slice %9 {offsets = [0, 0, 0], sizes = [1, 1, 16], strides = [1, 1, 1]} : vector<9x1x16xf32> to vector<1x1x16xf32>
    %82 = vector.shape_cast %81 : vector<1x1x16xf32> to vector<1x16xf32>
    %83 = vector.shape_cast %82 : vector<1x16xf32> to vector<1x1x1x16xf32>
    %84 = vector.broadcast %83 : vector<1x1x1x16xf32> to vector<1x8x8x16xf32>
    %85 = arith.mulf %80, %84 : vector<1x8x8x16xf32>
    %86 = arith.addf %79, %85 : vector<1x8x8x16xf32>
    %87 = vector.extract_strided_slice %78 {offsets = [0, 0, 1, 0], sizes = [1, 8, 8, 16], strides = [1, 1, 1, 1]} : vector<1x10x10x16xf32> to vector<1x8x8x16xf32>
    %88 = vector.extract_strided_slice %9 {offsets = [1, 0, 0], sizes = [1, 1, 16], strides = [1, 1, 1]} : vector<9x1x16xf32> to vector<1x1x16xf32>
    %89 = vector.shape_cast %88 : vector<1x1x16xf32> to vector<1x16xf32>
    %90 = vector.shape_cast %89 : vector<1x16xf32> to vector<1x1x1x16xf32>
    %91 = vector.broadcast %90 : vector<1x1x1x16xf32> to vector<1x8x8x16xf32>
    %92 = arith.mulf %87, %91 : vector<1x8x8x16xf32>
    %93 = arith.addf %86, %92 : vector<1x8x8x16xf32>
    %94 = vector.extract_strided_slice %78 {offsets = [0, 0, 2, 0], sizes = [1, 8, 8, 16], strides = [1, 1, 1, 1]} : vector<1x10x10x16xf32> to vector<1x8x8x16xf32>
    %95 = vector.extract_strided_slice %9 {offsets = [2, 0, 0], sizes = [1, 1, 16], strides = [1, 1, 1]} : vector<9x1x16xf32> to vector<1x1x16xf32>
    %96 = vector.shape_cast %95 : vector<1x1x16xf32> to vector<1x16xf32>
    %97 = vector.shape_cast %96 : vector<1x16xf32> to vector<1x1x1x16xf32>
    %98 = vector.broadcast %97 : vector<1x1x1x16xf32> to vector<1x8x8x16xf32>
    %99 = arith.mulf %94, %98 : vector<1x8x8x16xf32>
    %100 = arith.addf %93, %99 : vector<1x8x8x16xf32>
    %101 = vector.extract_strided_slice %78 {offsets = [0, 1, 0, 0], sizes = [1, 8, 8, 16], strides = [1, 1, 1, 1]} : vector<1x10x10x16xf32> to vector<1x8x8x16xf32>
    %102 = vector.extract_strided_slice %9 {offsets = [3, 0, 0], sizes = [1, 1, 16], strides = [1, 1, 1]} : vector<9x1x16xf32> to vector<1x1x16xf32>
    %103 = vector.shape_cast %102 : vector<1x1x16xf32> to vector<1x16xf32>
    %104 = vector.shape_cast %103 : vector<1x16xf32> to vector<1x1x1x16xf32>
    %105 = vector.broadcast %104 : vector<1x1x1x16xf32> to vector<1x8x8x16xf32>
    %106 = arith.mulf %101, %105 : vector<1x8x8x16xf32>
    %107 = arith.addf %100, %106 : vector<1x8x8x16xf32>
    %108 = vector.extract_strided_slice %78 {offsets = [0, 1, 1, 0], sizes = [1, 8, 8, 16], strides = [1, 1, 1, 1]} : vector<1x10x10x16xf32> to vector<1x8x8x16xf32>
    %109 = vector.extract_strided_slice %9 {offsets = [4, 0, 0], sizes = [1, 1, 16], strides = [1, 1, 1]} : vector<9x1x16xf32> to vector<1x1x16xf32>
    %110 = vector.shape_cast %109 : vector<1x1x16xf32> to vector<1x16xf32>
    %111 = vector.shape_cast %110 : vector<1x16xf32> to vector<1x1x1x16xf32>
    %112 = vector.broadcast %111 : vector<1x1x1x16xf32> to vector<1x8x8x16xf32>
    %113 = arith.mulf %108, %112 : vector<1x8x8x16xf32>
    %114 = arith.addf %107, %113 : vector<1x8x8x16xf32>
    %115 = vector.extract_strided_slice %78 {offsets = [0, 1, 2, 0], sizes = [1, 8, 8, 16], strides = [1, 1, 1, 1]} : vector<1x10x10x16xf32> to vector<1x8x8x16xf32>
    %116 = vector.extract_strided_slice %9 {offsets = [5, 0, 0], sizes = [1, 1, 16], strides = [1, 1, 1]} : vector<9x1x16xf32> to vector<1x1x16xf32>
    %117 = vector.shape_cast %116 : vector<1x1x16xf32> to vector<1x16xf32>
    %118 = vector.shape_cast %117 : vector<1x16xf32> to vector<1x1x1x16xf32>
    %119 = vector.broadcast %118 : vector<1x1x1x16xf32> to vector<1x8x8x16xf32>
    %120 = arith.mulf %115, %119 : vector<1x8x8x16xf32>
    %121 = arith.addf %114, %120 : vector<1x8x8x16xf32>
    %122 = vector.extract_strided_slice %78 {offsets = [0, 2, 0, 0], sizes = [1, 8, 8, 16], strides = [1, 1, 1, 1]} : vector<1x10x10x16xf32> to vector<1x8x8x16xf32>
    %123 = vector.extract_strided_slice %9 {offsets = [6, 0, 0], sizes = [1, 1, 16], strides = [1, 1, 1]} : vector<9x1x16xf32> to vector<1x1x16xf32>
    %124 = vector.shape_cast %123 : vector<1x1x16xf32> to vector<1x16xf32>
    %125 = vector.shape_cast %124 : vector<1x16xf32> to vector<1x1x1x16xf32>
    %126 = vector.broadcast %125 : vector<1x1x1x16xf32> to vector<1x8x8x16xf32>
    %127 = arith.mulf %122, %126 : vector<1x8x8x16xf32>
    %128 = arith.addf %121, %127 : vector<1x8x8x16xf32>
    %129 = vector.extract_strided_slice %78 {offsets = [0, 2, 1, 0], sizes = [1, 8, 8, 16], strides = [1, 1, 1, 1]} : vector<1x10x10x16xf32> to vector<1x8x8x16xf32>
    %130 = vector.extract_strided_slice %9 {offsets = [7, 0, 0], sizes = [1, 1, 16], strides = [1, 1, 1]} : vector<9x1x16xf32> to vector<1x1x16xf32>
    %131 = vector.shape_cast %130 : vector<1x1x16xf32> to vector<1x16xf32>
    %132 = vector.shape_cast %131 : vector<1x16xf32> to vector<1x1x1x16xf32>
    %133 = vector.broadcast %132 : vector<1x1x1x16xf32> to vector<1x8x8x16xf32>
    %134 = arith.mulf %129, %133 : vector<1x8x8x16xf32>
    %135 = arith.addf %128, %134 : vector<1x8x8x16xf32>
    %136 = vector.extract_strided_slice %78 {offsets = [0, 2, 2, 0], sizes = [1, 8, 8, 16], strides = [1, 1, 1, 1]} : vector<1x10x10x16xf32> to vector<1x8x8x16xf32>
    %137 = vector.extract_strided_slice %9 {offsets = [8, 0, 0], sizes = [1, 1, 16], strides = [1, 1, 1]} : vector<9x1x16xf32> to vector<1x1x16xf32>
    %138 = vector.shape_cast %137 : vector<1x1x16xf32> to vector<1x16xf32>
    %139 = vector.shape_cast %138 : vector<1x16xf32> to vector<1x1x1x16xf32>
    %140 = vector.broadcast %139 : vector<1x1x1x16xf32> to vector<1x8x8x16xf32>
    %141 = arith.mulf %136, %140 : vector<1x8x8x16xf32>
    %142 = arith.addf %135, %141 : vector<1x8x8x16xf32>
    %c0_59 = arith.constant 0 : index
    %c0_60 = arith.constant 0 : index
    %143 = vector.load %arg5[%c0_59, %c0_60] : memref<1x16xf32, #tpu.memory_space<vmem>>, vector<1x16xf32>
    %144 = vector.shape_cast %143 : vector<1x16xf32> to vector<1x1x1x16xf32>
    %145 = vector.broadcast %144 : vector<1x1x1x16xf32> to vector<1x8x8x16xf32>
    %146 = arith.addf %142, %145 : vector<1x8x8x16xf32>
    %cst_61 = arith.constant 0.000000e+00 : f32
    %147 = vector.broadcast %cst_61 : f32 to vector<1x8x8x16xf32>
    %148 = arith.maximumf %146, %147 : vector<1x8x8x16xf32>
    %149 = tpu.concatenate %76, %148 in 3 : vector<1x8x8x16xf32>, vector<1x8x8x16xf32> -> vector<1x8x8x32xf32>
    %150 = arith.truncf %149 : vector<1x8x8x32xf32> to vector<1x8x8x32xbf16>
    %c0_62 = arith.constant 0 : index
    %c1_63 = arith.constant 1 : index
    %c1_64 = arith.constant 1 : index
    %c0_65 = arith.constant 0 : index
    %151 = vector.load %arg12[%c0_62, %c1_63, %c1_64, %c0_65] : memref<1x10x10x32xbf16, #tpu.memory_space<vmem>>, vector<1x8x8x32xbf16>
    tpu.vector_store %arg12[%c0_62, %c1_63, %c1_64, %c0_65], %150 {strides = array<i32>} : memref<1x10x10x32xbf16, #tpu.memory_space<vmem>>, vector<1x8x8x32xbf16>,
    %c0_66 = arith.constant 0 : index
    %c0_67 = arith.constant 0 : index
    %c0_68 = arith.constant 0 : index
    %c0_69 = arith.constant 0 : index
    %152 = vector.load %arg12[%c0_66, %c0_67, %c0_68, %c0_69] : memref<1x10x10x32xbf16, #tpu.memory_space<vmem>>, vector<1x10x10x32xbf16>
    %cst_70 = arith.constant 0.000000e+00 : f32
    %153 = vector.broadcast %cst_70 : f32 to vector<64x16xf32>
    %154 = vector.extract_strided_slice %152 {offsets = [0, 0, 0, 0], sizes = [1, 8, 8, 32], strides = [1, 1, 1, 1]} : vector<1x10x10x32xbf16> to vector<1x8x8x32xbf16>
    %155 = vector.shape_cast %154 : vector<1x8x8x32xbf16> to vector<64x32xbf16>
    %156 = vector.extract_strided_slice %10 {offsets = [0, 0, 0], sizes = [1, 32, 16], strides = [1, 1, 1]} : vector<9x32x16xbf16> to vector<1x32x16xbf16>
    %157 = vector.shape_cast %156 : vector<1x32x16xbf16> to vector<32x16xbf16>
    %cst_71 = arith.constant dense<0.000000e+00> : vector<64x16xf32>
    %158 = tpu.matmul %155, %157, %cst_71 {dimension_numbers = #tpu.dot_dimension_numbers<[1], [0], [0], [1], [0, 0, 1, 1], [], []>} : vector<64x32xbf16>, vector<32x16xbf16>, vector<64x16xf32> -> vector<64x16xf32>
    %159 = arith.addf %153, %158 : vector<64x16xf32>
    %160 = vector.extract_strided_slice %152 {offsets = [0, 0, 1, 0], sizes = [1, 8, 8, 32], strides = [1, 1, 1, 1]} : vector<1x10x10x32xbf16> to vector<1x8x8x32xbf16>
    %161 = vector.shape_cast %160 : vector<1x8x8x32xbf16> to vector<64x32xbf16>
    %162 = vector.extract_strided_slice %10 {offsets = [1, 0, 0], sizes = [1, 32, 16], strides = [1, 1, 1]} : vector<9x32x16xbf16> to vector<1x32x16xbf16>
    %163 = vector.shape_cast %162 : vector<1x32x16xbf16> to vector<32x16xbf16>
    %cst_72 = arith.constant dense<0.000000e+00> : vector<64x16xf32>
    %164 = tpu.matmul %161, %163, %cst_72 {dimension_numbers = #tpu.dot_dimension_numbers<[1], [0], [0], [1], [0, 0, 1, 1], [], []>} : vector<64x32xbf16>, vector<32x16xbf16>, vector<64x16xf32> -> vector<64x16xf32>
    %165 = arith.addf %159, %164 : vector<64x16xf32>
    %166 = vector.extract_strided_slice %152 {offsets = [0, 0, 2, 0], sizes = [1, 8, 8, 32], strides = [1, 1, 1, 1]} : vector<1x10x10x32xbf16> to vector<1x8x8x32xbf16>
    %167 = vector.shape_cast %166 : vector<1x8x8x32xbf16> to vector<64x32xbf16>
    %168 = vector.extract_strided_slice %10 {offsets = [2, 0, 0], sizes = [1, 32, 16], strides = [1, 1, 1]} : vector<9x32x16xbf16> to vector<1x32x16xbf16>
    %169 = vector.shape_cast %168 : vector<1x32x16xbf16> to vector<32x16xbf16>
    %cst_73 = arith.constant dense<0.000000e+00> : vector<64x16xf32>
    %170 = tpu.matmul %167, %169, %cst_73 {dimension_numbers = #tpu.dot_dimension_numbers<[1], [0], [0], [1], [0, 0, 1, 1], [], []>} : vector<64x32xbf16>, vector<32x16xbf16>, vector<64x16xf32> -> vector<64x16xf32>
    %171 = arith.addf %165, %170 : vector<64x16xf32>
    %172 = vector.extract_strided_slice %152 {offsets = [0, 1, 0, 0], sizes = [1, 8, 8, 32], strides = [1, 1, 1, 1]} : vector<1x10x10x32xbf16> to vector<1x8x8x32xbf16>
    %173 = vector.shape_cast %172 : vector<1x8x8x32xbf16> to vector<64x32xbf16>
    %174 = vector.extract_strided_slice %10 {offsets = [3, 0, 0], sizes = [1, 32, 16], strides = [1, 1, 1]} : vector<9x32x16xbf16> to vector<1x32x16xbf16>
    %175 = vector.shape_cast %174 : vector<1x32x16xbf16> to vector<32x16xbf16>
    %cst_74 = arith.constant dense<0.000000e+00> : vector<64x16xf32>
    %176 = tpu.matmul %173, %175, %cst_74 {dimension_numbers = #tpu.dot_dimension_numbers<[1], [0], [0], [1], [0, 0, 1, 1], [], []>} : vector<64x32xbf16>, vector<32x16xbf16>, vector<64x16xf32> -> vector<64x16xf32>
    %177 = arith.addf %171, %176 : vector<64x16xf32>
    %178 = vector.extract_strided_slice %152 {offsets = [0, 1, 1, 0], sizes = [1, 8, 8, 32], strides = [1, 1, 1, 1]} : vector<1x10x10x32xbf16> to vector<1x8x8x32xbf16>
    %179 = vector.shape_cast %178 : vector<1x8x8x32xbf16> to vector<64x32xbf16>
    %180 = vector.extract_strided_slice %10 {offsets = [4, 0, 0], sizes = [1, 32, 16], strides = [1, 1, 1]} : vector<9x32x16xbf16> to vector<1x32x16xbf16>
    %181 = vector.shape_cast %180 : vector<1x32x16xbf16> to vector<32x16xbf16>
    %cst_75 = arith.constant dense<0.000000e+00> : vector<64x16xf32>
    %182 = tpu.matmul %179, %181, %cst_75 {dimension_numbers = #tpu.dot_dimension_numbers<[1], [0], [0], [1], [0, 0, 1, 1], [], []>} : vector<64x32xbf16>, vector<32x16xbf16>, vector<64x16xf32> -> vector<64x16xf32>
    %183 = arith.addf %177, %182 : vector<64x16xf32>
    %184 = vector.extract_strided_slice %152 {offsets = [0, 1, 2, 0], sizes = [1, 8, 8, 32], strides = [1, 1, 1, 1]} : vector<1x10x10x32xbf16> to vector<1x8x8x32xbf16>
    %185 = vector.shape_cast %184 : vector<1x8x8x32xbf16> to vector<64x32xbf16>
    %186 = vector.extract_strided_slice %10 {offsets = [5, 0, 0], sizes = [1, 32, 16], strides = [1, 1, 1]} : vector<9x32x16xbf16> to vector<1x32x16xbf16>
    %187 = vector.shape_cast %186 : vector<1x32x16xbf16> to vector<32x16xbf16>
    %cst_76 = arith.constant dense<0.000000e+00> : vector<64x16xf32>
    %188 = tpu.matmul %185, %187, %cst_76 {dimension_numbers = #tpu.dot_dimension_numbers<[1], [0], [0], [1], [0, 0, 1, 1], [], []>} : vector<64x32xbf16>, vector<32x16xbf16>, vector<64x16xf32> -> vector<64x16xf32>
    %189 = arith.addf %183, %188 : vector<64x16xf32>
    %190 = vector.extract_strided_slice %152 {offsets = [0, 2, 0, 0], sizes = [1, 8, 8, 32], strides = [1, 1, 1, 1]} : vector<1x10x10x32xbf16> to vector<1x8x8x32xbf16>
    %191 = vector.shape_cast %190 : vector<1x8x8x32xbf16> to vector<64x32xbf16>
    %192 = vector.extract_strided_slice %10 {offsets = [6, 0, 0], sizes = [1, 32, 16], strides = [1, 1, 1]} : vector<9x32x16xbf16> to vector<1x32x16xbf16>
    %193 = vector.shape_cast %192 : vector<1x32x16xbf16> to vector<32x16xbf16>
    %cst_77 = arith.constant dense<0.000000e+00> : vector<64x16xf32>
    %194 = tpu.matmul %191, %193, %cst_77 {dimension_numbers = #tpu.dot_dimension_numbers<[1], [0], [0], [1], [0, 0, 1, 1], [], []>} : vector<64x32xbf16>, vector<32x16xbf16>, vector<64x16xf32> -> vector<64x16xf32>
    %195 = arith.addf %189, %194 : vector<64x16xf32>
    %196 = vector.extract_strided_slice %152 {offsets = [0, 2, 1, 0], sizes = [1, 8, 8, 32], strides = [1, 1, 1, 1]} : vector<1x10x10x32xbf16> to vector<1x8x8x32xbf16>
    %197 = vector.shape_cast %196 : vector<1x8x8x32xbf16> to vector<64x32xbf16>
    %198 = vector.extract_strided_slice %10 {offsets = [7, 0, 0], sizes = [1, 32, 16], strides = [1, 1, 1]} : vector<9x32x16xbf16> to vector<1x32x16xbf16>
    %199 = vector.shape_cast %198 : vector<1x32x16xbf16> to vector<32x16xbf16>
    %cst_78 = arith.constant dense<0.000000e+00> : vector<64x16xf32>
    %200 = tpu.matmul %197, %199, %cst_78 {dimension_numbers = #tpu.dot_dimension_numbers<[1], [0], [0], [1], [0, 0, 1, 1], [], []>} : vector<64x32xbf16>, vector<32x16xbf16>, vector<64x16xf32> -> vector<64x16xf32>
    %201 = arith.addf %195, %200 : vector<64x16xf32>
    %202 = vector.extract_strided_slice %152 {offsets = [0, 2, 2, 0], sizes = [1, 8, 8, 32], strides = [1, 1, 1, 1]} : vector<1x10x10x32xbf16> to vector<1x8x8x32xbf16>
    %203 = vector.shape_cast %202 : vector<1x8x8x32xbf16> to vector<64x32xbf16>
    %204 = vector.extract_strided_slice %10 {offsets = [8, 0, 0], sizes = [1, 32, 16], strides = [1, 1, 1]} : vector<9x32x16xbf16> to vector<1x32x16xbf16>
    %205 = vector.shape_cast %204 : vector<1x32x16xbf16> to vector<32x16xbf16>
    %cst_79 = arith.constant dense<0.000000e+00> : vector<64x16xf32>
    %206 = tpu.matmul %203, %205, %cst_79 {dimension_numbers = #tpu.dot_dimension_numbers<[1], [0], [0], [1], [0, 0, 1, 1], [], []>} : vector<64x32xbf16>, vector<32x16xbf16>, vector<64x16xf32> -> vector<64x16xf32>
    %207 = arith.addf %201, %206 : vector<64x16xf32>
    %c0_80 = arith.constant 0 : index
    %c0_81 = arith.constant 0 : index
    %208 = vector.load %arg7[%c0_80, %c0_81] : memref<1x16xf32, #tpu.memory_space<vmem>>, vector<1x16xf32>
    %209 = vector.broadcast %208 : vector<1x16xf32> to vector<64x16xf32>
    %210 = arith.addf %207, %209 : vector<64x16xf32>
    %211 = vector.shape_cast %210 : vector<64x16xf32> to vector<1x8x8x16xf32>
    %c0_82 = arith.constant 0 : index
    %c1_83 = arith.constant 1 : index
    %c1_84 = arith.constant 1 : index
    %c0_85 = arith.constant 0 : index
    %212 = vector.load %arg11[%c0_82, %c1_83, %c1_84, %c0_85] : memref<1x10x10x16xf32, #tpu.memory_space<vmem>>, vector<1x8x8x16xf32>
    tpu.vector_store %arg11[%c0_82, %c1_83, %c1_84, %c0_85], %211 {strides = array<i32>} : memref<1x10x10x16xf32, #tpu.memory_space<vmem>>, vector<1x8x8x16xf32>,
    %c0_86 = arith.constant 0 : index
    %c0_87 = arith.constant 0 : index
    %c0_88 = arith.constant 0 : index
    %c0_89 = arith.constant 0 : index
    %213 = vector.load %arg11[%c0_86, %c0_87, %c0_88, %c0_89] : memref<1x10x10x16xf32, #tpu.memory_space<vmem>>, vector<1x10x10x16xf32>
    %cst_90 = arith.constant 0.000000e+00 : f32
    %214 = vector.broadcast %cst_90 : f32 to vector<1x8x8x16xf32>
    %215 = vector.extract_strided_slice %213 {offsets = [0, 0, 0, 0], sizes = [1, 8, 8, 16], strides = [1, 1, 1, 1]} : vector<1x10x10x16xf32> to vector<1x8x8x16xf32>
    %216 = vector.extract_strided_slice %11 {offsets = [0, 0, 0], sizes = [1, 1, 16], strides = [1, 1, 1]} : vector<9x1x16xf32> to vector<1x1x16xf32>
    %217 = vector.shape_cast %216 : vector<1x1x16xf32> to vector<1x16xf32>
    %218 = vector.shape_cast %217 : vector<1x16xf32> to vector<1x1x1x16xf32>
    %219 = vector.broadcast %218 : vector<1x1x1x16xf32> to vector<1x8x8x16xf32>
    %220 = arith.mulf %215, %219 : vector<1x8x8x16xf32>
    %221 = arith.addf %214, %220 : vector<1x8x8x16xf32>
    %222 = vector.extract_strided_slice %213 {offsets = [0, 0, 1, 0], sizes = [1, 8, 8, 16], strides = [1, 1, 1, 1]} : vector<1x10x10x16xf32> to vector<1x8x8x16xf32>
    %223 = vector.extract_strided_slice %11 {offsets = [1, 0, 0], sizes = [1, 1, 16], strides = [1, 1, 1]} : vector<9x1x16xf32> to vector<1x1x16xf32>
    %224 = vector.shape_cast %223 : vector<1x1x16xf32> to vector<1x16xf32>
    %225 = vector.shape_cast %224 : vector<1x16xf32> to vector<1x1x1x16xf32>
    %226 = vector.broadcast %225 : vector<1x1x1x16xf32> to vector<1x8x8x16xf32>
    %227 = arith.mulf %222, %226 : vector<1x8x8x16xf32>
    %228 = arith.addf %221, %227 : vector<1x8x8x16xf32>
    %229 = vector.extract_strided_slice %213 {offsets = [0, 0, 2, 0], sizes = [1, 8, 8, 16], strides = [1, 1, 1, 1]} : vector<1x10x10x16xf32> to vector<1x8x8x16xf32>
    %230 = vector.extract_strided_slice %11 {offsets = [2, 0, 0], sizes = [1, 1, 16], strides = [1, 1, 1]} : vector<9x1x16xf32> to vector<1x1x16xf32>
    %231 = vector.shape_cast %230 : vector<1x1x16xf32> to vector<1x16xf32>
    %232 = vector.shape_cast %231 : vector<1x16xf32> to vector<1x1x1x16xf32>
    %233 = vector.broadcast %232 : vector<1x1x1x16xf32> to vector<1x8x8x16xf32>
    %234 = arith.mulf %229, %233 : vector<1x8x8x16xf32>
    %235 = arith.addf %228, %234 : vector<1x8x8x16xf32>
    %236 = vector.extract_strided_slice %213 {offsets = [0, 1, 0, 0], sizes = [1, 8, 8, 16], strides = [1, 1, 1, 1]} : vector<1x10x10x16xf32> to vector<1x8x8x16xf32>
    %237 = vector.extract_strided_slice %11 {offsets = [3, 0, 0], sizes = [1, 1, 16], strides = [1, 1, 1]} : vector<9x1x16xf32> to vector<1x1x16xf32>
    %238 = vector.shape_cast %237 : vector<1x1x16xf32> to vector<1x16xf32>
    %239 = vector.shape_cast %238 : vector<1x16xf32> to vector<1x1x1x16xf32>
    %240 = vector.broadcast %239 : vector<1x1x1x16xf32> to vector<1x8x8x16xf32>
    %241 = arith.mulf %236, %240 : vector<1x8x8x16xf32>
    %242 = arith.addf %235, %241 : vector<1x8x8x16xf32>
    %243 = vector.extract_strided_slice %213 {offsets = [0, 1, 1, 0], sizes = [1, 8, 8, 16], strides = [1, 1, 1, 1]} : vector<1x10x10x16xf32> to vector<1x8x8x16xf32>
    %244 = vector.extract_strided_slice %11 {offsets = [4, 0, 0], sizes = [1, 1, 16], strides = [1, 1, 1]} : vector<9x1x16xf32> to vector<1x1x16xf32>
    %245 = vector.shape_cast %244 : vector<1x1x16xf32> to vector<1x16xf32>
    %246 = vector.shape_cast %245 : vector<1x16xf32> to vector<1x1x1x16xf32>
    %247 = vector.broadcast %246 : vector<1x1x1x16xf32> to vector<1x8x8x16xf32>
    %248 = arith.mulf %243, %247 : vector<1x8x8x16xf32>
    %249 = arith.addf %242, %248 : vector<1x8x8x16xf32>
    %250 = vector.extract_strided_slice %213 {offsets = [0, 1, 2, 0], sizes = [1, 8, 8, 16], strides = [1, 1, 1, 1]} : vector<1x10x10x16xf32> to vector<1x8x8x16xf32>
    %251 = vector.extract_strided_slice %11 {offsets = [5, 0, 0], sizes = [1, 1, 16], strides = [1, 1, 1]} : vector<9x1x16xf32> to vector<1x1x16xf32>
    %252 = vector.shape_cast %251 : vector<1x1x16xf32> to vector<1x16xf32>
    %253 = vector.shape_cast %252 : vector<1x16xf32> to vector<1x1x1x16xf32>
    %254 = vector.broadcast %253 : vector<1x1x1x16xf32> to vector<1x8x8x16xf32>
    %255 = arith.mulf %250, %254 : vector<1x8x8x16xf32>
    %256 = arith.addf %249, %255 : vector<1x8x8x16xf32>
    %257 = vector.extract_strided_slice %213 {offsets = [0, 2, 0, 0], sizes = [1, 8, 8, 16], strides = [1, 1, 1, 1]} : vector<1x10x10x16xf32> to vector<1x8x8x16xf32>
    %258 = vector.extract_strided_slice %11 {offsets = [6, 0, 0], sizes = [1, 1, 16], strides = [1, 1, 1]} : vector<9x1x16xf32> to vector<1x1x16xf32>
    %259 = vector.shape_cast %258 : vector<1x1x16xf32> to vector<1x16xf32>
    %260 = vector.shape_cast %259 : vector<1x16xf32> to vector<1x1x1x16xf32>
    %261 = vector.broadcast %260 : vector<1x1x1x16xf32> to vector<1x8x8x16xf32>
    %262 = arith.mulf %257, %261 : vector<1x8x8x16xf32>
    %263 = arith.addf %256, %262 : vector<1x8x8x16xf32>
    %264 = vector.extract_strided_slice %213 {offsets = [0, 2, 1, 0], sizes = [1, 8, 8, 16], strides = [1, 1, 1, 1]} : vector<1x10x10x16xf32> to vector<1x8x8x16xf32>
    %265 = vector.extract_strided_slice %11 {offsets = [7, 0, 0], sizes = [1, 1, 16], strides = [1, 1, 1]} : vector<9x1x16xf32> to vector<1x1x16xf32>
    %266 = vector.shape_cast %265 : vector<1x1x16xf32> to vector<1x16xf32>
    %267 = vector.shape_cast %266 : vector<1x16xf32> to vector<1x1x1x16xf32>
    %268 = vector.broadcast %267 : vector<1x1x1x16xf32> to vector<1x8x8x16xf32>
    %269 = arith.mulf %264, %268 : vector<1x8x8x16xf32>
    %270 = arith.addf %263, %269 : vector<1x8x8x16xf32>
    %271 = vector.extract_strided_slice %213 {offsets = [0, 2, 2, 0], sizes = [1, 8, 8, 16], strides = [1, 1, 1, 1]} : vector<1x10x10x16xf32> to vector<1x8x8x16xf32>
    %272 = vector.extract_strided_slice %11 {offsets = [8, 0, 0], sizes = [1, 1, 16], strides = [1, 1, 1]} : vector<9x1x16xf32> to vector<1x1x16xf32>
    %273 = vector.shape_cast %272 : vector<1x1x16xf32> to vector<1x16xf32>
    %274 = vector.shape_cast %273 : vector<1x16xf32> to vector<1x1x1x16xf32>
    %275 = vector.broadcast %274 : vector<1x1x1x16xf32> to vector<1x8x8x16xf32>
    %276 = arith.mulf %271, %275 : vector<1x8x8x16xf32>
    %277 = arith.addf %270, %276 : vector<1x8x8x16xf32>
    %c0_91 = arith.constant 0 : index
    %c0_92 = arith.constant 0 : index
    %278 = vector.load %arg9[%c0_91, %c0_92] : memref<1x16xf32, #tpu.memory_space<vmem>>, vector<1x16xf32>
    %279 = vector.shape_cast %278 : vector<1x16xf32> to vector<1x1x1x16xf32>
    %280 = vector.broadcast %279 : vector<1x1x1x16xf32> to vector<1x8x8x16xf32>
    %281 = arith.addf %277, %280 : vector<1x8x8x16xf32>
    %282 = tpu.concatenate %211, %281 in 3 : vector<1x8x8x16xf32>, vector<1x8x8x16xf32> -> vector<1x8x8x32xf32>
    %283 = vector.extract_strided_slice %7 {offsets = [0, 0, 0, 0], sizes = [1, 8, 8, 16], strides = [1, 1, 1, 1]} : vector<1x9x9x16xbf16> to vector<1x8x8x16xbf16>
    %284 = arith.extf %283 : vector<1x8x8x16xbf16> to vector<1x8x8x16xf32>
    %cst_93 = arith.constant 0.000000e+00 : f32
    %285 = vector.broadcast %cst_93 : f32 to vector<1x8x8x8xf32>
    %cst_94 = arith.constant 0.000000e+00 : f32
    %286 = vector.broadcast %cst_94 : f32 to vector<1x8x8x8xf32>
    %287 = tpu.concatenate %285, %284, %286 in 3 : vector<1x8x8x8xf32>, vector<1x8x8x16xf32>, vector<1x8x8x8xf32> -> vector<1x8x8x32xf32>
    %288 = arith.addf %282, %287 : vector<1x8x8x32xf32>
    %cst_95 = arith.constant 0.000000e+00 : f32
    %289 = vector.broadcast %cst_95 : f32 to vector<1x8x8x32xf32>
    %290 = arith.maximumf %288, %289 : vector<1x8x8x32xf32>
    %291 = arith.truncf %290 : vector<1x8x8x32xf32> to vector<1x8x8x32xbf16>
    %c0_96 = arith.constant 0 : index
    %c0_97 = arith.constant 0 : index
    %c0_98 = arith.constant 0 : index
    %c0_99 = arith.constant 0 : index
    %292 = vector.load %arg10[%c0_96, %c0_97, %c0_98, %c0_99] : memref<1x8x8x32xbf16, #tpu.memory_space<vmem>>, vector<1x8x8x32xbf16>
    tpu.vector_store %arg10[%c0_96, %c0_97, %c0_98, %c0_99], %291 {strides = array<i32>} : memref<1x8x8x32xbf16, #tpu.memory_space<vmem>>, vector<1x8x8x32xbf16>,
    return
  }
  func.func @transform_0(%arg0: i32) -> (i32, i32, i32, i32, i32) {
    %c0_i32 = arith.constant 0 : i32
    %c0_i32_0 = arith.constant 0 : i32
    %c0_i32_1 = arith.constant 0 : i32
    %c0_i32_2 = arith.constant 0 : i32
    %c0_i32_3 = arith.constant 0 : i32
    return %c0_i32, %arg0, %c0_i32_0, %c0_i32_1, %c0_i32_2 : i32, i32, i32, i32, i32
  }
  func.func @transform_1(%arg0: i32) -> (i32, i32, i32) {
    %c0_i32 = arith.constant 0 : i32
    %c0_i32_0 = arith.constant 0 : i32
    %c0_i32_1 = arith.constant 0 : i32
    %c0_i32_2 = arith.constant 0 : i32
    return %c0_i32, %c0_i32_0, %c0_i32_1 : i32, i32, i32
  }
  func.func @transform_2(%arg0: i32) -> (i32, i32) {
    %c0_i32 = arith.constant 0 : i32
    %c0_i32_0 = arith.constant 0 : i32
    %c0_i32_1 = arith.constant 0 : i32
    return %c0_i32, %c0_i32_0 : i32, i32
  }
  func.func @transform_3(%arg0: i32) -> (i32, i32, i32) {
    %c0_i32 = arith.constant 0 : i32
    %c0_i32_0 = arith.constant 0 : i32
    %c0_i32_1 = arith.constant 0 : i32
    %c0_i32_2 = arith.constant 0 : i32
    return %c0_i32, %c0_i32_0, %c0_i32_1 : i32, i32, i32
  }
  func.func @transform_4(%arg0: i32) -> (i32, i32) {
    %c0_i32 = arith.constant 0 : i32
    %c0_i32_0 = arith.constant 0 : i32
    %c0_i32_1 = arith.constant 0 : i32
    return %c0_i32, %c0_i32_0 : i32, i32
  }
  func.func @transform_5(%arg0: i32) -> (i32, i32, i32) {
    %c0_i32 = arith.constant 0 : i32
    %c0_i32_0 = arith.constant 0 : i32
    %c0_i32_1 = arith.constant 0 : i32
    %c0_i32_2 = arith.constant 0 : i32
    return %c0_i32, %c0_i32_0, %c0_i32_1 : i32, i32, i32
  }
  func.func @transform_6(%arg0: i32) -> (i32, i32) {
    %c0_i32 = arith.constant 0 : i32
    %c0_i32_0 = arith.constant 0 : i32
    %c0_i32_1 = arith.constant 0 : i32
    return %c0_i32, %c0_i32_0 : i32, i32
  }
  func.func @transform_7(%arg0: i32) -> (i32, i32, i32) {
    %c0_i32 = arith.constant 0 : i32
    %c0_i32_0 = arith.constant 0 : i32
    %c0_i32_1 = arith.constant 0 : i32
    %c0_i32_2 = arith.constant 0 : i32
    return %c0_i32, %c0_i32_0, %c0_i32_1 : i32, i32, i32
  }
  func.func @transform_8(%arg0: i32) -> (i32, i32) {
    %c0_i32 = arith.constant 0 : i32
    %c0_i32_0 = arith.constant 0 : i32
    %c0_i32_1 = arith.constant 0 : i32
    return %c0_i32, %c0_i32_0 : i32, i32
  }
  func.func @transform_9(%arg0: i32) -> (i32, i32, i32, i32) {
    %c0_i32 = arith.constant 0 : i32
    %c0_i32_0 = arith.constant 0 : i32
    %c0_i32_1 = arith.constant 0 : i32
    %c0_i32_2 = arith.constant 0 : i32
    return %arg0, %c0_i32, %c0_i32_0, %c0_i32_1 : i32, i32, i32, i32
  }
}

</mosaic_0001>

<bundles_post_ra>
// kernel: _lambda_.1
= control target key start
LH: loop header
LB: loop body
LE: loop exit
PB: predicated region body
PF: predicated region fallthrough
CT: control target
= control target key end

     0   :  { %14 = vsyncpa [#allocation6], 0  ;;  %s6434_s0 = inlined_call_operand.vmem [shape: bf16[4,2,9,9,16], index: 0, kind: input, shape index: {}]   ;;  %s6435_s1 = inlined_call_operand.vmem [shape: bf16[9,16,16], index: 1, kind: input, shape index: {}]   ;;  %s6436_s2 = inlined_call_operand.vmem [shape: f32[1,16], index: 2, kind: input, shape index: {}, may-alias: {2,4,6,8}]   ;;  %s6437_s3 = inlined_call_operand.vmem [shape: f32[9,1,16], index: 3, kind: input, shape index: {}]   ;;  %s6438_s4 = inlined_call_operand.vmem [shape: f32[1,16], index: 4, kind: input, shape index: {}, may-alias: {2,4,6,8}]   ;;  %s6439_s5 = inlined_call_operand.vmem [shape: bf16[9,32,16], index: 5, kind: input, shape index: {}]   ;;  %s6440_s6 = inlined_call_operand.vmem [shape: f32[1,16], index: 6, kind: input, shape index: {}, may-alias: {2,4,6,8}]   ;;  %s6441_s7 = inlined_call_operand.vmem [shape: f32[9,1,16], index: 7, kind: input, shape index: {}]   ;;  %s6442_s8 = inlined_call_operand.vmem [shape: f32[1,16], index: 8, kind: input, shape index: {}, may-alias: {2,4,6,8}]   ;;  %s6443_s9 = inlined_call_operand.hbm [shape: bf16[2,8,8,32], index: 9, kind: output, shape index: {}]  }
   0x1   :  { %16 = vsyncpa [#allocation6 + $0x1], 0  ;;  %s4521_s30 = smov 0   ;;  %s4523_s10 = smov 0  }
   0x2   :  { %s4525_s11 = smov 0   ;;  %s4527_s12 = smov 0  }
   0x3 LB: > { %s3991_s13 = sadd.s32 4294967295, %s4463_s12   ;;  %s3992_s14 = sadd.s32 4294967294, %s4463_s12   ;;  %s4463_s12 = sphi %s4527_s12, %s6457_s12   ;;  %s4459_s11 = sphi %s4525_s11, %s6456_s11   ;;  %s4455_s10 = sphi %s4523_s10, %s6455_s10   ;;  %s4451_s30 = sphi %s4521_s30, %s6454_s30  }
   0x4   : > { %s4544_s15 = sadd.s32 1, %s4463_s12   ;;  %s29_s16 = sadd.s32 1, %s4459_s11 }
   0x5   : > { %s26_s17 = ssub.s32 %s4463_s12, %s4544_s15  ;;  %p36_p0 = scmp.ne.s32.totalorder %s4459_s11, %s4455_s10 }
   0x6   : > { %p27_p1 = scmp.eq.s32.totalorder %s26_s17, 0  ;;  %p37_p2 = scmp.eq.s32.totalorder %s4463_s12, 0 }
   0x7   : > { %p234_p3 = scmp.eq.s32.totalorder %s3991_s13, 1  ;;  %p239_p4 = scmp.ne.s32.totalorder %s4455_s10, %s4451_s30 }
   0x8   : > { %s4557_s18 = scalar_select %p27_p1, %s4459_s11, %s29_s16  }
   0x9   : > { %p38_p5 = por %p37_p2, %p36_p0  ;;  %p4559_p6 = por %p234_p3, %p36_p0 }
   0xa   : > { %p240_p7 = scmp.eq.s32.totalorder %s3992_s14, 1  ;;  %p3994_p9 = scmp.ge.s32.totalorder %s4463_s12, 2 }
   0xc   : > { %p4563_p8 = por %p240_p7, %p239_p4  ;;  %280 = sbr.rel (%p3994_p9) target bundleno = 58 (0x3a), region = 48 }
  0x11   : > { %283 = sbr.rel (!%p38_p5) target bundleno = 58 (0x3a), region = 52  ;;  %s285_s21 = sand.u32 (%p38_p5), 1, %s4459_s11  }
  0x12   : > { %s4297_s22 = smul.u32 (%p38_p5), 72, %s4463_s12 }
  0x13   : > { %s4296_s23 = smul.u32 (%p38_p5), 288, %s285_s21 }
  0x14   : > { %s4575_s26 = scalar_lea.vmem (%p38_p5), %s6434_s0, %s4297_s22 }
  0x15   : > { %v307_v0 = vld [vmem:[%s4575_s26] sm:$0xff] (%p38_p5)   ;;  %v311_v1 = vld [vmem:[%s4575_s26 + $0x8] sm:$0xff] (%p38_p5)   ;;  %v315_v2 = vld [vmem:[%s4575_s26 + $0x10] sm:$0xff] (%p38_p5)   ;;  %s4580_s27 = scalar_lea.vmem (%p38_p5), [#allocation4], %s4296_s23 }
  0x16   : > { %308 = vst [vmem:[%s4580_s27] sm:$0xff] %v307_v0   ;;  %v319_v3 = vld [vmem:[%s4575_s26 + $0x18] sm:$0xff]   ;;  %v323_v4 = vld [vmem:[%s4575_s26 + $0x20] sm:$0xff]   ;;  %v327_v5 = vld [vmem:[%s4575_s26 + $0x28] sm:$0xff]  }
  0x17   : > { %312 = vst [vmem:[%s4580_s27 + $0x8] sm:$0xff] %v311_v1   ;;  %v331_v6 = vld [vmem:[%s4575_s26 + $0x30] sm:$0xff]   ;;  %v335_v7 = vld [vmem:[%s4575_s26 + $0x38] sm:$0xff]   ;;  %v339_v8 = vld [vmem:[%s4575_s26 + $0x40] sm:$0xff]  }
  0x18   : > { %316 = vst [vmem:[%s4580_s27 + $0x10] sm:$0xff] %v315_v2   ;;  %v343_v9 = vld [vmem:[%s4575_s26 + $0x90] sm:$0xff]   ;;  %v347_v10 = vld [vmem:[%s4575_s26 + $0x98] sm:$0xff]   ;;  %v351_v11 = vld [vmem:[%s4575_s26 + $0xa0] sm:$0xff]  }
  0x19   : > { %320 = vst [vmem:[%s4580_s27 + $0x18] sm:$0xff] %v319_v3   ;;  %v355_v12 = vld [vmem:[%s4575_s26 + $0xa8] sm:$0xff]   ;;  %v359_v13 = vld [vmem:[%s4575_s26 + $0xb0] sm:$0xff]   ;;  %v363_v14 = vld [vmem:[%s4575_s26 + $0xb8] sm:$0xff]  }
  0x1a   : > { %324 = vst [vmem:[%s4580_s27 + $0x20] sm:$0xff] %v323_v4   ;;  %v367_v15 = vld [vmem:[%s4575_s26 + $0xc0] sm:$0xff]   ;;  %v371_v16 = vld [vmem:[%s4575_s26 + $0xc8] sm:$0xff]   ;;  %v375_v17 = vld [vmem:[%s4575_s26 + $0xd0] sm:$0xff]  }
  0x1b   : > { %328 = vst [vmem:[%s4580_s27 + $0x28] sm:$0xff] %v327_v5   ;;  %v379_v18 = vld [vmem:[%s4575_s26 + $0x120] sm:$0xff]   ;;  %v383_v19 = vld [vmem:[%s4575_s26 + $0x128] sm:$0xff]   ;;  %v387_v20 = vld [vmem:[%s4575_s26 + $0x130] sm:$0xff]  }
  0x1c   : > { %332 = vst [vmem:[%s4580_s27 + $0x30] sm:$0xff] %v331_v6   ;;  %v391_v21 = vld [vmem:[%s4575_s26 + $0x138] sm:$0xff]   ;;  %v395_v22 = vld [vmem:[%s4575_s26 + $0x140] sm:$0xff]   ;;  %v399_v23 = vld [vmem:[%s4575_s26 + $0x148] sm:$0xff]  }
  0x1d   : > { %336 = vst [vmem:[%s4580_s27 + $0x38] sm:$0xff] %v335_v7   ;;  %v403_v24 = vld [vmem:[%s4575_s26 + $0x150] sm:$0xff]   ;;  %v407_v25 = vld [vmem:[%s4575_s26 + $0x158] sm:$0xff]   ;;  %v411_v26 = vld [vmem:[%s4575_s26 + $0x160] sm:$0xff]  }
  0x1e   : > { %340 = vst [vmem:[%s4580_s27 + $0x40] sm:$0xff] %v339_v8   ;;  %v415_v27 = vld [vmem:[%s4575_s26 + $0x1b0] sm:$0xff]   ;;  %v419_v28 = vld [vmem:[%s4575_s26 + $0x1b8] sm:$0xff]   ;;  %v423_v29 = vld [vmem:[%s4575_s26 + $0x1c0] sm:$0xff]  }
  0x1f   : > { %344 = vst [vmem:[%s4580_s27 + $0x48] sm:$0xff] %v343_v9   ;;  %v427_v30 = vld [vmem:[%s4575_s26 + $0x1c8] sm:$0xff]   ;;  %v431_v31 = vld [vmem:[%s4575_s26 + $0x1d0] sm:$0xff]   ;;  %v435_v32 = vld [vmem:[%s4575_s26 + $0x1d8] sm:$0xff]  }
  0x20   : > { %348 = vst [vmem:[%s4580_s27 + $0x50] sm:$0xff] %v347_v10   ;;  %v439_v33 = vld [vmem:[%s4575_s26 + $0x1e0] sm:$0xff]   ;;  %v443_v34 = vld [vmem:[%s4575_s26 + $0x1e8] sm:$0xff]   ;;  %v447_v35 = vld [vmem:[%s4575_s26 + $0x1f0] sm:$0xff]  }
  0x21   : > { %352 = vst [vmem:[%s4580_s27 + $0x58] sm:$0xff] %v351_v11  }
  0x22   : > { %356 = vst [vmem:[%s4580_s27 + $0x60] sm:$0xff] %v355_v12  }
  0x23   : > { %360 = vst [vmem:[%s4580_s27 + $0x68] sm:$0xff] %v359_v13  }
  0x24   : > { %364 = vst [vmem:[%s4580_s27 + $0x70] sm:$0xff] %v363_v14  }
  0x25   : > { %368 = vst [vmem:[%s4580_s27 + $0x78] sm:$0xff] %v367_v15  }
  0x26   : > { %372 = vst [vmem:[%s4580_s27 + $0x80] sm:$0xff] %v371_v16  }
  0x27   : > { %376 = vst [vmem:[%s4580_s27 + $0x88] sm:$0xff] %v375_v17  }
  0x28   : > { %380 = vst [vmem:[%s4580_s27 + $0x90] sm:$0xff] %v379_v18  }
  0x29   : > { %384 = vst [vmem:[%s4580_s27 + $0x98] sm:$0xff] %v383_v19  }
  0x2a   : > { %388 = vst [vmem:[%s4580_s27 + $0xa0] sm:$0xff] %v387_v20  }
  0x2b   : > { %392 = vst [vmem:[%s4580_s27 + $0xa8] sm:$0xff] %v391_v21  }
  0x2c   : > { %396 = vst [vmem:[%s4580_s27 + $0xb0] sm:$0xff] %v395_v22  }
  0x2d   : > { %400 = vst [vmem:[%s4580_s27 + $0xb8] sm:$0xff] %v399_v23  }
  0x2e   : > { %404 = vst [vmem:[%s4580_s27 + $0xc0] sm:$0xff] %v403_v24  }
  0x2f   : > { %408 = vst [vmem:[%s4580_s27 + $0xc8] sm:$0xff] %v407_v25  }
  0x30   : > { %412 = vst [vmem:[%s4580_s27 + $0xd0] sm:$0xff] %v411_v26  }
  0x31   : > { %416 = vst [vmem:[%s4580_s27 + $0xd8] sm:$0xff] %v415_v27  }
  0x32   : > { %420 = vst [vmem:[%s4580_s27 + $0xe0] sm:$0xff] %v419_v28  }
  0x33   : > { %424 = vst [vmem:[%s4580_s27 + $0xe8] sm:$0xff] %v423_v29  }
  0x34   : > { %428 = vst [vmem:[%s4580_s27 + $0xf0] sm:$0xff] %v427_v30  }
  0x35   : > { %432 = vst [vmem:[%s4580_s27 + $0xf8] sm:$0xff] %v431_v31  }
  0x36   : > { %436 = vst [vmem:[%s4580_s27 + $0x100] sm:$0xff] %v435_v32  }
  0x37   : > { %440 = vst [vmem:[%s4580_s27 + $0x108] sm:$0xff] %v439_v33  }
  0x38   : > { %444 = vst [vmem:[%s4580_s27 + $0x110] sm:$0xff] %v443_v34  }
  0x39   : > { %448 = vst [vmem:[%s4580_s27 + $0x118] sm:$0xff] %v447_v35  }
  0x3a PF: > { %p3996_p10 = scmp.ge.s32.totalorder %s4463_s12, 1  ;;  %p617_p11 = scmp.lt.s32.totalorder %s4463_s12, 3 }
  0x3c   : > { %p618_p12 = pnand %p3996_p10, %p617_p11 }
  0x3d   : > { %s4660_s17 = sand.u32 (!%p618_p12), 1, %s4455_s10   ;;  %s4466_s29 = smov (!%p618_p12), 16  }
  0x3e   : > { %621 = sbr.rel (%p618_p12) target bundleno = 998 (0x3e6), region = 93  ;;  %s4468_s21 = smov (!%p618_p12), 8  }
  0x3f   : > { %s4298_s23 = smul.u32 (!%p618_p12), 288, %s4660_s17  ;;  %s4293_s24 = sshll.u32 (!%p618_p12), %s3991_s13, 5 }
  0x40   : > { %s3920_s26 = scalar_lea.hbm (!%p618_p12), %s6443_s9, %s4293_s24  ;;  %s3909_s13 = scalar_lea.sflag (!%p618_p12), [#allocation6], %s4660_s17 }
  0x41   : > { %s4672_s28 = scalar_lea.vmem (!%p618_p12), [#allocation4], %s4298_s23  ;;  %s3997_s23 = sshll.u32 (!%p618_p12), %s4660_s17, 5 }
  0x42   : > { %s4421_s24 = scalar_lea.hbm (!%p618_p12), %s6443_s9, 64 }
  0x43   : > { %v4267_v36 = vld [vmem:[%s6435_s1 + $0x8] sm:$0xff]  ;;  %v4266_v37 = vld [vmem:[%s6435_s1] sm:$0xff]  ;;  %v4268_v38 = vld [vmem:[%s6435_s1 + $0x10] sm:$0xff]  ;;  %vm786_vm0 = vcmask 130048   ;;  %vm964_vm1 = vsmask.f32 3328 }
  0x44   : > { %v4269_v39 = vld [vmem:[%s6435_s1 + $0x18] sm:$0xff]  ;;  %v4270_v40 = vld [vmem:[%s6435_s1 + $0x20] sm:$0xff]  ;;  %4294 = vmatpush.bf16.msra.mxu2 %v4267_v36  ;;  %4295 = vmatpush.bf16.msra.mxu3 %v4266_v37  ;;  %v4681_v43 = vld [vmem:[%s4672_s28 + $0x20] sm:$0xf]  ;;  %vm965_vm2 = vsmask.f32 7440 }
  0x45   : > { %875 = vmatpush.bf16.msra.mxu0 %v4267_v36  ;;  %942 = vmatpush.bf16.msra.mxu1 %v4266_v37  ;;  %v4675_v41 = vld [vmem:[%s4672_s28 + $0x68] sm:$0xf]  ;;  %v4678_v42 = vld [vmem:[%s4672_s28 + $0x70] sm:$0xf]  ;;  %v909_v47 = vunpack.c.l.b16 %v4681_v43  ;;  %v660_v54 = vld [vmem:[%s4672_s28] sm:$0xf] }
  0x46   : > { %v842_v44 = vunpack.c.l.b16 %v4675_v41  ;;  %v843_v45 = vunpack.c.l.b16 %v4678_v42  ;;  %v4686_v46 = vld [vmem:[%s4672_s28 + $0x28] sm:$0xf]  ;;  %v3999_v50 = vld [vmem:[%s4672_s28 + $0x50] sm:$0xf]  ;;  %v905_v58 = vunpack.c.l.b16 %v660_v54  ;;  %v968_v60 = vshrl.u32 %v660_v54, 16  ;;  %v4272_v62 = vld [vmem:[%s6435_s1 + $0x30] sm:$0xff] }
  0x47   : > { %v3998_v48 = vld [vmem:[%s4672_s28 + $0x48] sm:$0xf]  ;;  %v910_v49 = vunpack.c.l.b16 %v4686_v46  ;;  %v839_v53 = vunpack.c.l.b16 %v3999_v50  ;;  %v971_v61 = vshll.u32 %v660_v54, 16  ;;  %v4709_v0 = vld [vmem:[%s4672_s28 + $0x78] sm:$0xf]  ;;  %v4274_v9 = vld [vmem:[%s6435_s1 + $0x40] sm:$0xff] }
  0x48   : > { %1116 = vmatpush.bf16.msrb.mxu2 %v4268_v38  ;;  %1191 = vmatpush.bf16.msrb.mxu3 %v4269_v39  ;;  %v848_v51 = vpack.c.b16 %v843_v45, %v842_v44  ;;  %v838_v52 = vunpack.c.l.b16 %v3998_v48  ;;  %v662_v55 = vld [vmem:[%s4672_s28 + $0x8] sm:$0xf]  ;;  %v970_v2 = vrot.slane %v968_v60, 4  ;;  %v4000_v4 = vld [vmem:[%s4672_s28 + $0x58] sm:$0xf]  ;;  %v844_v15 = vunpack.c.l.b16 %v4709_v0  ;;  %vm4773_vm3 = vmor %vm964_vm1, %vm965_vm2 }
  0x49   : > { %1266 = vmatpush.bf16.msrb.mxu0 %v4270_v40  ;;  %v915_v56 = vpack.c.b16 %v910_v49, %v909_v47  ;;  %v906_v59 = vunpack.c.l.b16 %v662_v55  ;;  %v4273_v1 = vld [vmem:[%s6435_s1 + $0x38] sm:$0xff]  ;;  %v973_v3 = vrot.slane %v971_v61, 5  ;;  %v4271_v5 = vld [vmem:[%s6435_s1 + $0x28] sm:$0xff]  ;;  %v982_v6 = vshrl.u32 %v662_v55, 16  ;;  %v4720_v8 = vld [vmem:[%s4672_s28 + $0x80] sm:$0xf] }
  0x4a   : > { %4037 = vmatmul.msk.bf16.vlgmr.msra.gmra.mxu2 %vm786_vm0, %v848_v51  ;;  %v846_v57 = vpack.c.b16 %v839_v53, %v838_v52  ;;  %v985_v7 = vshll.u32 %v662_v55, 16  ;;  %v664_v10 = vld [vmem:[%s4672_s28 + $0x10] sm:$0xf]  ;;  %1445 = vmatpush.bf16.msrb.mxu1 %v4271_v5  ;;  %v4730_v12 = vld [vmem:[%s4672_s28 + $0x38] sm:$0xf]  ;;  %v840_v13 = vunpack.c.l.b16 %v4000_v4  ;;  %v845_v16 = vunpack.c.l.b16 %v4720_v8 }
  0x4b   : > { %4045 = vmatmul.msk.bf16.vlgmr.msra.gmra.mxu3 %vm786_vm0, %v915_v56  ;;  %v913_v63 = vpack.c.b16 %v906_v59, %v905_v58  ;;  %v4727_v11 = vld [vmem:[%s4672_s28 + $0x30] sm:$0xf]  ;;  %v974_v14 = vor.u32 %v973_v3, %v970_v2  ;;  %v4735_v17 = vld [vmem:[%s4672_s28 + $0x60] sm:$0xf]  ;;  %v984_v18 = vrot.slane %v982_v6, 4  ;;  %v907_v22 = vunpack.c.l.b16 %v664_v10 }
  0x4c   : > { %4035 = vmatmul.msk.bf16.vlgmr.msra.gmra.mxu0 %vm786_vm0, %v846_v57  ;;  %1506 = vmatpush.bf16.msra.mxu2 %v4272_v62  ;;  %v987_v19 = vrot.slane %v985_v7, 5  ;;  %v4737_v20 = vpack.c.b16 %v840_v13, %v839_v53  ;;  %v4740_v21 = vld [vmem:[%s4672_s28 + $0x18] sm:$0xf]  ;;  %v911_v23 = vunpack.c.l.b16 %v4727_v11  ;;  %v912_v24 = vunpack.c.l.b16 %v4730_v12  ;;  %v661_v25 = vld [vmem:[%s4672_s28 + $0x4] sm:$0x1] }
  0x4d   : > { %4043 = vmatmul.msk.bf16.vlgmr.msra.gmra.mxu1 %vm786_vm0, %v913_v63  ;;  %1567 = vmatpush.bf16.msra.mxu3 %v4273_v1  ;;  %v663_v26 = vld [vmem:[%s4672_s28 + $0xc] sm:$0x1]  ;;  %v4007_v27 = vld [vmem:[%s4672_s28 + $0x90] sm:$0xf]  ;;  %v841_v28 = vunpack.c.l.b16 %v4735_v17  ;;  %v4748_v29 = vpack.c.b16 %v907_v22, %v906_v59  ;;  %v4009_v30 = vld [vmem:[%s4672_s28 + $0x98] sm:$0xf]  ;;  %v849_v32 = vpack.c.b16 %v845_v16, %v844_v15  ;;  %v908_v33 = vunpack.c.l.b16 %v4740_v21 }
  0x4e   : > { %1641 = vmatpush.bf16.msra.mxu0 %v4274_v9  ;;  %v975_v31 = vrot.slane %v974_v14, 4  ;;  %v996_v34 = vshrl.u32 %v664_v10, 16  ;;  %v977_v35 = vshll.u32 %v661_v25, 16  ;;  %v991_v36 = vshll.u32 %v663_v26, 16  ;;  %v4008_v37 = vld [vmem:[%s4672_s28 + $0x94] sm:$0x1] }
  0x4f   : > { %v1297_v38 = vshrl.u32 %v4007_v27, 16  ;;  %v988_v39 = vor.u32 %v987_v19, %v984_v18  ;;  %v916_v40 = vpack.c.b16 %v912_v24, %v911_v23  ;;  %v4010_v48 = vld [vmem:[%s4672_s28 + $0x9c] sm:$0x1]  ;;  %v1300_v50 = vshll.u32 %v4007_v27, 16  ;;  %v4011_v19 = vld [vmem:[%s4672_s28 + $0xa0] sm:$0xf] }
  0x50   : > { %v1311_v51 = vshrl.u32 %v4009_v30, 16  ;;  %v847_v52 = vpack.c.b16 %v841_v28, %v840_v13  ;;  %v999_v53 = vshll.u32 %v664_v10, 16  ;;  %v1314_v55 = vshll.u32 %v4009_v30, 16  ;;  %v665_v30 = vld [vmem:[%s4672_s28 + $0x14] sm:$0x1] }
  0x51   : > { %v1299_v54 = vrot.slane %v1297_v38, 4  ;;  %v914_v56 = vpack.c.b16 %v908_v33, %v907_v22  ;;  %v1010_v57 = vshrl.u32 %v4740_v21, 16  ;;  %v1013_v58 = vshll.u32 %v4740_v21, 16  ;;  %v4006_v0 = vld [vmem:[%s4672_s28 + $0x88] sm:$0xf] }
  0x52   : > { %v1302_v59 = vrot.slane %v1300_v50, 5  ;;  %v1306_v60 = vshll.u32 %v4008_v37, 16  ;;  %v1313_v61 = vrot.slane %v1311_v51, 4  ;;  %v1316_v62 = vrot.slane %v1314_v55, 5  ;;  %v4262_v51 = vld [vmem:[%s4672_s28 + $0xdc] sm:$0xf0] }
  0x53   : > { %v1320_v63 = vshll.u32 %v4010_v48, 16  ;;  %v989_v1 = vrot.slane %v988_v39, 4  ;;  %v979_v2 = vrot.slane %v977_v35, 5  ;;  %v993_v3 = vrot.slane %v991_v36, 5  ;;  %v4057_v39 = vld [vmem:[%s4672_s28 + $0x90] sm:$0xf] }
  0x54   : > { %v1303_v4 = vor.u32 %v1302_v59, %v1299_v54  ;;  %v1317_v6 = vor.u32 %v1316_v62, %v1313_v61  ;;  %v998_v7 = vrot.slane %v996_v34, 4  ;;  %v1001_v9 = vrot.slane %v999_v53, 5  ;;  %v4013_v34 = vld [vmem:[%s4672_s28 + $0xa8] sm:$0xf]  ;;  %v4081_v48 = vld [vmem:[%s4672_s28 + $0xd8] sm:$0xf] }
  0x55   : > { %v1012_v10 = vrot.slane %v1010_v57, 4  ;;  %v1015_v13 = vrot.slane %v1013_v58, 5  ;;  %v1308_v14 = vrot.slane %v1306_v60, 5  ;;  %v1322_v18 = vrot.slane %v1320_v63, 5  ;;  %v4012_v58 = vld [vmem:[%s4672_s28 + $0xa4] sm:$0x1] }
  0x56   : > { %v980_v22 = vsel %vm4773_vm3, %v975_v31, %v979_v2  ;;  %v994_v25 = vsel %vm4773_vm3, %v989_v1, %v993_v3  ;;  %v1304_v26 = vrot.slane %v1303_v4, 4  ;;  %v1318_v27 = vrot.slane %v1317_v6, 4  ;;  %v4014_v3 = vld [vmem:[%s4672_s28 + $0xac] sm:$0x1] }
  0x57   : > { %v1325_v35 = vshrl.u32 %v4011_v19, 16  ;;  %v1328_v36 = vshll.u32 %v4011_v19, 16  ;;  %v1079_v37 = vunpack.c.l.b16 %v980_v22  ;;  %v4786_v38 = vunpack.c.l.b16 %v994_v25 }
  0x58   : > { %v1339_v50 = vshrl.u32 %v4013_v34, 16  ;;  %v1342_v31 = vshll.u32 %v4013_v34, 16  ;;  %v1323_v53 = vsel %vm4773_vm3, %v1318_v27, %v1322_v18  ;;  %v1002_v54 = vor.u32 %v1001_v9, %v998_v7 }
  0x59   : > { %v1005_v55 = vshll.u32 %v665_v30, 16  ;;  %v1327_v59 = vrot.slane %v1325_v35, 4  ;;  %v1330_v60 = vrot.slane %v1328_v36, 5  ;;  %v1087_v63 = vpack.c.b16 %v4786_v38, %v1079_v37 }
  0x5a   : > { %4038 = vmatmul.msk.bf16.gmra.mxu2 %vm786_vm0, %v849_v32  ;;  %v667_v32 = vld [vmem:[%s4672_s28 + $0x1c] sm:$0x1]  ;;  %v1341_v61 = vrot.slane %v1339_v50, 4  ;;  %v1344_v62 = vrot.slane %v1342_v31, 5  ;;  %v1409_v2 = vunpack.c.l.b16 %v1323_v53  ;;  %v4082_v6 = vor.u32 %v4262_v51, %v4081_v48  ;;  %v4015_v48 = vld [vmem:[%s4672_s28 + $0xb0] sm:$0xf] }
  0x5b   : > { %4046 = vmatmul.msk.bf16.gmra.mxu3 %vm786_vm0, %v916_v40  ;;  %v4258_v40 = vld [vmem:[%s4672_s28 + $0x94] sm:$0xf0]  ;;  %v1019_v57 = vshll.u32 %v667_v32, 16  ;;  %v1007_v19 = vrot.slane %v1005_v55, 5  ;;  %v1331_v7 = vor.u32 %v1330_v60, %v1327_v59  ;;  %v1334_v9 = vshll.u32 %v4012_v58, 16 }
  0x5c   : > { %4036 = vmatmul.msk.bf16.gmra.mxu0 %vm786_vm0, %v847_v52  ;;  %v1309_v52 = vsel %vm4773_vm3, %v1304_v26, %v1308_v14  ;;  %v4058_v4 = vor.u32 %v4258_v40, %v4057_v39  ;;  %v1003_v14 = vrot.slane %v1002_v54, 4  ;;  %v1024_v26 = vshrl.u32 %v4681_v43, 16  ;;  %v4017_v50 = vld [vmem:[%s4672_s28 + $0xb8] sm:$0xf]  ;;  %v669_v58 = vld [vmem:[%s4672_s28 + $0x24] sm:$0x1] }
  0x5d   : > { %4044 = vmatmul.msk.bf16.gmra.mxu1 %vm786_vm0, %v914_v56  ;;  %v1016_v56 = vor.u32 %v1015_v13, %v1012_v10  ;;  %v1408_v1 = vunpack.c.l.b16 %v1309_v52  ;;  %v1021_v18 = vrot.slane %v1019_v57, 5  ;;  %v1345_v10 = vor.u32 %v1344_v62, %v1341_v61  ;;  %v671_v59 = vld [vmem:[%s4672_s28 + $0x2c] sm:$0x1] }
  0x5e   : > { %v1348_v13 = vshll.u32 %v4014_v3, 16  ;;  %v1027_v27 = vshll.u32 %v4681_v43, 16  ;;  %v1038_v30 = vshrl.u32 %v4686_v46, 16  ;;  %v1041_v32 = vshll.u32 %v4686_v46, 16  ;;  %v4259_v3 = vld [vmem:[%s4672_s28 + $0xa4] sm:$0xf0] }
  0x5f   : > { %v1017_v22 = vrot.slane %v1016_v56, 4  ;;  %v1416_v25 = vpack.c.b16 %v1409_v2, %v1408_v1  ;;  %v1008_v34 = vsel %vm4773_vm3, %v1003_v14, %v1007_v19  ;;  %v1332_v36 = vrot.slane %v1331_v7, 4  ;;  %v4061_v2 = vld [vmem:[%s4672_s28 + $0xa0] sm:$0xf]  ;;  %v4085_v14 = vld [vmem:[%s4672_s28 + $0xe8] sm:$0xf] }
  0x60   : > { %v1336_v37 = vrot.slane %v1334_v9, 5  ;;  %v1346_v39 = vrot.slane %v1345_v10, 4  ;;  %v1350_v40 = vrot.slane %v1348_v13, 5  ;;  %v1026_v31 = vrot.slane %v1024_v26, 4  ;;  %v4263_v19 = vld [vmem:[%s4672_s28 + $0xec] sm:$0xf0] }
  0x61   : > { %v1022_v35 = vsel %vm4773_vm3, %v1017_v22, %v1021_v18  ;;  %v1029_v51 = vrot.slane %v1027_v27, 5  ;;  %v4813_v52 = vunpack.c.l.b16 %v1008_v34  ;;  %v1040_v54 = vrot.slane %v1038_v30, 4  ;;  %v4016_v30 = vld [vmem:[%s4672_s28 + $0xb4] sm:$0x1] }
  0x62   : > { %v4815_v53 = vunpack.c.l.b16 %v1022_v35  ;;  %v1043_v55 = vrot.slane %v1041_v32, 5  ;;  %v1337_v56 = vsel %vm4773_vm3, %v1332_v36, %v1336_v37  ;;  %v1351_v57 = vsel %vm4773_vm3, %v1346_v39, %v1350_v40  ;;  %v4018_v32 = vld [vmem:[%s4672_s28 + $0xbc] sm:$0x1] }
  0x63   : > { %v1353_v60 = vshrl.u32 %v4015_v48, 16  ;;  %v1356_v61 = vshll.u32 %v4015_v48, 16  ;;  %v1367_v62 = vshrl.u32 %v4017_v50, 16  ;;  %v1410_v22 = vunpack.c.l.b16 %v1337_v56 }
  0x64   : > { %v1088_v1 = vpack.c.b16 %v4815_v53, %v4813_v52  ;;  %v1411_v18 = vunpack.c.l.b16 %v1351_v57  ;;  %v1044_v7 = vor.u32 %v1043_v55, %v1040_v54  ;;  %v1047_v9 = vshll.u32 %v671_v59, 16 }
  0x65   : > { %v1355_v10 = vrot.slane %v1353_v60, 4  ;;  %v1358_v13 = vrot.slane %v1356_v61, 5  ;;  %v4062_v27 = vor.u32 %v4259_v3, %v4061_v2  ;;  %v4086_v34 = vor.u32 %v4263_v19, %v4085_v14  ;;  %v4019_v3 = vld [vmem:[%s4672_s28 + $0xc0] sm:$0xf] }
  0x66   : > { %v1417_v36 = vpack.c.b16 %v1411_v18, %v1410_v22  ;;  %v1045_v39 = vrot.slane %v1044_v7, 4  ;;  %v1049_v40 = vrot.slane %v1047_v9, 5  ;;  %v1052_v54 = vshrl.u32 %v4727_v11, 16  ;;  %v4065_v18 = vld [vmem:[%s4672_s28 + $0xb0] sm:$0xf] }
  0x67   : > { %v1359_v48 = vor.u32 %v1358_v13, %v1355_v10  ;;  %v1055_v55 = vshll.u32 %v4727_v11, 16  ;;  %v1066_v56 = vshrl.u32 %v4730_v12, 16  ;;  %v1069_v57 = vshll.u32 %v4730_v12, 16  ;;  %v4260_v7 = vld [vmem:[%s4672_s28 + $0xb4] sm:$0xf0] }
  0x68   : > { %v1050_v59 = vsel %vm4773_vm3, %v1045_v39, %v1049_v40  ;;  %v673_v13 = vld [vmem:[%s4672_s28 + $0x34] sm:$0x1]  ;;  %v1479_v41 = vpack.c.b16 %v911_v23, %v910_v49  ;;  %vm788_vm4 = vcmask 123904   ;;  %vm1774_vm5 = vcmask 1046528  }
  0x69   : > { %v1360_v60 = vrot.slane %v1359_v48, 4  ;;  %v1057_v2 = vrot.slane %v1055_v55, 5  ;;  %v1071_v14 = vrot.slane %v1069_v57, 5  ;;  %v4847_v22 = vunpack.c.l.b16 %v1050_v59  ;;  %v4020_v59 = vld [vmem:[%s4672_s28 + $0xc4] sm:$0x1] }
  0x6a   : > { %4051 = vmatmul.msk.bf16.vlgmr.msrb.gmra.mxu2 %vm786_vm0, %v1087_v63  ;;  %v1370_v63 = vshll.u32 %v4017_v50, 16  ;;  %v1362_v50 = vshll.u32 %v4016_v30, 16  ;;  %v1061_v40 = vshll.u32 %v673_v13, 16  ;;  %vm1850_vm6 = vcmask 1045504  }
  0x6b   : > { %4075 = vmatmul.msk.bf16.vlgmr.msrb.gmra.mxu3 %vm786_vm0, %v4058_v4  ;;  %v1030_v4 = vor.u32 %v1029_v51, %v1026_v31  ;;  %v1376_v51 = vshll.u32 %v4018_v32, 16  ;;  %vm808_vm7 = vcmask 257024   ;;  %vm810_vm8 = vcmask 253952  }
  0x6c   : > { %4099 = vmatmul.msk.bf16.vlgmr.msrb.gmra.mxu0 %vm786_vm0, %v4082_v6  ;;  %v1033_v6 = vshll.u32 %v669_v58, 16  ;;  %v1372_v26 = vrot.slane %v1370_v63, 5  ;;  %v1364_v61 = vrot.slane %v1362_v50, 5  ;;  %vm2379_vm9 = vsmask.f32 7938 }
  0x6d   : > { %4107 = vmatmul.msk.bf16.vlgmr.msrb.gmra.mxu1 %vm786_vm0, %v1416_v25  ;;  %v1369_v25 = vrot.slane %v1367_v62, 4  ;;  %v1031_v35 = vrot.slane %v1030_v4, 4  ;;  %v1378_v63 = vrot.slane %v1376_v51, 5  ;;  %v4021_v4 = vld [vmem:[%s4672_s28 + $0xc8] sm:$0xf]  ;;  %vm5509_vm11 = vmand %vm808_vm7, %vm2379_vm9  ;;  %vm2711_vm13 = vcmask 1042432  }
  0x6e   : > { %v1035_v37 = vrot.slane %v1033_v6, 5  ;;  %v1068_v6 = vrot.slane %v1066_v56, 4  ;;  %v1365_v9 = vsel %vm4773_vm3, %v1360_v60, %v1364_v61  ;;  %v1395_v30 = vshrl.u32 %v4021_v4, 16  ;;  %v4022_v60 = vld [vmem:[%s4672_s28 + $0xcc] sm:$0x1] }
  0x6f   : > { %v1373_v31 = vor.u32 %v1372_v26, %v1369_v25  ;;  %v675_v25 = vld [vmem:[%s4672_s28 + $0x3c] sm:$0x1]  ;;  %v1381_v26 = vshrl.u32 %v4019_v3, 16  ;;  %v1398_v32 = vshll.u32 %v4021_v4, 16  ;;  %v1412_v48 = vunpack.c.l.b16 %v1365_v9 }
  0x70   : > { %v1036_v58 = vsel %vm4773_vm3, %v1031_v35, %v1035_v37  ;;  %v4066_v35 = vor.u32 %v4260_v7, %v4065_v18  ;;  %v4264_v37 = vld [vmem:[%s4672_s28 + $0xfc] sm:$0xf0]  ;;  %v1075_v51 = vshll.u32 %v675_v25, 16  ;;  %v1397_v56 = vrot.slane %v1395_v30, 4 }
  0x71   : > { %v1374_v62 = vrot.slane %v1373_v31, 4  ;;  %v4845_v19 = vunpack.c.l.b16 %v1036_v58  ;;  %v1072_v31 = vor.u32 %v1071_v14, %v1068_v6  ;;  %v1400_v57 = vrot.slane %v1398_v32, 5 }
  0x72   : > { %v1077_v4 = vrot.slane %v1075_v51, 5  ;;  %v1404_v14 = vshll.u32 %v4022_v60, 16  ;;  %vm2385_vm10 = vsmask.f32 256  ;;  %vm2712_vm14 = vcmask 1046532  }
  0x73   : > { %v1379_v10 = vsel %vm4773_vm3, %v1374_v62, %v1378_v63  ;;  %v1063_v63 = vrot.slane %v1061_v40, 5  ;;  %v1401_v6 = vor.u32 %v1400_v57, %v1397_v56  ;;  %v1539_v56 = vpack.c.b16 %v842_v44, %v841_v28  ;;  %v677_v44 = vld [vmem:[%s4672_s28 + $0x44] sm:$0x1]  ;;  %vm5514_vm12 = vmand %vm810_vm8, %vm2385_vm10 }
  0x74   : > { %v1413_v50 = vunpack.c.l.b16 %v1379_v10  ;;  %v1406_v25 = vrot.slane %v1404_v14, 5  ;;  %vm5531_vm15 = vmor %vm2711_vm13, %vm2712_vm14  ;;  %vm2588_vm1 = vcmask 261120   ;;  %vm3858_vm2 = vcmask 64512  }
  0x75   : > { %v1402_v13 = vrot.slane %v1401_v6, 4 }
  0x76   : > { %v1418_v62 = vpack.c.b16 %v1413_v50, %v1412_v48 }
  0x77   : > { %v1407_v32 = vsel %vm4773_vm3, %v1402_v13, %v1406_v25 }
  0x78   : > { %v1415_v48 = vunpack.c.l.b16 %v1407_v32 }
  0x7a   : > { %4052 = vmatmul.msk.bf16.gmra.mxu2 %vm786_vm0, %v1088_v1  ;;  %v1054_v1 = vrot.slane %v1052_v54, 4  ;;  %v1383_v54 = vrot.slane %v1381_v26, 4 }
  0x7b   : > { %4076 = vmatmul.msk.bf16.gmra.mxu3 %vm786_vm0, %v4062_v27  ;;  %v1384_v27 = vshll.u32 %v4019_v3, 16  ;;  %v1073_v3 = vrot.slane %v1072_v31, 4 }
  0x7c   : > { %4100 = vmatmul.msk.bf16.gmra.mxu0 %vm786_vm0, %v4086_v34  ;;  %v1089_v34 = vpack.c.b16 %v4847_v22, %v4845_v19  ;;  %v1058_v39 = vor.u32 %v1057_v2, %v1054_v1  ;;  %v1390_v2 = vshll.u32 %v4020_v59, 16 }
  0x7d   : > { %4108 = vmatmul.msk.bf16.gmra.mxu1 %vm786_vm0, %v1417_v36  ;;  %v4089_v36 = vld [vmem:[%s4672_s28 + $0xf8] sm:$0xf]  ;;  %v1386_v55 = vrot.slane %v1384_v27, 5  ;;  %v1078_v7 = vsel %vm4773_vm3, %v1073_v3, %v1077_v4 }
  0x7e   : > { %v4090_v58 = vor.u32 %v4264_v37, %v4089_v36  ;;  %v1059_v61 = vrot.slane %v1058_v39, 4  ;;  %v1392_v10 = vrot.slane %v1390_v2, 5  ;;  %v4871_v27 = vunpack.c.l.b16 %v1078_v7  ;;  %v4093_v36 = vld [vmem:[%s4672_s28 + $0x108] sm:$0xf]  ;;  %v4265_v37 = vld [vmem:[%s4672_s28 + $0x10c] sm:$0xf0] }
  0x7f   : > { %v1387_v1 = vor.u32 %v1386_v55, %v1383_v54  ;;  %v4094_v31 = vor.u32 %v4265_v37, %v4093_v36  ;;  %v1612_v54 = vpack.c.b16 %v4813_v52, %v4786_v38  ;;  %v1478_v55 = vpack.c.b16 %v909_v47, %v908_v33 }
  0x80   : > { %v1064_v18 = vsel %vm4773_vm3, %v1059_v61, %v1063_v63  ;;  %v1613_v38 = vpack.c.b16 %v4845_v19, %v4815_v53  ;;  %v1540_v47 = vpack.c.b16 %v844_v15, %v843_v45  ;;  %v1607_v53 = vshll.u32 %v677_v44, 16 }
  0x81   : > { %v1388_v9 = vrot.slane %v1387_v1, 4  ;;  %v1085_v26 = vunpack.c.l.b16 %v1064_v18 }
  0x82   : > { %v1609_v11 = vrot.slane %v1607_v53, 5 }
  0x83   : > { %v1393_v30 = vsel %vm4773_vm3, %v1388_v9, %v1392_v10  ;;  %v1090_v39 = vpack.c.b16 %v4871_v27, %v1085_v26  ;;  %v1614_v17 = vpack.c.b16 %v1085_v26, %v4847_v22  ;;  %v1537_v22 = vunpack.c.l.b16 %v4006_v0 }
  0x84   : > { %v1414_v40 = vunpack.c.l.b16 %v1393_v30 }
  0x86   : > { %v1419_v51 = vpack.c.b16 %v1415_v48, %v1414_v40 }
  0x8a   : > { %4053 = vmatmul.msk.bf16.gmra.mxu2 %vm786_vm0, %v1089_v34  ;;  %v4069_v34 = vld [vmem:[%s4672_s28 + $0xc0] sm:$0xf] }
  0x8b   : > { %4077 = vmatmul.msk.bf16.gmra.mxu3 %vm786_vm0, %v4066_v35  ;;  %v4261_v35 = vld [vmem:[%s4672_s28 + $0xc4] sm:$0xf0] }
  0x8c   : > { %4101 = vmatmul.msk.bf16.gmra.mxu0 %vm786_vm0, %v4090_v58  ;;  %v4070_v50 = vor.u32 %v4261_v35, %v4069_v34 }
  0x8d   : > { %4109 = vmatmul.msk.bf16.gmra.mxu1 %vm786_vm0, %v1418_v62  ;;  %v1541_v62 = vpack.c.b16 %v1537_v22, %v845_v16 }
  0x9a   : > { %4054 = vmatmul.msk.bf16.gmra.mxu2 %vm786_vm0, %v1090_v39 }
  0x9b   : > { %4078 = vmatmul.msk.bf16.gmra.mxu3 %vm786_vm0, %v4070_v50  ;;  %v4465_v50 = vmov 0.0  }
  0x9c   : > { %4102 = vmatmul.msk.bf16.gmra.mxu0 %vm786_vm0, %v4094_v31  ;;  %790 = vst.msk [vmem:[#allocation2 + $0x10] sm:$0xff] %vm786_vm0, %v4465_v50 }
  0x9d   : > { %4110 = vmatmul.msk.bf16.gmra.mxu1 %vm786_vm0, %v1419_v51  ;;  %791 = vst.msk [vmem:[#allocation2 + $0x18] sm:$0x3] %vm788_vm4, %v4465_v50 }
  0x9e   : > { %787 = vst.msk [vmem:[#allocation2] sm:$0xff] %vm786_vm0, %v4465_v50 }
  0x9f   : > { %789 = vst.msk [vmem:[#allocation2 + $0x8] sm:$0x3] %vm788_vm4, %v4465_v50 }
  0xa0   : > { %792 = vst.msk [vmem:[#allocation2 + $0x20] sm:$0xff] %vm786_vm0, %v4465_v50 }
  0xa1   : > { %793 = vst.msk [vmem:[#allocation2 + $0x28] sm:$0x3] %vm788_vm4, %v4465_v50 }
  0xa2   : > { %794 = vst.msk [vmem:[#allocation2 + $0x30] sm:$0xff] %vm786_vm0, %v4465_v50 }
  0xa3   : > { %795 = vst.msk [vmem:[#allocation2 + $0x38] sm:$0x3] %vm788_vm4, %v4465_v50 }
  0xa4   : > { %796 = vst.msk [vmem:[#allocation2 + $0x40] sm:$0xff] %vm786_vm0, %v4465_v50 }
  0xa5   : > { %797 = vst.msk [vmem:[#allocation2 + $0x48] sm:$0x3] %vm788_vm4, %v4465_v50  ;;  %v1700_v0 = vld [vmem:[#allocation2] sm:$0xff] }
  0xa6   : > { %798 = vst.msk [vmem:[#allocation2 + $0x50] sm:$0xff] %vm786_vm0, %v4465_v50 }
  0xa7   : > { %799 = vst.msk [vmem:[#allocation2 + $0x58] sm:$0x3] %vm788_vm4, %v4465_v50 }
  0xa8   : > { %800 = vst.msk [vmem:[#allocation2 + $0x60] sm:$0xff] %vm786_vm0, %v4465_v50 }
  0xa9   : > { %801 = vst.msk [vmem:[#allocation2 + $0x68] sm:$0x3] %vm788_vm4, %v4465_v50 }
  0xaa   : > { %4115 = vmatmul.msk.bf16.vlgmr.msra.gmra.mxu2 %vm786_vm0, %v4748_v29  ;;  %802 = vst.msk [vmem:[#allocation2 + $0x70] sm:$0xff] %vm786_vm0, %v4465_v50 }
  0xab   : > { %4123 = vmatmul.msk.bf16.vlgmr.msra.gmra.mxu3 %vm786_vm0, %v4737_v20  ;;  %v676_v20 = vld [vmem:[%s4672_s28 + $0x40] sm:$0xf]  ;;  %803 = vst.msk [vmem:[#allocation2 + $0x78] sm:$0x3] %vm788_vm4, %v4465_v50 }
  0xac   : > { %4131 = vmatmul.msk.bf16.vlgmr.msra.gmra.mxu0 %vm786_vm0, %v1612_v54  ;;  %v1598_v29 = vshrl.u32 %v676_v20, 16  ;;  %v1601_v21 = vshll.u32 %v676_v20, 16  ;;  %v1476_v19 = vunpack.c.l.b16 %v676_v20  ;;  %804 = vst.msk [vmem:[#allocation2 + $0x80] sm:$0xff] %vm786_vm0, %v4465_v50 }
  0xad   : > { %805 = vst.msk [vmem:[#allocation2 + $0x88] sm:$0x3] %vm788_vm4, %v4465_v50 }
  0xae   : > { %v1600_v52 = vrot.slane %v1598_v29, 4  ;;  %v1603_v43 = vrot.slane %v1601_v21, 5  ;;  %v1480_v61 = vpack.c.b16 %v1476_v19, %v912_v24  ;;  %806 = vst.msk [vmem:[#allocation2 + $0x90] sm:$0xff] %vm786_vm0, %v4465_v50 }
  0xaf   : > { %807 = vst.msk [vmem:[#allocation2 + $0x98] sm:$0x3] %vm788_vm4, %v4465_v50 }
  0xb0   : > { %v1604_v33 = vor.u32 %v1603_v43, %v1600_v52 }
  0xb2   : > { %v1605_v49 = vrot.slane %v1604_v33, 4 }
  0xb4   : > { %v1610_v15 = vsel %vm4773_vm3, %v1605_v49, %v1609_v11  ;;  %v5020_v49 = vld [vmem:[%s6437_s3 + $0x1] ss:$0 sm:$0xff] }
  0xb5   : > { %v1611_v57 = vunpack.c.l.b16 %v1610_v15  ;;  %v1701_v15 = vld [vmem:[#allocation2 + $0x8] sm:$0x3] }
  0xb7   : > { %v1615_v63 = vpack.c.b16 %v1611_v57, %v4871_v27 }
  0xba   : > { %4116 = vmatmul.msk.bf16.gmra.mxu2 %vm786_vm0, %v1478_v55 }
  0xbb   : > { %4124 = vmatmul.msk.bf16.gmra.mxu3 %vm786_vm0, %v1539_v56 }
  0xbc   : > { %4132 = vmatmul.msk.bf16.gmra.mxu0 %vm786_vm0, %v1613_v38 }
  0xc9   : > { %v4917_v28 = vpop.f32.mrf.mxu0 }
  0xca   : > { %4117 = vmatmul.msk.bf16.gmra.mxu2 %vm786_vm0, %v1479_v41  ;;  %v944_v59 = vpop.f32.mrf.mxu1 }
  0xcb   : > { %4125 = vmatmul.msk.bf16.gmra.mxu3 %vm786_vm0, %v1540_v47  ;;  %v945_v29 = vadd.f32 %v944_v59, %v4917_v28 }
  0xcc   : > { %4133 = vmatmul.msk.bf16.gmra.mxu0 %vm786_vm0, %v1614_v17 }
  0xcd   : > { %v887_v46 = vpop.f32.mrf.mxu2 }
  0xce   : > { %v954_v23 = vpop.f32.mrf.mxu3 }
  0xcf   : > { %v4922_v42 = vadd.f32 %v954_v23, %v887_v46 }
  0xd1   : > { %v4925_v45 = vpop.f32.mrf.mxu0 }
  0xd2   : > { %v946_v6 = vpop.f32.mrf.mxu1 }
  0xd3   : > { %v947_v17 = vadd.f32 %v946_v6, %v4925_v45 }
  0xd5   : > { %v4929_v58 = vpop.f32.mrf.mxu2 }
  0xd6   : > { %v4931_v60 = vpop.f32.mrf.mxu3 }
  0xd9   : > { %v4938_v3 = vpop.f32.mrf.mxu0 }
  0xda   : > { %4118 = vmatmul.msk.bf16.gmra.mxu2 %vm786_vm0, %v1480_v61  ;;  %v4951_v14 = vpop.f32.mrf.mxu1 }
  0xdb   : > { %4126 = vmatmul.msk.bf16.gmra.mxu3 %vm786_vm0, %v1541_v62  ;;  %v950_v22 = vadd.f32 %v4951_v14, %v4938_v3  ;;  %v1742_v62 = vmul.f32 %v5020_v49, %v1700_v0 }
  0xdc   : > { %4134 = vmatmul.msk.bf16.gmra.mxu0 %vm786_vm0, %v1615_v63  ;;  %v1743_v63 = vmul.f32 %v5020_v49, %v1701_v15 }
  0xdd   : > { %v892_v4 = vpop.f32.mrf.mxu2 }
  0xde   : > { %v959_v1 = vpop.f32.mrf.mxu3 }
  0xdf   : > { %v4943_v2 = vadd.f32 %v959_v1, %v892_v4  ;;  %v5033_v4 = vld [vmem:[%s6437_s3 + $0x2] ss:$0 sm:$0xff]  ;;  %v957_v1 = vadd.f32 %v4931_v60, %v4929_v58  ;;  %v5050_v58 = vld [vmem:[%s6437_s3] ss:$0 sm:$0xff]  ;;  %v1775_v60 = vrot.slane %v1742_v62, 1 }
  0xe1   : > { %v4945_v12 = vpop.f32.mrf.mxu0 }
  0xe2   : > { %v4955_v10 = vpop.f32.mrf.mxu1 }
  0xe3   : > { %v952_v61 = vadd.f32 %v4955_v10, %v4945_v12  ;;  %v5042_v12 = vld [vmem:[%s6436_s2] ss:$0 sm:$0xff] }
  0xe5   : > { %v4947_v24 = vpop.f32.mrf.mxu2 }
  0xe6   : > { %v4949_v8 = vpop.f32.mrf.mxu3 }
  0xe9   : > { %v1268_v16 = vpop.f32.mrf.mxu0 }
  0xea   : > { %v1447_v27 = vpop.f32.mrf.mxu1 }
  0xed   : > { %v1118_v18 = vpop.f32.mrf.mxu2 }
  0xee   : > { %v1193_v7 = vpop.f32.mrf.mxu3  ;;  %v1138_v52 = vadd.f32 %v1118_v18, %v945_v29 }
  0xf0   : > { %v1213_v41 = vadd.f32 %v1193_v7, %v1138_v52 }
  0xf1   : > { %v4953_v9 = vpop.f32.mrf.mxu0 }
  0xf2   : > { %v4967_v36 = vpop.f32.mrf.mxu1  ;;  %v1288_v33 = vadd.f32 %v1268_v16, %v1213_v41 }
  0xf4   : > { %v1467_v11 = vadd.f32 %v1447_v27, %v1288_v33  ;;  %v1819_v27 = vmul.f32 %v5033_v4, %v1701_v15 }
  0xf5   : > { %v1120_v13 = vpop.f32.mrf.mxu2 }
  0xf6   : > { %v1195_v25 = vpop.f32.mrf.mxu3  ;;  %v1139_v53 = vadd.f32 %v1120_v13, %v947_v17 }
  0xf8   : > { %v1214_v23 = vadd.f32 %v1195_v25, %v1139_v53  ;;  %v1818_v25 = vmul.f32 %v5033_v4, %v1700_v0 }
  0xf9   : > { %v4957_v26 = vpop.f32.mrf.mxu0 }
  0xfa   : > { %v4978_v31 = vpop.f32.mrf.mxu1  ;;  %v1289_v3 = vadd.f32 %v4953_v9, %v1214_v23  ;;  %v1776_v9 = vrot.slane %v1743_v63, 1 }
  0xfc   : > { %v1777_v53 = vsel %vm1774_vm5, %v1775_v60, %v1776_v9 }
  0xfd   : > { %v4959_v30 = vpop.f32.mrf.mxu2 }
  0xfe   : > { %v4961_v32 = vpop.f32.mrf.mxu3  ;;  %v1140_v6 = vadd.f32 %v4959_v30, %v950_v22  ;;  %v1468_v30 = vadd.f32 %v4967_v36, %v1289_v3 }
 0x101   : > { %v4963_v34 = vpop.f32.mrf.mxu0 }
 0x102   : > { %v4996_v38 = vpop.f32.mrf.mxu1 }
 0x105   : > { %v4965_v35 = vpop.f32.mrf.mxu2 }
 0x106   : > { %v4969_v37 = vpop.f32.mrf.mxu3  ;;  %v1141_v14 = vadd.f32 %v4965_v35, %v952_v61  ;;  %v1215_v35 = vadd.f32 %v4961_v32, %v1140_v6  ;;  %v1723_v32 = vmul.f32 %v5050_v58, %v1700_v0 }
 0x108   : > { %v1216_v50 = vadd.f32 %v4969_v37, %v1141_v14  ;;  %v1807_v15 = vadd.f32 %v1777_v53, %v1723_v32 }
 0x109   : > { %v4971_v39 = vpop.f32.mrf.mxu0 }
 0x10a   : > { %v5012_v44 = vpop.f32.mrf.mxu1  ;;  %v1291_v23 = vadd.f32 %v4963_v34, %v1216_v50  ;;  %v5089_v34 = vld [vmem:[%s6437_s3 + $0x4] ss:$0 sm:$0xff] }
 0x10c   : > { %v1470_v63 = vadd.f32 %v4996_v38, %v1291_v23 }
 0x10d   : > { %v4973_v40 = vpop.f32.mrf.mxu2 }
 0x10e   : > { %v4975_v48 = vpop.f32.mrf.mxu3  ;;  %v1142_v18 = vadd.f32 %v4973_v40, %v4922_v42  ;;  %v962_v40 = vadd.f32 %v4949_v8, %v4947_v24  ;;  %v1290_v24 = vadd.f32 %v4957_v26, %v1215_v35 }
 0x110   : > { %v1469_v22 = vadd.f32 %v4978_v31, %v1290_v24  ;;  %v5095_v31 = vld [vmem:[%s6437_s3 + $0x5] ss:$0 sm:$0xff]  ;;  %v5140_v24 = vld [vmem:[%s6437_s3 + $0x8] ss:$0 sm:$0xff] }
 0x111   : > { %v4981_v51 = vpop.f32.mrf.mxu0 }
 0x112   : > { %v5024_v57 = vpop.f32.mrf.mxu1 }
 0x115   : > { %v1130_v54 = vpop.f32.mrf.mxu2 }
 0x116   : > { %v4988_v55 = vpop.f32.mrf.mxu3  ;;  %v1143_v10 = vadd.f32 %v1130_v54, %v957_v1  ;;  %v1217_v54 = vadd.f32 %v4975_v48, %v1142_v18 }
 0x118   : > { %v1218_v52 = vadd.f32 %v4988_v55, %v1143_v10 }
 0x119   : > { %v4993_v56 = vpop.f32.mrf.mxu0 }
 0x11a   : > { %v1462_v8 = vpop.f32.mrf.mxu1 }
 0x11d   : > { %v1133_v20 = vpop.f32.mrf.mxu2 }
 0x11e   : > { %v5003_v21 = vpop.f32.mrf.mxu3  ;;  %v1144_v33 = vadd.f32 %v1133_v20, %v4943_v2  ;;  %v1292_v2 = vadd.f32 %v4971_v39, %v1217_v54  ;;  %v1293_v20 = vadd.f32 %v4981_v51, %v1218_v52  ;;  %v5124_v52 = vld [vmem:[%s6437_s3 + $0x6] ss:$0 sm:$0xff] }
 0x120   : > { %v5100_v1 = vadd.f32 %v5012_v44, %v1292_v2  ;;  %v5103_v3 = vadd.f32 %v5024_v57, %v1293_v20 }
 0x121   : > { %v5008_v43 = vpop.f32.mrf.mxu0 }
 0x122   : > { %v1464_v60 = vpop.f32.mrf.mxu1 }
 0x125   : > { %v1135_v47 = vpop.f32.mrf.mxu2 }
 0x126   : > { %v5015_v28 = vpop.f32.mrf.mxu3  ;;  %v1145_v48 = vadd.f32 %v1135_v47, %v962_v40  ;;  %v5084_v47 = vld [vmem:[%s6437_s3 + $0x3] ss:$0 sm:$0xff] }
 0x128   : > { %v1220_v39 = vadd.f32 %v5015_v28, %v1145_v48 }
 0x129   : > { %v1643_v46 = vpop.f32.mrf.mxu0 }
 0x12a   : > { %v1295_v44 = vadd.f32 %v5008_v43, %v1220_v39 }
 0x12c   : > { %v5135_v53 = vadd.f32 %v1464_v60, %v1295_v44 }
 0x12d   : > { %v1508_v19 = vpop.f32.mrf.mxu2 }
 0x12e   : > { %v1528_v45 = vadd.f32 %v1508_v19, %v1467_v11  ;;  %v1569_v59 = vpop.f32.mrf.mxu3  ;;  %v1852_v11 = vrot.slane %v1819_v27, 2  ;;  %v1219_v19 = vadd.f32 %v5003_v21, %v1144_v33 }
 0x130   : > { %v1589_v16 = vadd.f32 %v1569_v59, %v1528_v45  ;;  %v1294_v28 = vadd.f32 %v4993_v56, %v1219_v19 }
 0x131   : > { %v1645_v7 = vpop.f32.mrf.mxu0 }
 0x132   : > { %v1663_v13 = vadd.f32 %v1643_v46, %v1589_v16  ;;  %v1851_v46 = vrot.slane %v1818_v25, 2  ;;  %v5133_v33 = vadd.f32 %v1462_v8, %v1294_v28 }
 0x134   : > { %v5057_v42 = vadd.f32 %v5042_v12, %v1663_v13  ;;  %v1853_v26 = vsel %vm1850_vm6, %v1851_v46, %v1852_v11 }
 0x135   : > { %v1510_v29 = vpop.f32.mrf.mxu2  ;;  %v1883_v62 = vadd.f32 %v1853_v26, %v1807_v15 }
 0x136   : > { %v1683_v41 = vmax.f32 %v5057_v42, 0.0  ;;  %v1529_v17 = vadd.f32 %v1510_v29, %v1468_v30  ;;  %v1571_v36 = vpop.f32.mrf.mxu3 }
 0x138   : > { %1692 = vst.msk [vmem:[#allocation2 + $0x11] sm:$0xff] %vm786_vm0, %v1683_v41  ;;  %v1590_v37 = vadd.f32 %v1571_v36, %v1529_v17  ;;  %v5129_v17 = vld [vmem:[%s6437_s3 + $0x7] ss:$0 sm:$0xff] }
 0x139   : > { %v1648_v55 = vpop.f32.mrf.mxu0 }
 0x13a   : > { %v1664_v0 = vadd.f32 %v1645_v7, %v1590_v37 }
 0x13c   : > { %v5079_v45 = vadd.f32 %v5042_v12, %v1664_v0 }
 0x13d   : > { %v1513_v51 = vpop.f32.mrf.mxu2 }
 0x13e   : > { %v1684_v21 = vmax.f32 %v5079_v45, 0.0  ;;  %v1530_v59 = vadd.f32 %v1513_v51, %v1469_v22  ;;  %v1574_v61 = vpop.f32.mrf.mxu3 }
 0x13f   : > { %v1702_v6 = vld [vmem:[#allocation2 + $0x10] sm:$0xff]  ;;  %v1703_v16 = vld [vmem:[#allocation2 + $0x18] sm:$0x3] }
 0x140   : > { %1693 = vst.msk [vmem:[#allocation2 + $0x21] sm:$0xff] %vm786_vm0, %v1684_v21  ;;  %v1591_v14 = vadd.f32 %v1574_v61, %v1530_v59  ;;  %v1894_v18 = vmul.f32 %v5084_v47, %v1702_v6  ;;  %v1913_v7 = vmul.f32 %v5089_v34, %v1702_v6  ;;  %v1914_v38 = vmul.f32 %v5089_v34, %v1703_v16 }
 0x141   : > { %v1650_v10 = vpop.f32.mrf.mxu0  ;;  %v1988_v57 = vmul.f32 %v5095_v31, %v1702_v6  ;;  %v1989_v56 = vmul.f32 %v5095_v31, %v1703_v16  ;;  %v1744_v13 = vmul.f32 %v5020_v49, %v1702_v6  ;;  %v1745_v50 = vmul.f32 %v5020_v49, %v1703_v16 }
 0x142   : > { %v1665_v9 = vadd.f32 %v1648_v55, %v1591_v14  ;;  %v1902_v25 = vadd.f32 %v1894_v18, %v1883_v62  ;;  %v1945_v27 = vrot.slane %v1913_v7, 1  ;;  %v1946_v30 = vrot.slane %v1914_v38, 1 }
 0x143   : > { %v2020_v35 = vrot.slane %v1988_v57, 2  ;;  %v2021_v40 = vrot.slane %v1989_v56, 2  ;;  %v1778_v54 = vrot.slane %v1744_v13, 1  ;;  %v1820_v36 = vmul.f32 %v5033_v4, %v1702_v6 }
 0x144   : > { %v5118_v29 = vadd.f32 %v5042_v12, %v1665_v9  ;;  %v1947_v43 = vsel %vm1774_vm5, %v1945_v27, %v1946_v30  ;;  %v1821_v32 = vmul.f32 %v5033_v4, %v1703_v16  ;;  %v1779_v37 = vrot.slane %v1745_v50, 1 }
 0x145   : > { %v1515_v46 = vpop.f32.mrf.mxu2  ;;  %v1977_v11 = vadd.f32 %v1947_v43, %v1902_v25  ;;  %v2022_v0 = vsel %vm1850_vm6, %v2020_v35, %v2021_v40  ;;  %v1724_v15 = vmul.f32 %v5050_v58, %v1702_v6  ;;  %v1854_v26 = vrot.slane %v1820_v36, 2  ;;  %v5179_v40 = vld [vmem:[%s6438_s4] ss:$0 sm:$0xff] }
 0x146   : > { %v1685_v48 = vmax.f32 %v5118_v29, 0.0  ;;  %v1531_v55 = vadd.f32 %v1515_v46, %v1470_v63  ;;  %v1576_v23 = vpop.f32.mrf.mxu3  ;;  %v1780_v19 = vsel %vm1774_vm5, %v1778_v54, %v1779_v37  ;;  %v1855_v22 = vrot.slane %v1821_v32, 2 }
 0x147   : > { %v5145_v8 = vld [vmem:[#allocation2 + $0x20] sm:$0xff]  ;;  %v5147_v2 = vld [vmem:[#allocation2 + $0x28] sm:$0x3]  ;;  %v2052_v20 = vadd.f32 %v2022_v0, %v1977_v11  ;;  %v1808_v25 = vadd.f32 %v1780_v19, %v1724_v15 }
 0x148   : > { %1694 = vst.msk [vmem:[#allocation2 + $0x31] sm:$0xff] %vm786_vm0, %v1685_v48  ;;  %v1592_v39 = vadd.f32 %v1576_v23, %v1531_v55  ;;  %v2063_v51 = vmul.f32 %v5124_v52, %v5145_v8  ;;  %v2082_v59 = vmul.f32 %v5129_v17, %v5145_v8  ;;  %v2083_v61 = vmul.f32 %v5129_v17, %v5147_v2 }
 0x149   : > { %v2157_v62 = vmul.f32 %v5140_v24, %v5145_v8  ;;  %v2158_v63 = vmul.f32 %v5140_v24, %v5147_v2  ;;  %v1725_v28 = vmul.f32 %v5050_v58, %v5145_v8  ;;  %v1746_v6 = vmul.f32 %v5020_v49, %v5145_v8  ;;  %v1653_v38 = vpop.f32.mrf.mxu0 }
 0x14a   : > { %v1666_v16 = vadd.f32 %v1650_v10, %v1592_v39  ;;  %v2071_v14 = vadd.f32 %v2063_v51, %v2052_v20  ;;  %v2114_v18 = vrot.slane %v2082_v59, 1  ;;  %v2115_v7 = vrot.slane %v2083_v61, 1 }
 0x14b   : > { %v2189_v44 = vrot.slane %v2157_v62, 2  ;;  %v2190_v57 = vrot.slane %v2158_v63, 2  ;;  %v1747_v56 = vmul.f32 %v5020_v49, %v5147_v2  ;;  %v1781_v13 = vrot.slane %v1746_v6, 1 }
 0x14c   : > { %v5170_v60 = vadd.f32 %v5042_v12, %v1666_v16  ;;  %v2116_v9 = vsel %vm1774_vm5, %v2114_v18, %v2115_v7  ;;  %v1822_v27 = vmul.f32 %v5033_v4, %v5145_v8  ;;  %v1823_v54 = vmul.f32 %v5033_v4, %v5147_v2 }
 0x14d   : > { %v1518_v10 = vpop.f32.mrf.mxu2  ;;  %v2146_v30 = vadd.f32 %v2116_v9, %v2071_v14  ;;  %v2191_v35 = vsel %vm1850_vm6, %v2189_v44, %v2190_v57  ;;  %v1782_v50 = vrot.slane %v1747_v56, 1  ;;  %v1856_v46 = vsel %vm1850_vm6, %v1854_v26, %v1855_v22 }
 0x14e   : > { %v1686_v43 = vmax.f32 %v5170_v60, 0.0  ;;  %v1532_v36 = vadd.f32 %v1518_v10, %v5100_v1  ;;  %v1579_v32 = vpop.f32.mrf.mxu3  ;;  %v1857_v11 = vrot.slane %v1822_v27, 2  ;;  %v1858_v0 = vrot.slane %v1823_v54, 2 }
 0x14f   : > { %v2221_v37 = vadd.f32 %v2191_v35, %v2146_v30  ;;  %v5186_v55 = vld [vmem:[#allocation2 + $0x30] sm:$0xff]  ;;  %v1783_v23 = vsel %vm1774_vm5, %v1781_v13, %v1782_v50  ;;  %v1884_v15 = vadd.f32 %v1856_v46, %v1808_v25  ;;  %v5192_v19 = vld [vmem:[#allocation2 + $0x38] sm:$0x3]  ;;  %v1895_v1 = vmul.f32 %v5084_v47, %v5145_v8 }
 0x150   : > { %1695 = vst.msk [vmem:[#allocation2 + $0x41] sm:$0xff] %vm786_vm0, %v1686_v43  ;;  %v1593_v20 = vadd.f32 %v1579_v32, %v1532_v36  ;;  %v1809_v39 = vadd.f32 %v1783_v23, %v1725_v28  ;;  %v1896_v26 = vmul.f32 %v5084_v47, %v5186_v55  ;;  %v1859_v51 = vsel %vm1850_vm6, %v1857_v11, %v1858_v0 }
 0x151   : > { %v2233_v22 = vadd.f32 %v5179_v40, %v2221_v37  ;;  %v1915_v59 = vmul.f32 %v5089_v34, %v5145_v8  ;;  %v1916_v61 = vmul.f32 %v5089_v34, %v5147_v2  ;;  %v1903_v6 = vadd.f32 %v1895_v1, %v1884_v15 }
 0x152   : > { %v1667_v62 = vadd.f32 %v1653_v38, %v1593_v20  ;;  %v1885_v63 = vadd.f32 %v1859_v51, %v1809_v39  ;;  %v1917_v28 = vmul.f32 %v5089_v34, %v5186_v55  ;;  %v1918_v14 = vmul.f32 %v5089_v34, %v5192_v19  ;;  %v1655_v38 = vpop.f32.mrf.mxu0 }
 0x153   : > { %v2241_v16 = vmax.f32 %v2233_v22, 0.0  ;;  %v1948_v18 = vrot.slane %v1915_v59, 1  ;;  %v1949_v7 = vrot.slane %v1916_v61, 1  ;;  %v1990_v13 = vmul.f32 %v5095_v31, %v5145_v8 }
 0x154   : > { %v5209_v44 = vadd.f32 %v5042_v12, %v1667_v62  ;;  %v1904_v57 = vadd.f32 %v1896_v26, %v1885_v63  ;;  %v1951_v56 = vrot.slane %v1917_v28, 1  ;;  %v1952_v27 = vrot.slane %v1918_v14, 1 }
 0x155   : > { %v1520_v9 = vpop.f32.mrf.mxu2  ;;  %2257 = vrot.lane.b32.xlu0 %v2241_v16, %s4466_s29  ;;  %v1950_v25 = vsel %vm1774_vm5, %v1948_v18, %v1949_v7  ;;  %v1991_v10 = vmul.f32 %v5095_v31, %v5147_v2  ;;  %v1992_v30 = vmul.f32 %v5095_v31, %v5186_v55  ;;  %v1993_v36 = vmul.f32 %v5095_v31, %v5192_v19 }
 0x156   : > { %v1687_v35 = vmax.f32 %v5209_v44, 0.0  ;;  %v1533_v50 = vadd.f32 %v1520_v9, %v5103_v3  ;;  %v1581_v54 = vpop.f32.mrf.mxu3  ;;  %v1978_v8 = vadd.f32 %v1950_v25, %v1903_v6  ;;  %v1953_v46 = vsel %vm1774_vm5, %v1951_v56, %v1952_v27 }
 0x157   : > { %v5223_v32 = vld [vmem:[#allocation2 + $0x40] sm:$0xff]  ;;  %v2023_v11 = vrot.slane %v1990_v13, 2  ;;  %v2024_v37 = vrot.slane %v1991_v10, 2  ;;  %v2026_v23 = vrot.slane %v1992_v30, 2  ;;  %v5229_v0 = vld [vmem:[#allocation2 + $0x48] sm:$0x3]  ;;  %v1979_v3 = vadd.f32 %v1953_v46, %v1904_v57 }
 0x158   : > { %1696 = vst.msk [vmem:[#allocation2 + $0x51] sm:$0xff] %vm786_vm0, %v1687_v35  ;;  %v1594_v2 = vadd.f32 %v1581_v54, %v1533_v50  ;;  %v2027_v15 = vrot.slane %v1993_v36, 2  ;;  %v2064_v20 = vmul.f32 %v5124_v52, %v5186_v55  ;;  %v2065_v1 = vmul.f32 %v5124_v52, %v5223_v32 }
 0x159   : > { %v2025_v39 = vsel %vm1850_vm6, %v2023_v11, %v2024_v37  ;;  %v2084_v26 = vmul.f32 %v5129_v17, %v5186_v55  ;;  %v2085_v22 = vmul.f32 %v5129_v17, %v5192_v19  ;;  %v2086_v62 = vmul.f32 %v5129_v17, %v5223_v32 }
 0x15a   : > { %v1668_v51 = vadd.f32 %v1655_v38, %v1594_v2  ;;  %v2028_v59 = vsel %vm1850_vm6, %v2026_v23, %v2027_v15  ;;  %v2053_v61 = vadd.f32 %v2025_v39, %v1978_v8  ;;  %v2087_v6 = vmul.f32 %v5129_v17, %v5229_v0  ;;  %v1658_v8 = vpop.f32.mrf.mxu0 }
 0x15b   : > { %v2054_v63 = vadd.f32 %v2028_v59, %v1979_v3  ;;  %v2117_v28 = vrot.slane %v2084_v26, 1  ;;  %v2118_v16 = vrot.slane %v2085_v22, 1  ;;  %v2120_v7 = vrot.slane %v2086_v62, 1 }
 0x15c   : > { %v5246_v14 = vadd.f32 %v5042_v12, %v1668_v51  ;;  %v2072_v18 = vadd.f32 %v2064_v20, %v2053_v61  ;;  %v2159_v57 = vmul.f32 %v5140_v24, %v5186_v55  ;;  %v2121_v9 = vrot.slane %v2087_v6, 1 }
 0x15d   : > { %v1523_v56 = vpop.f32.mrf.mxu2  ;;  %v2073_v13 = vadd.f32 %v2065_v1, %v2054_v63  ;;  %v2119_v38 = vsel %vm1774_vm5, %v2117_v28, %v2118_v16  ;;  %v2160_v25 = vmul.f32 %v5140_v24, %v5192_v19  ;;  %v2161_v54 = vmul.f32 %v5140_v24, %v5223_v32 }
 0x15e   : > { %v1688_v27 = vmax.f32 %v5246_v14, 0.0  ;;  %v1534_v10 = vadd.f32 %v1523_v56, %v5133_v33  ;;  %v1584_v30 = vpop.f32.mrf.mxu3  ;;  %v2147_v50 = vadd.f32 %v2119_v38, %v2072_v18  ;;  %v2122_v36 = vsel %vm1774_vm5, %v2120_v7, %v2121_v9 }
 0x15f   : > { %v2162_v46 = vmul.f32 %v5140_v24, %v5229_v0  ;;  %v2192_v11 = vrot.slane %v2159_v57, 2  ;;  %v2193_v37 = vrot.slane %v2160_v25, 2  ;;  %v2148_v2 = vadd.f32 %v2122_v36, %v2073_v13 }
 0x160   : > { %1697 = vst.msk [vmem:[#allocation2 + $0x61] sm:$0xff] %vm786_vm0, %v1688_v27  ;;  %v1595_v23 = vadd.f32 %v1584_v30, %v1534_v10  ;;  %v2195_v33 = vrot.slane %v2161_v54, 2  ;;  %v1726_v3 = vmul.f32 %v5050_v58, %v5186_v55  ;;  %v1727_v39 = vmul.f32 %v5050_v58, %v5223_v32  ;;  %v5290_v54 = vld [vmem:[#allocation2 + $0x50] sm:$0xff] }
 0x161   : > { %v2194_v15 = vsel %vm1850_vm6, %v2192_v11, %v2193_v37  ;;  %v2196_v20 = vrot.slane %v2162_v46, 2  ;;  %v1748_v1 = vmul.f32 %v5020_v49, %v5186_v55  ;;  %v1749_v51 = vmul.f32 %v5020_v49, %v5192_v19 }
 0x162   : > { %v1669_v26 = vadd.f32 %v1658_v8, %v1595_v23  ;;  %v2222_v22 = vadd.f32 %v2194_v15, %v2147_v50  ;;  %v1750_v59 = vmul.f32 %v5020_v49, %v5223_v32  ;;  %v1751_v62 = vmul.f32 %v5020_v49, %v5229_v0 }
 0x163   : > { %v2197_v61 = vsel %vm1850_vm6, %v2195_v33, %v2196_v20  ;;  %v1784_v63 = vrot.slane %v1748_v1, 1  ;;  %v1824_v6 = vmul.f32 %v5033_v4, %v5186_v55  ;;  %v1785_v7 = vrot.slane %v1749_v51, 1  ;;  %v5299_v33 = vld [vmem:[#allocation2 + $0x58] sm:$0x3] }
 0x164   : > { %v5280_v28 = vadd.f32 %v5042_v12, %v1669_v26  ;;  %v2223_v16 = vadd.f32 %v2197_v61, %v2148_v2  ;;  %v2234_v18 = vadd.f32 %v5179_v40, %v2222_v22  ;;  %v1787_v56 = vrot.slane %v1750_v59, 1  ;;  %v1660_v2 = vpop.f32.mrf.mxu0 }
 0x165   : > { %v1525_v57 = vpop.f32.mrf.mxu2  ;;  %v1788_v13 = vrot.slane %v1751_v62, 1  ;;  %v1825_v38 = vmul.f32 %v5033_v4, %v5192_v19  ;;  %v1826_v9 = vmul.f32 %v5033_v4, %v5223_v32  ;;  %v1786_v8 = vsel %vm1774_vm5, %v1784_v63, %v1785_v7 }
 0x166   : > { %v1689_v25 = vmax.f32 %v5280_v28, 0.0  ;;  %v1535_v55 = vadd.f32 %v1525_v57, %v5135_v53  ;;  %v2235_v10 = vadd.f32 %v5179_v40, %v2223_v16  ;;  %v2242_v30 = vmax.f32 %v2234_v18, 0.0  ;;  %v1586_v50 = vpop.f32.mrf.mxu3 }
 0x167   : > { %v1789_v36 = vsel %vm1774_vm5, %v1787_v56, %v1788_v13  ;;  %v1827_v19 = vmul.f32 %v5033_v4, %v5229_v0  ;;  %v1860_v46 = vrot.slane %v1824_v6, 2  ;;  %v1810_v37 = vadd.f32 %v1786_v8, %v1726_v3 }
 0x168   : > { %1698 = vst.msk [vmem:[#allocation2 + $0x71] sm:$0xff] %vm786_vm0, %v1689_v25  ;;  %v1596_v11 = vadd.f32 %v1586_v50, %v1535_v55  ;;  %v2243_v53 = vmax.f32 %v2235_v10, 0.0  ;;  %v1811_v23 = vadd.f32 %v1789_v36, %v1727_v39  ;;  %v1861_v15 = vrot.slane %v1825_v38, 2 }
 0x169   : > { %v1863_v20 = vrot.slane %v1826_v9, 2  ;;  %v1864_v1 = vrot.slane %v1827_v19, 2  ;;  %v1897_v26 = vmul.f32 %v5084_v47, %v5223_v32  ;;  %v1898_v59 = vmul.f32 %v5084_v47, %v5290_v54 }
 0x16a   : > { %v1670_v22 = vadd.f32 %v1660_v2, %v1596_v11  ;;  %v4344_v51 = vpack.i.bf16 %v2243_v53, %v2242_v30  ;;  %v1919_v61 = vmul.f32 %v5089_v34, %v5223_v32  ;;  %v1862_v3 = vsel %vm1850_vm6, %v1860_v46, %v1861_v15 }
 0x16b   : > { %v1865_v39 = vsel %vm1850_vm6, %v1863_v20, %v1864_v1  ;;  %v1920_v62 = vmul.f32 %v5089_v34, %v5229_v0  ;;  %v1921_v63 = vmul.f32 %v5089_v34, %v5290_v54  ;;  %v1886_v16 = vadd.f32 %v1862_v3, %v1810_v37 }
 0x16c   : > { %v5314_v6 = vadd.f32 %v5042_v12, %v1670_v22  ;;  %4345 = vrot.lane.b32.xlu0 %v4344_v51, %s4466_s29  ;;  %v1887_v18 = vadd.f32 %v1865_v39, %v1811_v23  ;;  %v1922_v7 = vmul.f32 %v5089_v34, %v5299_v33  ;;  %v1954_v57 = vrot.slane %v1919_v61, 1  ;;  %v5322_v12 = vld [vmem:[#allocation2 + $0x60] sm:$0xff] }
 0x16d   : > { %v1955_v56 = vrot.slane %v1920_v62, 1  ;;  %v1957_v13 = vrot.slane %v1921_v63, 1  ;;  %v1994_v38 = vmul.f32 %v5095_v31, %v5223_v32  ;;  %v1905_v55 = vadd.f32 %v1897_v26, %v1886_v16  ;;  %v5334_v32 = vld [vmem:[#allocation2 + $0x68] sm:$0x3] }
 0x16e   : > { %v1690_v9 = vmax.f32 %v5314_v6, 0.0  ;;  %v1906_v10 = vadd.f32 %v1898_v59, %v1887_v18  ;;  %v1958_v30 = vrot.slane %v1922_v7, 1  ;;  %v1995_v8 = vmul.f32 %v5095_v31, %v5229_v0 }
 0x16f   : > { %v1956_v50 = vsel %vm1774_vm5, %v1954_v57, %v1955_v56  ;;  %v1996_v36 = vmul.f32 %v5095_v31, %v5290_v54  ;;  %v1997_v19 = vmul.f32 %v5095_v31, %v5299_v33  ;;  %v2029_v53 = vrot.slane %v1994_v38, 2 }
 0x170   : > { %1699 = vst.msk [vmem:[#allocation2 + $0x81] sm:$0xff] %vm786_vm0, %v1690_v9  ;;  %v1959_v46 = vsel %vm1774_vm5, %v1957_v13, %v1958_v30  ;;  %v1980_v11 = vadd.f32 %v1956_v50, %v1905_v55  ;;  %v2066_v37 = vmul.f32 %v5124_v52, %v5290_v54  ;;  %v2030_v23 = vrot.slane %v1995_v8, 2 }
 0x171   : > { %v1981_v0 = vadd.f32 %v1959_v46, %v1906_v10  ;;  %v2032_v2 = vrot.slane %v1996_v36, 2  ;;  %v2033_v15 = vrot.slane %v1997_v19, 2  ;;  %v2067_v20 = vmul.f32 %v5124_v52, %v5322_v12 }
 0x172   : > { %v2088_v1 = vmul.f32 %v5129_v17, %v5290_v54  ;;  %v2089_v26 = vmul.f32 %v5129_v17, %v5299_v33  ;;  %v2090_v22 = vmul.f32 %v5129_v17, %v5322_v12  ;;  %v2031_v51 = vsel %vm1850_vm6, %v2029_v53, %v2030_v23 }
 0x173   : > { %v2034_v59 = vsel %vm1850_vm6, %v2032_v2, %v2033_v15  ;;  %v2091_v61 = vmul.f32 %v5129_v17, %v5334_v32  ;;  %v2163_v3 = vmul.f32 %v5140_v24, %v5290_v54  ;;  %v2055_v39 = vadd.f32 %v2031_v51, %v1980_v11 }
 0x174   : > { %v2056_v62 = vadd.f32 %v2034_v59, %v1981_v0  ;;  %v2123_v63 = vrot.slane %v2088_v1, 1  ;;  %v2124_v16 = vrot.slane %v2089_v26, 1  ;;  %v2126_v18 = vrot.slane %v2090_v22, 1 }
 0x175   : > { %v2127_v7 = vrot.slane %v2091_v61, 1  ;;  %v2164_v57 = vmul.f32 %v5140_v24, %v5299_v33  ;;  %v2165_v56 = vmul.f32 %v5140_v24, %v5322_v12  ;;  %v2074_v13 = vadd.f32 %v2066_v37, %v2055_v39 }
 0x176   : > { %v2075_v38 = vadd.f32 %v2067_v20, %v2056_v62  ;;  %v2125_v55 = vsel %vm1774_vm5, %v2123_v63, %v2124_v16  ;;  %v2166_v10 = vmul.f32 %v5140_v24, %v5334_v32  ;;  %v2198_v50 = vrot.slane %v2163_v3, 2 }
 0x177   : > { %v2128_v30 = vsel %vm1774_vm5, %v2126_v18, %v2127_v7  ;;  %v2199_v8 = vrot.slane %v2164_v57, 2  ;;  %v2201_v36 = vrot.slane %v2165_v56, 2  ;;  %v2149_v19 = vadd.f32 %v2125_v55, %v2074_v13  ;;  %v5381_v18 = vld [vmem:[#allocation2 + $0x70] sm:$0xff] }
 0x178   : > { %v2150_v46 = vadd.f32 %v2128_v30, %v2075_v38  ;;  %v2202_v11 = vrot.slane %v2166_v10, 2  ;;  %v1728_v53 = vmul.f32 %v5050_v58, %v5290_v54  ;;  %v1729_v37 = vmul.f32 %v5050_v58, %v5322_v12  ;;  %v5389_v30 = vld [vmem:[#allocation2 + $0x78] sm:$0x3] }
 0x179   : > { %v2200_v0 = vsel %vm1850_vm6, %v2198_v50, %v2199_v8  ;;  %v1752_v23 = vmul.f32 %v5020_v49, %v5290_v54  ;;  %v1753_v2 = vmul.f32 %v5020_v49, %v5299_v33  ;;  %v1754_v1 = vmul.f32 %v5020_v49, %v5322_v12 }
 0x17a   : > { %v2203_v15 = vsel %vm1850_vm6, %v2201_v36, %v2202_v11  ;;  %v2224_v20 = vadd.f32 %v2200_v0, %v2149_v19  ;;  %v1755_v26 = vmul.f32 %v5020_v49, %v5334_v32  ;;  %v1828_v61 = vmul.f32 %v5033_v4, %v5290_v54 }
 0x17b   : > { %v2225_v22 = vadd.f32 %v2203_v15, %v2150_v46  ;;  %v1790_v51 = vrot.slane %v1752_v23, 1  ;;  %v1791_v59 = vrot.slane %v1753_v2, 1  ;;  %v1793_v39 = vrot.slane %v1754_v1, 1 }
 0x17c   : > { %v2236_v3 = vadd.f32 %v5179_v40, %v2224_v20  ;;  %v1794_v62 = vrot.slane %v1755_v26, 1  ;;  %v1829_v63 = vmul.f32 %v5033_v4, %v5299_v33  ;;  %v1830_v57 = vmul.f32 %v5033_v4, %v5322_v12 }
 0x17d   : > { %v2237_v16 = vadd.f32 %v5179_v40, %v2225_v22  ;;  %v1792_v7 = vsel %vm1774_vm5, %v1790_v51, %v1791_v59  ;;  %v1831_v56 = vmul.f32 %v5033_v4, %v5334_v32  ;;  %v1866_v55 = vrot.slane %v1828_v61, 2  ;;  %v5408_v61 = vld [vmem:[#allocation2 + $0x80] sm:$0xff] }
 0x17e   : > { %v2244_v54 = vmax.f32 %v2236_v3, 0.0  ;;  %v1795_v13 = vsel %vm1774_vm5, %v1793_v39, %v1794_v62  ;;  %v1812_v38 = vadd.f32 %v1792_v7, %v1728_v53  ;;  %v1867_v50 = vrot.slane %v1829_v63, 2 }
 0x17f   : > { %v2245_v10 = vmax.f32 %v2237_v16, 0.0  ;;  %v1813_v33 = vadd.f32 %v1795_v13, %v1729_v37  ;;  %v1869_v8 = vrot.slane %v1830_v57, 2  ;;  %v1870_v36 = vrot.slane %v1831_v56, 2 }
 0x180   : > { %v1899_v19 = vmul.f32 %v5084_v47, %v5322_v12  ;;  %v1900_v46 = vmul.f32 %v5084_v47, %v5381_v18  ;;  %v1923_v11 = vmul.f32 %v5089_v34, %v5322_v12  ;;  %v1868_v53 = vsel %vm1850_vm6, %v1866_v55, %v1867_v50 }
 0x181   : > { %v4349_v0 = vpack.i.bf16 %v2245_v10, %v2244_v54  ;;  %v1924_v23 = vmul.f32 %v5089_v34, %v5334_v32  ;;  %v1925_v37 = vmul.f32 %v5089_v34, %v5381_v18  ;;  %v1871_v2 = vsel %vm1850_vm6, %v1869_v8, %v1870_v36  ;;  %v1717_v54 = vld [vmem:[#allocation2 + $0x88] sm:$0x3] }
 0x182   : > { %v1888_v15 = vadd.f32 %v1868_v53, %v1812_v38  ;;  %v1926_v20 = vmul.f32 %v5089_v34, %v5389_v30  ;;  %v1960_v1 = vrot.slane %v1923_v11, 1  ;;  %v1889_v26 = vadd.f32 %v1871_v2, %v1813_v33  ;;  %v4278_v11 = vld [vmem:[%s6439_s5 + $0x18] sm:$0xff] }
 0x183   : > { %4350 = vrot.lane.b32.xlu1 %v4349_v0, %s4466_s29  ;;  %v1961_v22 = vrot.slane %v1924_v23, 1  ;;  %v1963_v51 = vrot.slane %v1925_v37, 1  ;;  %v1998_v59 = vmul.f32 %v5095_v31, %v5322_v12  ;;  %v1999_v62 = vmul.f32 %v5095_v31, %v5334_v32  ;;  %2607 = vmatpush.bf16.msra.mxu1 %v4278_v11 }
 0x184   : > { %v1907_v3 = vadd.f32 %v1899_v19, %v1888_v15  ;;  %v1964_v39 = vrot.slane %v1926_v20, 1  ;;  %v2000_v63 = vmul.f32 %v5095_v31, %v5381_v18  ;;  %v1908_v16 = vadd.f32 %v1900_v46, %v1889_v26 }
 0x185   : > { %v1962_v7 = vsel %vm1774_vm5, %v1960_v1, %v1961_v22  ;;  %v2001_v57 = vmul.f32 %v5095_v31, %v5389_v30  ;;  %v2035_v56 = vrot.slane %v1998_v59, 2  ;;  %v2036_v38 = vrot.slane %v1999_v62, 2 }
 0x186   : > { %v1965_v12 = vsel %vm1774_vm5, %v1963_v51, %v1964_v39  ;;  %v1982_v13 = vadd.f32 %v1962_v7, %v1907_v3  ;;  %v2038_v55 = vrot.slane %v2000_v63, 2  ;;  %v2068_v32 = vmul.f32 %v5124_v52, %v5381_v18 }
 0x187   : > { %v1983_v10 = vadd.f32 %v1965_v12, %v1908_v16  ;;  %v2039_v33 = vrot.slane %v2001_v57, 2  ;;  %v2069_v50 = vmul.f32 %v5124_v52, %v5408_v61  ;;  %v2037_v8 = vsel %vm1850_vm6, %v2035_v56, %v2036_v38 }
 0x188   : > { %v2092_v36 = vmul.f32 %v5129_v17, %v5381_v18  ;;  %v2093_v19 = vmul.f32 %v5129_v17, %v5389_v30  ;;  %v2094_v46 = vmul.f32 %v5129_v17, %v5408_v61  ;;  %v2057_v53 = vadd.f32 %v2037_v8, %v1982_v13 }
 0x189   : > { %v2040_v0 = vsel %vm1850_vm6, %v2038_v55, %v2039_v33  ;;  %v2095_v23 = vmul.f32 %v5129_v17, %v1717_v54  ;;  %v2167_v37 = vmul.f32 %v5140_v24, %v5381_v18  ;;  %v2168_v51 = vmul.f32 %v5140_v24, %v5389_v30 }
 0x18a   : > { %v2058_v2 = vadd.f32 %v2040_v0, %v1983_v10  ;;  %v2129_v15 = vrot.slane %v2092_v36, 1  ;;  %v2130_v20 = vrot.slane %v2093_v19, 1  ;;  %v2132_v1 = vrot.slane %v2094_v46, 1 }
 0x18b   : > { %v2076_v26 = vadd.f32 %v2068_v32, %v2057_v53  ;;  %v2133_v22 = vrot.slane %v2095_v23, 1  ;;  %v2169_v59 = vmul.f32 %v5140_v24, %v5408_v61  ;;  %v2170_v62 = vmul.f32 %v5140_v24, %v1717_v54 }
 0x18c   : > { %v2077_v3 = vadd.f32 %v2069_v50, %v2058_v2  ;;  %v2131_v39 = vsel %vm1774_vm5, %v2129_v15, %v2130_v20  ;;  %v2204_v63 = vrot.slane %v2167_v37, 2  ;;  %v2205_v57 = vrot.slane %v2168_v51, 2  ;;  %v1718_v2 = vld [vmem:[#allocation2 + $0x90] sm:$0xff]  ;;  %v1719_v15 = vld [vmem:[#allocation2 + $0x98] sm:$0x3] }
 0x18d   : > { %v2134_v16 = vsel %vm1774_vm5, %v2132_v1, %v2133_v22  ;;  %v2151_v7 = vadd.f32 %v2131_v39, %v2076_v26  ;;  %v2207_v56 = vrot.slane %v2169_v59, 2  ;;  %v2208_v13 = vrot.slane %v2170_v62, 2 }
 0x18e   : > { %v2152_v12 = vadd.f32 %v2134_v16, %v2077_v3  ;;  %v1756_v38 = vmul.f32 %v5020_v49, %v5381_v18  ;;  %v2206_v55 = vsel %vm1850_vm6, %v2204_v63, %v2205_v57  ;;  %v1757_v10 = vmul.f32 %v5020_v49, %v5389_v30 }
 0x18f   : > { %v1832_v33 = vmul.f32 %v5033_v4, %v5381_v18  ;;  %v1833_v32 = vmul.f32 %v5033_v4, %v5389_v30  ;;  %v2209_v50 = vsel %vm1850_vm6, %v2207_v56, %v2208_v13  ;;  %v2226_v8 = vadd.f32 %v2206_v55, %v2151_v7 }
 0x190   : > { %v1730_v36 = vmul.f32 %v5050_v58, %v5381_v18  ;;  %v1796_v19 = vrot.slane %v1756_v38, 1  ;;  %v2227_v46 = vadd.f32 %v2209_v50, %v2152_v12  ;;  %v1797_v11 = vrot.slane %v1757_v10, 1 }
 0x191   : > { %v1872_v0 = vrot.slane %v1832_v33, 2  ;;  %v1873_v53 = vrot.slane %v1833_v32, 2  ;;  %v2238_v23 = vadd.f32 %v5179_v40, %v2226_v8  ;;  %v1927_v49 = vmul.f32 %v5089_v34, %v5408_v61 }
 0x192   : > { %v1928_v37 = vmul.f32 %v5089_v34, %v1717_v54  ;;  %v2002_v4 = vmul.f32 %v5095_v31, %v5408_v61  ;;  %v2239_v30 = vadd.f32 %v5179_v40, %v2227_v46  ;;  %v1798_v58 = vsel %vm1774_vm5, %v1796_v19, %v1797_v11  ;;  %v4276_v46 = vld [vmem:[%s6439_s5 + $0x8] sm:$0xff] }
 0x193   : > { %v2003_v18 = vmul.f32 %v5095_v31, %v1717_v54  ;;  %v1814_v20 = vadd.f32 %v1798_v58, %v1730_v36  ;;  %v1901_v1 = vmul.f32 %v5084_v47, %v5408_v61  ;;  %v1966_v26 = vrot.slane %v1927_v49, 1  ;;  %2680 = vmatpush.bf16.msrb.mxu2 %v4276_v46 }
 0x194   : > { %v1967_v22 = vrot.slane %v1928_v37, 1  ;;  %v2246_v51 = vmax.f32 %v2238_v23, 0.0  ;;  %v2247_v59 = vmax.f32 %v2239_v30, 0.0  ;;  %v1874_v34 = vsel %vm1850_vm6, %v1872_v0, %v1873_v53 }
 0x195   : > { %v2041_v3 = vrot.slane %v2002_v4, 2  ;;  %v1890_v39 = vadd.f32 %v1874_v34, %v1814_v20  ;;  %v2042_v62 = vrot.slane %v2003_v18, 2  ;;  %v2096_v63 = vmul.f32 %v5129_v17, %v1718_v2  ;;  %v4279_v20 = vld [vmem:[%s6439_s5 + $0x20] sm:$0xff]  ;;  %v4290_v4 = vld [vmem:[%s6439_s5 + $0x78] sm:$0xff] }
 0x196   : > { %v2097_v16 = vmul.f32 %v5129_v17, %v1719_v15  ;;  %v4354_v7 = vpack.i.bf16 %v2247_v59, %v2246_v51  ;;  %v1968_v31 = vsel %vm1774_vm5, %v1966_v26, %v1967_v22  ;;  %v2171_v54 = vmul.f32 %v5140_v24, %v1718_v2 }
 0x197   : > { %v2172_v47 = vmul.f32 %v5140_v24, %v1719_v15  ;;  %v1909_v61 = vadd.f32 %v1901_v1, %v1890_v39  ;;  %v2135_v57 = vrot.slane %v2096_v63, 1  ;;  %v2070_v13 = vmul.f32 %v5124_v52, %v1718_v2  ;;  %v4275_v15 = vld [vmem:[%s6439_s5] sm:$0xff] }
 0x198   : > { %4355 = vrot.lane.b32.xlu1 %v4354_v7, %s4466_s29  ;;  %v2136_v56 = vrot.slane %v2097_v16, 1  ;;  %v4467_v38 = vmov 0   ;;  %v2043_v17 = vsel %vm1850_vm6, %v2041_v3, %v2042_v62  ;;  %v2210_v55 = vrot.slane %v2171_v54, 2  ;;  %2681 = vmatpush.bf16.msrb.mxu2 %v4275_v15 }
 0x199   : > { %v1984_v12 = vadd.f32 %v1968_v31, %v1909_v61  ;;  %812 = vst.msk [vmem:[#allocation3 + $0x8] sm:$0xf] %vm808_vm7, %v4467_v38  ;;  %v2211_v10 = vrot.slane %v2172_v47, 2 }
 0x19a   : > { %813 = vst.msk [vmem:[#allocation3 + $0xc] sm:$0x1] %vm810_vm8, %v4467_v38  ;;  %v2137_v33 = vsel %vm1774_vm5, %v2135_v57, %v2136_v56 }
 0x19b   : > { %v2059_v24 = vadd.f32 %v2043_v17, %v1984_v12  ;;  %809 = vst.msk [vmem:[#allocation3] sm:$0xf] %vm808_vm7, %v4467_v38  ;;  %v2212_v52 = vsel %vm1850_vm6, %v2210_v55, %v2211_v10 }
 0x19c   : > { %811 = vst.msk [vmem:[#allocation3 + $0x4] sm:$0x1] %vm810_vm8, %v4467_v38 }
 0x19d   : > { %v2078_v32 = vadd.f32 %v2070_v13, %v2059_v24  ;;  %814 = vst.msk [vmem:[#allocation3 + $0x10] sm:$0xf] %vm808_vm7, %v4467_v38 }
 0x19e   : > { %815 = vst.msk [vmem:[#allocation3 + $0x14] sm:$0x1] %vm810_vm8, %v4467_v38 }
 0x19f   : > { %v2153_v50 = vadd.f32 %v2137_v33, %v2078_v32  ;;  %816 = vst.msk [vmem:[#allocation3 + $0x18] sm:$0xf] %vm808_vm7, %v4467_v38 }
 0x1a0   : > { %817 = vst.msk [vmem:[#allocation3 + $0x1c] sm:$0x1] %vm810_vm8, %v4467_v38  ;;  %v2381_v37 = vld [vmem:[#allocation3 + $0x8] sm:$0xf] }
 0x1a1   : > { %v2228_v8 = vadd.f32 %v2212_v52, %v2153_v50  ;;  %818 = vst.msk [vmem:[#allocation3 + $0x20] sm:$0xf] %vm808_vm7, %v4467_v38  ;;  %v2387_v42 = vld [vmem:[#allocation3 + $0xc] sm:$0x1] }
 0x1a2   : > { %819 = vst.msk [vmem:[#allocation3 + $0x24] sm:$0x1] %vm810_vm8, %v4467_v38  ;;  %v2432_v22 = vld [vmem:[#allocation3] sm:$0xf] }
 0x1a3   : > { %v2240_v36 = vadd.f32 %v5179_v40, %v2228_v8  ;;  %820 = vst.msk [vmem:[#allocation3 + $0x28] sm:$0xf] %vm808_vm7, %v4467_v38  ;;  %v4277_v40 = vld [vmem:[%s6439_s5 + $0x10] sm:$0xff]  ;;  %v2433_v51 = vld [vmem:[#allocation3 + $0x4] sm:$0x1]  ;;  %v4159_v59 = vrot.slane %v2432_v22, 9  ;;  %v2638_v39 = vunpack.c.l.b16 %v2432_v22 }
 0x1a4   : > { %821 = vst.msk [vmem:[#allocation3 + $0x2c] sm:$0x1] %vm810_vm8, %v4467_v38  ;;  %2608 = vmatpush.bf16.msra.mxu1 %v4277_v40  ;;  %v2716_v34 = vrot.slane %v2433_v51, 5  ;;  %v2453_v16 = vshrl.u32 %v2432_v22, 16  ;;  %v2456_v7 = vshll.u32 %v2432_v22, 16  ;;  %v2462_v52 = vshll.u32 %v2433_v51, 16 }
 0x1a5   : > { %v2248_v19 = vmax.f32 %v2240_v36, 0.0  ;;  %822 = vst.msk [vmem:[#allocation3 + $0x30] sm:$0xf] %vm808_vm7, %v4467_v38  ;;  %v2390_v22 = vld [vmem:[#allocation3 + $0x10] sm:$0xf] }
 0x1a6   : > { %823 = vst.msk [vmem:[#allocation3 + $0x34] sm:$0x1] %vm810_vm8, %v4467_v38  ;;  %v2717_v62 = vsel %vm5531_vm15, %v4159_v59, %v2716_v34  ;;  %v2455_v13 = vrot.slane %v2453_v16, 4  ;;  %v2396_v51 = vld [vmem:[#allocation3 + $0x18] sm:$0xf] }
 0x1a7   : > { %2271 = vrot.lane.b32.xlu2 %v2248_v19, %s4466_s29  ;;  %824 = vst.msk [vmem:[#allocation3 + $0x38] sm:$0xf] %vm808_vm7, %v4467_v38  ;;  %v2746_v12 = vunpack.c.l.b16 %v2717_v62  ;;  %v2399_v59 = vld [vmem:[#allocation3 + $0x1c] sm:$0x1]  ;;  %v2393_v34 = vld [vmem:[#allocation3 + $0x14] sm:$0x1] }
 0x1a8   : > { %825 = vst.msk [vmem:[#allocation3 + $0x3c] sm:$0x1] %vm810_vm8, %v4467_v38 }
 0x1a9   : > { %826 = vst.msk [vmem:[#allocation3 + $0x40] sm:$0xf] %vm808_vm7, %v4467_v38 }
 0x1aa   : > { %827 = vst.msk [vmem:[#allocation3 + $0x44] sm:$0x1] %vm810_vm8, %v4467_v38 }
 0x1ab   : > { %828 = vst.msk [vmem:[#allocation3 + $0x48] sm:$0xf] %vm808_vm7, %v4467_v38 }
 0x1ac   : > { %829 = vst.msk [vmem:[#allocation3 + $0x4c] sm:$0x1] %vm810_vm8, %v4467_v38  ;;  %v2458_v38 = vrot.slane %v2456_v7, 5 }
 0x1ae   : > { %v2459_v32 = vor.u32 %v2458_v38, %v2455_v13  ;;  %v4284_v13 = vld [vmem:[%s6439_s5 + $0x48] sm:$0xff] }
 0x1af   : > { %2935 = vmatpush.bf16.msrb.mxu1 %v4284_v13 }
 0x1b0   : > { %v2460_v46 = vrot.slane %v2459_v32, 4 }
 0x1c7   : > { %v2258_v11 = vpop.permute.xlu0 %2257 }
 0x1c8   : > { %v2281_v0 = vsel %vm786_vm0, %v1683_v41, %v2258_v11  ;;  %v4280_v41 = vld [vmem:[%s6439_s5 + $0x28] sm:$0xff]  ;;  %v2464_v11 = vrot.slane %v2462_v52, 5 }
 0x1c9   : > { %v2289_v53 = vpack.c.bf16 %v2281_v0, %v2281_v0  ;;  %2788 = vmatpush.bf16.msrb.mxu3 %v4280_v41 }
 0x1cb   : > { %v2298_v23 = vshrl.u32 %v2289_v53, 16  ;;  %v2301_v2 = vshll.u32 %v2289_v53, 16 }
 0x1cd   : > { %v2300_v30 = vrot.slane %v2298_v23, 7  ;;  %2789 = vmatpush.bf16.msrb.mxu3 %v4279_v20 }
 0x1cf   : > { %v2303_v58 = vor.u32 %v2301_v2, %v2300_v30  ;;  %v2304_v18 = vrot.slane %v2300_v30, 4  ;;  %v2465_v2 = vsel %vm4773_vm3, %v2460_v46, %v2464_v11 }
 0x1d1   : > { %v2382_v1 = vsel %vm5509_vm11, %v2303_v58, %v2381_v37  ;;  %v2388_v26 = vsel %vm5514_vm12, %v2304_v18, %v2387_v42  ;;  %v2564_v58 = vunpack.c.l.b16 %v2465_v2 }
 0x1d2   : > { %2383 = vst [vmem:[#allocation3 + $0x8] sm:$0xf] %v2382_v1 }
 0x1d3   : > { %2389 = vst [vmem:[#allocation3 + $0xc] sm:$0x1] %v2388_v26 }
 0x1d9   : > { %v5537_v63 = vld [vmem:[#allocation3 + $0x8] sm:$0xf] }
 0x1da   : > { %v2639_v31 = vunpack.c.l.b16 %v5537_v63  ;;  %v2435_v54 = vld [vmem:[#allocation3 + $0xc] sm:$0x1]  ;;  %v4160_v47 = vrot.slane %v5537_v63, 9  ;;  %v2467_v61 = vshrl.u32 %v5537_v63, 16  ;;  %v2470_v57 = vshll.u32 %v5537_v63, 16 }
 0x1db   : > { %v2720_v56 = vrot.slane %v2435_v54, 5  ;;  %v2476_v24 = vshll.u32 %v2435_v54, 16  ;;  %v4282_v54 = vld [vmem:[%s6439_s5 + $0x38] sm:$0xff] }
 0x1dc   : > { %v2646_v17 = vpack.c.b16 %v2639_v31, %v2638_v39  ;;  %v2469_v55 = vrot.slane %v2467_v61, 4  ;;  %v2472_v10 = vrot.slane %v2470_v57, 5  ;;  %2855 = vmatpush.bf16.msrb.mxu0 %v4282_v54  ;;  %v2402_v54 = vld [vmem:[#allocation3 + $0x20] sm:$0xf] }
 0x1dd   : > { %v5547_v33 = vsel %vm5531_vm15, %v4160_v47, %v2720_v56  ;;  %v2478_v23 = vrot.slane %v2476_v24, 5 }
 0x1de   : > { %v4346_v50 = vpop.permute.xlu0 %4345  ;;  %4155 = vmatmul.msk.bf16.vlgmr.msrb.gmra.mxu2 %vm2588_vm1, %v2646_v17  ;;  %v2747_v8 = vunpack.c.l.b16 %v5547_v33  ;;  %v2473_v36 = vor.u32 %v2472_v10, %v2469_v55  ;;  %v4291_v33 = vld [vmem:[%s6439_s5 + $0x80] sm:$0xff] }
 0x1df   : > { %v4348_v19 = vunpack.i.h.bf16 %v4346_v50  ;;  %v4347_v40 = vunpack.i.l.bf16 %v4346_v50 }
 0x1e0   : > { %v2754_v0 = vpack.c.b16 %v2747_v8, %v2746_v12  ;;  %v2474_v53 = vrot.slane %v2473_v36, 4  ;;  %v4281_v12 = vld [vmem:[%s6439_s5 + $0x30] sm:$0xff] }
 0x1e1   : > { %v2283_v37 = vsel %vm786_vm0, %v1685_v48, %v4348_v19  ;;  %v2282_v30 = vsel %vm786_vm0, %v1684_v21, %v4347_v40  ;;  %2856 = vmatpush.bf16.msrb.mxu0 %v4281_v12 }
 0x1e2   : > { %v2291_v42 = vpack.c.bf16 %v2283_v37, %v2283_v37  ;;  %v2290_v41 = vpack.c.bf16 %v2282_v30, %v2282_v30  ;;  %4175 = vmatmul.msk.bf16.vlgmr.msrb.gmra.mxu3 %vm2588_vm1, %v2754_v0  ;;  %v2479_v15 = vsel %vm4773_vm3, %v2474_v53, %v2478_v23 }
 0x1e3   : > { %v5564_v18 = vunpack.c.l.b16 %v2479_v15 }
 0x1e4   : > { %v2314_v29 = vshrl.u32 %v2291_v42, 16  ;;  %v2306_v20 = vshrl.u32 %v2290_v41, 16  ;;  %v2317_v1 = vshll.u32 %v2291_v42, 16  ;;  %v2309_v26 = vshll.u32 %v2290_v41, 16 }
 0x1e5   : > { %v2572_v48 = vpack.c.b16 %v5564_v18, %v2564_v58  ;;  %3129 = vmatpush.bf16.msra.mxu0 %v4290_v4 }
 0x1e6   : > { %v2316_v45 = vrot.slane %v2314_v29, 7  ;;  %v2308_v21 = vrot.slane %v2306_v20, 7 }
 0x1e7   : > { %4143 = vmatmul.msk.bf16.vlgmr.msra.gmra.mxu1 %vm2588_vm1, %v2572_v48 }
 0x1e8   : > { %v2319_v39 = vor.u32 %v2317_v1, %v2316_v45  ;;  %v2320_v62 = vrot.slane %v2316_v45, 4  ;;  %v2311_v16 = vor.u32 %v2309_v26, %v2308_v21  ;;  %v2312_v7 = vrot.slane %v2308_v21, 4 }
 0x1ea   : > { %v2397_v47 = vsel %vm5509_vm11, %v2319_v39, %v2396_v51  ;;  %v2400_v61 = vsel %vm5514_vm12, %v2320_v62, %v2399_v59  ;;  %v2391_v57 = vsel %vm5509_vm11, %v2311_v16, %v2390_v22  ;;  %v2394_v56 = vsel %vm5514_vm12, %v2312_v7, %v2393_v34 }
 0x1eb   : > { %2398 = vst [vmem:[#allocation3 + $0x18] sm:$0xf] %v2397_v47  ;;  %v2408_v47 = vld [vmem:[#allocation3 + $0x28] sm:$0xf] }
 0x1ec   : > { %2401 = vst [vmem:[#allocation3 + $0x1c] sm:$0x1] %v2400_v61  ;;  %v2411_v61 = vld [vmem:[#allocation3 + $0x2c] sm:$0x1] }
 0x1ed   : > { %2392 = vst [vmem:[#allocation3 + $0x10] sm:$0xf] %v2391_v57 }
 0x1ee   : > { %2395 = vst [vmem:[#allocation3 + $0x14] sm:$0x1] %v2394_v56  ;;  %v2405_v56 = vld [vmem:[#allocation3 + $0x24] sm:$0x1] }
 0x1f2   : > { %v5585_v38 = vld [vmem:[#allocation3 + $0x18] sm:$0xf] }
 0x1f3   : > { %v2641_v17 = vunpack.c.l.b16 %v5585_v38  ;;  %v2439_v55 = vld [vmem:[#allocation3 + $0x1c] sm:$0x1]  ;;  %v4162_v10 = vrot.slane %v5585_v38, 9  ;;  %v2495_v52 = vshrl.u32 %v5585_v38, 16  ;;  %v2498_v50 = vshll.u32 %v5585_v38, 16 }
 0x1f4   : > { %v2436_v24 = vld [vmem:[#allocation3 + $0x10] sm:$0xf]  ;;  %v2728_v32 = vrot.slane %v2439_v55, 5  ;;  %v2504_v26 = vshll.u32 %v2439_v55, 16 }
 0x1f5   : > { %v4351_v36 = vpop.permute.xlu1 %4350  ;;  %v2640_v19 = vunpack.c.l.b16 %v2436_v24  ;;  %v2437_v40 = vld [vmem:[#allocation3 + $0x14] sm:$0x1]  ;;  %v4161_v46 = vrot.slane %v2436_v24, 9  ;;  %v2481_v11 = vshrl.u32 %v2436_v24, 16  ;;  %v2484_v0 = vshll.u32 %v2436_v24, 16  ;;  %v4283_v24 = vld [vmem:[%s6439_s5 + $0x40] sm:$0xff] }
 0x1f6   : > { %v4353_v53 = vunpack.i.h.bf16 %v4351_v36  ;;  %v4352_v23 = vunpack.i.l.bf16 %v4351_v36  ;;  %v2724_v37 = vrot.slane %v2437_v40, 5  ;;  %v5593_v30 = vsel %vm5531_vm15, %v4162_v10, %v2728_v32  ;;  %2936 = vmatpush.bf16.msrb.mxu1 %v4283_v24 }
 0x1f7   : > { %v5597_v2 = vpack.c.b16 %v2641_v17, %v2640_v19  ;;  %v2821_v42 = vpack.c.b16 %v2640_v19, %v2639_v31  ;;  %v2749_v41 = vunpack.c.l.b16 %v5593_v30  ;;  %v2483_v15 = vrot.slane %v2481_v11, 4 }
 0x1f8   : > { %v2285_v58 = vsel %vm786_vm0, %v1687_v35, %v4353_v53  ;;  %v2284_v29 = vsel %vm786_vm0, %v1686_v43, %v4352_v23  ;;  %v5610_v20 = vsel %vm5531_vm15, %v4161_v46, %v2724_v37  ;;  %v2486_v48 = vrot.slane %v2484_v0, 5 }
 0x1f9   : > { %v2293_v45 = vpack.c.bf16 %v2285_v58, %v2285_v58  ;;  %v2292_v1 = vpack.c.bf16 %v2284_v29, %v2284_v29  ;;  %4156 = vmatmul.msk.bf16.gmra.mxu2 %vm2588_vm1, %v5597_v2  ;;  %4187 = vmatmul.msk.bf16.vlgmr.msrb.gmra.mxu0 %vm2588_vm1, %v2821_v42  ;;  %v2748_v44 = vunpack.c.l.b16 %v5610_v20  ;;  %v2490_v63 = vshll.u32 %v2437_v40, 16  ;;  %v5652_v58 = vld [vmem:[#allocation3 + $0x48] sm:$0xf] }
 0x1fa   : > { %v2487_v35 = vor.u32 %v2486_v48, %v2483_v15  ;;  %v2497_v31 = vrot.slane %v2495_v52, 4  ;;  %v2500_v60 = vrot.slane %v2498_v50, 5  ;;  %v2506_v52 = vrot.slane %v2504_v26, 5  ;;  %v5654_v48 = vld [vmem:[#allocation3 + $0x4c] sm:$0x1] }
 0x1fb   : > { %v2330_v21 = vshrl.u32 %v2293_v45, 16  ;;  %v2322_v43 = vshrl.u32 %v2292_v1, 16  ;;  %v2333_v22 = vshll.u32 %v2293_v45, 16  ;;  %v5620_v51 = vpack.c.b16 %v2749_v41, %v2748_v44  ;;  %v2429_v45 = vld [vmem:[#allocation3 + $0x44] sm:$0x1] }
 0x1fc   : > { %v2488_v59 = vrot.slane %v2487_v35, 4  ;;  %v2492_v34 = vrot.slane %v2490_v63, 5  ;;  %v2325_v16 = vshll.u32 %v2292_v1, 16  ;;  %v2501_v7 = vor.u32 %v2500_v60, %v2497_v31 }
 0x1fd   : > { %v2332_v39 = vrot.slane %v2330_v21, 7  ;;  %v2324_v62 = vrot.slane %v2322_v43, 7  ;;  %4176 = vmatmul.msk.bf16.gmra.mxu3 %vm2588_vm1, %v5620_v51  ;;  %v4240_v21 = vrot.slane %v5652_v58, 9 }
 0x1fe   : > { %v2493_v57 = vsel %vm4773_vm3, %v2488_v59, %v2492_v34  ;;  %v2502_v32 = vrot.slane %v2501_v7, 4 }
 0x1ff   : > { %v2335_v12 = vor.u32 %v2333_v22, %v2332_v39  ;;  %v2336_v13 = vrot.slane %v2332_v39, 4  ;;  %v2327_v55 = vor.u32 %v2325_v16, %v2324_v62  ;;  %v2328_v10 = vrot.slane %v2324_v62, 4 }
 0x200   : > { %v5635_v40 = vunpack.c.l.b16 %v2493_v57  ;;  %v2507_v0 = vsel %vm4773_vm3, %v2502_v32, %v2506_v52  ;;  %v3163_v39 = vrot.slane %v5654_v48, 5 }
 0x201   : > { %v2409_v50 = vsel %vm5509_vm11, %v2335_v12, %v2408_v47  ;;  %v2412_v36 = vsel %vm5514_vm12, %v2336_v13, %v2411_v61  ;;  %v2403_v19 = vsel %vm5509_vm11, %v2327_v55, %v2402_v54  ;;  %v2272_v46 = vpop.permute.xlu2 %2271  ;;  %v2406_v11 = vsel %vm5514_vm12, %v2328_v10, %v2405_v56 }
 0x202   : > { %2410 = vst [vmem:[#allocation3 + $0x28] sm:$0xf] %v2409_v50  ;;  %v2288_v53 = vsel %vm786_vm0, %v1690_v9, %v2272_v46  ;;  %v5644_v23 = vunpack.c.l.b16 %v2507_v0  ;;  %v2426_v9 = vld [vmem:[#allocation3 + $0x40] sm:$0xf]  ;;  %v4288_v46 = vld [vmem:[%s6439_s5 + $0x68] sm:$0xff] }
 0x203   : > { %2413 = vst [vmem:[#allocation3 + $0x2c] sm:$0x1] %v2412_v36  ;;  %v2296_v37 = vpack.c.bf16 %v2288_v53, %v2288_v53  ;;  %3061 = vmatpush.bf16.msra.mxu3 %v4288_v46 }
 0x204   : > { %2404 = vst [vmem:[#allocation3 + $0x20] sm:$0xf] %v2403_v19  ;;  %v5648_v42 = vpack.c.b16 %v5644_v23, %v5635_v40  ;;  %v4286_v19 = vld [vmem:[%s6439_s5 + $0x58] sm:$0xff] }
 0x205   : > { %2407 = vst [vmem:[#allocation3 + $0x24] sm:$0x1] %v2406_v11  ;;  %v2354_v15 = vshrl.u32 %v2296_v37, 16  ;;  %v2357_v6 = vshll.u32 %v2296_v37, 16  ;;  %3006 = vmatpush.bf16.msra.mxu2 %v4286_v19 }
 0x206   : > { %4144 = vmatmul.msk.bf16.gmra.mxu1 %vm2588_vm1, %v5648_v42 }
 0x207   : > { %v2356_v29 = vrot.slane %v2354_v15, 7 }
 0x209   : > { %v5656_v1 = vld [vmem:[#allocation3 + $0x28] sm:$0xf]  ;;  %v2359_v63 = vor.u32 %v2357_v6, %v2356_v29  ;;  %v2360_v35 = vrot.slane %v2356_v29, 4  ;;  %v4285_v6 = vld [vmem:[%s6439_s5 + $0x50] sm:$0xff] }
 0x20a   : > { %v5658_v31 = vld [vmem:[#allocation3 + $0x2c] sm:$0x1]  ;;  %v4164_v60 = vrot.slane %v5656_v1, 9  ;;  %v4356_v43 = vpop.permute.xlu1 %4355  ;;  %v2643_v22 = vunpack.c.l.b16 %v5656_v1  ;;  %v2523_v34 = vshrl.u32 %v5656_v1, 16  ;;  %v2526_v24 = vshll.u32 %v5656_v1, 16  ;;  %3007 = vmatpush.bf16.msra.mxu2 %v4285_v6 }
 0x20b   : > { %v2440_v26 = vld [vmem:[#allocation3 + $0x20] sm:$0xf]  ;;  %v2736_v59 = vrot.slane %v5658_v31, 5  ;;  %v2427_v62 = vsel %vm5509_vm11, %v2359_v63, %v2426_v9  ;;  %v2430_v16 = vsel %vm5514_vm12, %v2360_v35, %v2429_v45  ;;  %v4358_v7 = vunpack.i.h.bf16 %v4356_v43  ;;  %v2414_v9 = vld [vmem:[#allocation3 + $0x30] sm:$0xf] }
 0x20c   : > { %v4357_v54 = vunpack.i.l.bf16 %v4356_v43  ;;  %v2441_v47 = vld [vmem:[#allocation3 + $0x24] sm:$0x1]  ;;  %2428 = vst [vmem:[#allocation3 + $0x40] sm:$0xf] %v2427_v62  ;;  %v2642_v61 = vunpack.c.l.b16 %v2440_v26  ;;  %v4163_v57 = vrot.slane %v2440_v26, 9  ;;  %v2509_v10 = vshrl.u32 %v2440_v26, 16 }
 0x20d   : > { %v2732_v56 = vrot.slane %v2441_v47, 5  ;;  %v5672_v12 = vsel %vm5531_vm15, %v4164_v60, %v2736_v59  ;;  %2431 = vst [vmem:[#allocation3 + $0x44] sm:$0x1] %v2430_v16  ;;  %v2287_v13 = vsel %vm786_vm0, %v1689_v25, %v4358_v7  ;;  %v2518_v38 = vshll.u32 %v2441_v47, 16  ;;  %v2420_v43 = vld [vmem:[#allocation3 + $0x38] sm:$0xf] }
 0x20e   : > { %v2286_v55 = vsel %vm786_vm0, %v1688_v27, %v4357_v54  ;;  %v2295_v32 = vpack.c.bf16 %v2287_v13, %v2287_v13  ;;  %v5683_v50 = vpack.c.b16 %v2643_v22, %v2642_v61  ;;  %v2822_v36 = vpack.c.b16 %v2642_v61, %v2641_v17  ;;  %v2417_v16 = vld [vmem:[#allocation3 + $0x34] sm:$0x1] }
 0x20f   : > { %v2294_v52 = vpack.c.bf16 %v2286_v55, %v2286_v55  ;;  %v5689_v28 = vsel %vm5531_vm15, %v4163_v57, %v2732_v56  ;;  %v2751_v14 = vunpack.c.l.b16 %v5672_v12  ;;  %v2511_v25 = vrot.slane %v2509_v10, 4  ;;  %v4287_v10 = vld [vmem:[%s6439_s5 + $0x60] sm:$0xff] }
 0x210   : > { %v2512_v27 = vshll.u32 %v2440_v26, 16  ;;  %v2346_v11 = vshrl.u32 %v2295_v32, 16  ;;  %4157 = vmatmul.msk.bf16.gmra.mxu2 %vm2588_vm1, %v5683_v50  ;;  %4188 = vmatmul.msk.bf16.gmra.mxu0 %vm2588_vm1, %v2822_v36  ;;  %v2532_v17 = vshll.u32 %v5658_v31, 16  ;;  %v2349_v53 = vshll.u32 %v2295_v32, 16  ;;  %v2423_v26 = vld [vmem:[#allocation3 + $0x3c] sm:$0x1] }
 0x211   : > { %v2338_v0 = vshrl.u32 %v2294_v52, 16  ;;  %v2750_v37 = vunpack.c.l.b16 %v5689_v28  ;;  %v2525_v29 = vrot.slane %v2523_v34, 4  ;;  %v2341_v35 = vshll.u32 %v2294_v52, 16  ;;  %3062 = vmatpush.bf16.msra.mxu3 %v4287_v10 }
 0x212   : > { %v2514_v15 = vrot.slane %v2512_v27, 5  ;;  %v2348_v45 = vrot.slane %v2346_v11, 7  ;;  %v2528_v60 = vrot.slane %v2526_v24, 5  ;;  %v3164_v62 = vsel %vm5531_vm15, %v4240_v21, %v3163_v39 }
 0x213   : > { %v2340_v63 = vrot.slane %v2338_v0, 7  ;;  %v5710_v31 = vpack.c.b16 %v2751_v14, %v2750_v37  ;;  %v5712_v34 = vld [vmem:[#allocation3 + $0x40] sm:$0xf]  ;;  %v2520_v13 = vrot.slane %v2518_v38, 5  ;;  %v2534_v52 = vrot.slane %v2532_v17, 5 }
 0x214   : > { %v2515_v59 = vor.u32 %v2514_v15, %v2511_v25  ;;  %v2351_v7 = vor.u32 %v2349_v53, %v2348_v45  ;;  %v2352_v54 = vrot.slane %v2348_v45, 4  ;;  %v5716_v57 = vld [vmem:[#allocation3 + $0x44] sm:$0x1]  ;;  %v2529_v55 = vor.u32 %v2528_v60, %v2525_v29 }
 0x215   : > { %v2343_v47 = vor.u32 %v2341_v35, %v2340_v63  ;;  %v2344_v61 = vrot.slane %v2340_v63, 4  ;;  %4177 = vmatmul.msk.bf16.gmra.mxu3 %vm2588_vm1, %v5710_v31  ;;  %v4203_v21 = vrot.slane %v5712_v34, 9  ;;  %v2969_v19 = vrot.slane %v5716_v57, 5  ;;  %v4292_v35 = vld [vmem:[%s6439_s5 + $0x88] sm:$0xff] }
 0x216   : > { %v2516_v56 = vrot.slane %v2515_v59, 4  ;;  %v2421_v39 = vsel %vm5509_vm11, %v2351_v7, %v2420_v43  ;;  %v2424_v24 = vsel %vm5514_vm12, %v2352_v54, %v2423_v26  ;;  %v2530_v27 = vrot.slane %v2529_v55, 4  ;;  %v4289_v59 = vld [vmem:[%s6439_s5 + $0x70] sm:$0xff]  ;;  %3188 = vmatpush.bf16.msra.mxu1 %v4292_v35 }
 0x217   : > { %v2415_v32 = vsel %vm5509_vm11, %v2343_v47, %v2414_v9  ;;  %2422 = vst [vmem:[#allocation3 + $0x38] sm:$0xf] %v2421_v39  ;;  %v2418_v36 = vsel %vm5514_vm12, %v2344_v61, %v2417_v16  ;;  %v3165_v11 = vunpack.c.l.b16 %v3164_v62  ;;  %v5744_v0 = vsel %vm5531_vm15, %v4203_v21, %v2969_v19  ;;  %3130 = vmatpush.bf16.msra.mxu0 %v4289_v59 }
 0x218   : > { %v2521_v25 = vsel %vm4773_vm3, %v2516_v56, %v2520_v13  ;;  %2425 = vst [vmem:[#allocation3 + $0x3c] sm:$0x1] %v2424_v24  ;;  %v2535_v49 = vsel %vm4773_vm3, %v2530_v27, %v2534_v52  ;;  %v2971_v17 = vunpack.c.l.b16 %v5744_v0  ;;  %v2901_v59 = vpack.c.b16 %v5635_v40, %v5564_v18 }
 0x219   : > { %v5735_v46 = vunpack.c.l.b16 %v2521_v25  ;;  %2416 = vst [vmem:[#allocation3 + $0x30] sm:$0xf] %v2415_v32  ;;  %v5746_v38 = vunpack.c.l.b16 %v2535_v49  ;;  %v2887_v30 = vshrl.u32 %v5712_v34, 16  ;;  %v3093_v40 = vshrl.u32 %v5652_v58, 16 }
 0x21a   : > { %2419 = vst [vmem:[#allocation3 + $0x34] sm:$0x1] %v2418_v36  ;;  %v5755_v15 = vpack.c.b16 %v3165_v11, %v2971_v17  ;;  %3189 = vmatpush.bf16.msra.mxu1 %v4291_v33 }
 0x21b   : > { %v5751_v53 = vpack.c.b16 %v5746_v38, %v5735_v46  ;;  %v2902_v18 = vpack.c.b16 %v5735_v46, %v5644_v23  ;;  %v2889_v20 = vrot.slane %v2887_v30, 4  ;;  %v3096_v23 = vshll.u32 %v5652_v58, 16 }
 0x21d   : > { %4145 = vmatmul.msk.bf16.gmra.mxu1 %vm2588_vm1, %v5751_v53  ;;  %v3098_v28 = vrot.slane %v3096_v23, 5 }
 0x21e   : > { %v2446_v29 = vld [vmem:[#allocation3 + $0x38] sm:$0xf] }
 0x21f   : > { %v2645_v6 = vunpack.c.l.b16 %v2446_v29  ;;  %v2447_v9 = vld [vmem:[#allocation3 + $0x3c] sm:$0x1]  ;;  %v4166_v45 = vrot.slane %v2446_v29, 9  ;;  %v2551_v63 = vshrl.u32 %v2446_v29, 16  ;;  %v2554_v26 = vshll.u32 %v2446_v29, 16 }
 0x220   : > { %v2444_v60 = vld [vmem:[#allocation3 + $0x30] sm:$0xf]  ;;  %v2744_v43 = vrot.slane %v2447_v9, 5  ;;  %v2560_v55 = vshll.u32 %v2447_v9, 16 }
 0x221   : > { %v2644_v62 = vunpack.c.l.b16 %v2444_v60  ;;  %v2445_v16 = vld [vmem:[#allocation3 + $0x34] sm:$0x1]  ;;  %v4165_v7 = vrot.slane %v2444_v60, 9  ;;  %v2537_v54 = vshrl.u32 %v2444_v60, 16  ;;  %v2540_v47 = vshll.u32 %v2444_v60, 16 }
 0x222   : > { %v2740_v61 = vrot.slane %v2445_v16, 5  ;;  %v2745_v56 = vsel %vm5531_vm15, %v4166_v45, %v2744_v43  ;;  %v2553_v13 = vrot.slane %v2551_v63, 4  ;;  %v2546_v36 = vshll.u32 %v2445_v16, 16 }
 0x223   : > { %v2649_v10 = vpack.c.b16 %v2645_v6, %v2644_v62  ;;  %v2823_v21 = vpack.c.b16 %v2644_v62, %v2643_v22  ;;  %v2753_v39 = vunpack.c.l.b16 %v2745_v56  ;;  %v2539_v24 = vrot.slane %v2537_v54, 4 }
 0x224   : > { %v2741_v32 = vsel %vm5531_vm15, %v4165_v7, %v2740_v61  ;;  %v2542_v52 = vrot.slane %v2540_v47, 5  ;;  %v2556_v25 = vrot.slane %v2554_v26, 5  ;;  %v2548_v1 = vrot.slane %v2546_v36, 5 }
 0x225   : > { %4158 = vmatmul.msk.bf16.gmra.mxu2 %vm2588_vm1, %v2649_v10  ;;  %4189 = vmatmul.msk.bf16.gmra.mxu0 %vm2588_vm1, %v2823_v21  ;;  %v2752_v27 = vunpack.c.l.b16 %v2741_v32  ;;  %v2562_v29 = vrot.slane %v2560_v55, 5  ;;  %v2820_v60 = vunpack.c.l.b16 %v5712_v34  ;;  %v2972_v43 = vpack.c.b16 %v2748_v44, %v2747_v8 }
 0x226   : > { %v2543_v19 = vor.u32 %v2542_v52, %v2539_v24  ;;  %v2557_v11 = vor.u32 %v2556_v25, %v2553_v13  ;;  %v2973_v8 = vpack.c.b16 %v2750_v37, %v2749_v41  ;;  %v2890_v41 = vshll.u32 %v5712_v34, 16 }
 0x227   : > { %v5773_v49 = vpack.c.b16 %v2753_v39, %v2752_v27  ;;  %v2824_v26 = vpack.c.b16 %v2820_v60, %v2645_v6  ;;  %v2975_v37 = vpack.c.b16 %v2971_v17, %v2753_v39  ;;  %v3038_v34 = vunpack.c.l.b16 %v5652_v58 }
 0x228   : > { %v2544_v4 = vrot.slane %v2543_v19, 4  ;;  %v2558_v22 = vrot.slane %v2557_v11, 4  ;;  %v2892_v44 = vrot.slane %v2890_v41, 5  ;;  %v3102_v6 = vshll.u32 %v5654_v48, 16 }
 0x229   : > { %4178 = vmatmul.msk.bf16.gmra.mxu3 %vm2588_vm1, %v5773_v49  ;;  %v3039_v62 = vpack.c.b16 %v3038_v34, %v2820_v60 }
 0x22a   : > { %v2549_v3 = vsel %vm4773_vm3, %v2544_v4, %v2548_v1  ;;  %v2563_v9 = vsel %vm4773_vm3, %v2558_v22, %v2562_v29  ;;  %v2893_v12 = vor.u32 %v2892_v44, %v2889_v20 }
 0x22b   : > { %v2570_v45 = vunpack.c.l.b16 %v2549_v3  ;;  %v2571_v63 = vunpack.c.l.b16 %v2563_v9 }
 0x22c   : > { %v2894_v46 = vrot.slane %v2893_v12, 4 }
 0x22d   : > { %v2575_v35 = vpack.c.b16 %v2571_v63, %v2570_v45 }
 0x22f   : > { %4146 = vmatmul.msk.bf16.gmra.mxu1 %vm2588_vm1, %v2575_v35 }
 0x235   : > { %4190 = vmatmul.msk.bf16.gmra.mxu0 %vm2588_vm1, %v2824_v26  ;;  %4212 = vmatmul.msk.bf16.vlgmr.msra.gmra.mxu2 %vm2588_vm1, %v2972_v43 }
 0x239   : > { %4224 = vmatmul.msk.bf16.vlgmr.msra.gmra.mxu3 %vm2588_vm1, %v5597_v2  ;;  %v2974_v2 = vpack.c.b16 %v2752_v27, %v2751_v14  ;;  %v2896_v14 = vshll.u32 %v5716_v57, 16  ;;  %v3104_v57 = vrot.slane %v3102_v6, 5 }
 0x23f   : > { %4199 = vmatmul.msk.bf16.vlgmr.msrb.gmra.mxu1 %vm2588_vm1, %v2901_v59 }
 0x245   : > { %4213 = vmatmul.msk.bf16.gmra.mxu2 %vm2588_vm1, %v2973_v8  ;;  %4236 = vmatmul.msk.bf16.vlgmr.msra.gmra.mxu0 %vm2588_vm1, %v5648_v42  ;;  %v2903_v42 = vpack.c.b16 %v2570_v45, %v5746_v38  ;;  %v2898_v38 = vrot.slane %v2896_v14, 5 }
 0x247   : > { %v2899_v16 = vsel %vm4773_vm3, %v2894_v46, %v2898_v38 }
 0x248   : > { %v2900_v0 = vunpack.c.l.b16 %v2899_v16 }
 0x249   : > { %4225 = vmatmul.msk.bf16.gmra.mxu3 %vm2588_vm1, %v5683_v50  ;;  %v3095_v50 = vrot.slane %v3093_v40, 4 }
 0x24a   : > { %v2904_v17 = vpack.c.b16 %v2900_v0, %v2571_v63 }
 0x24f   : > { %4200 = vmatmul.msk.bf16.gmra.mxu1 %vm2588_vm1, %v2902_v18 }
 0x255   : > { %4214 = vmatmul.msk.bf16.gmra.mxu2 %vm2588_vm1, %v2974_v2  ;;  %4237 = vmatmul.msk.bf16.gmra.mxu0 %vm2588_vm1, %v5751_v53  ;;  %v3099_v53 = vor.u32 %v3098_v28, %v3095_v50 }
 0x257   : > { %v3100_v7 = vrot.slane %v3099_v53, 4 }
 0x259   : > { %4226 = vmatmul.msk.bf16.gmra.mxu3 %vm2588_vm1, %v2649_v10  ;;  %v3105_v58 = vsel %vm4773_vm3, %v3100_v7, %v3104_v57  ;;  %vm3867_vm3 = vcmask 195584  }
 0x25a   : > { %v3106_v48 = vunpack.c.l.b16 %v3105_v58  ;;  %v4025_v58 = vld [vmem:[%s4672_s28 + $0xe8] sm:$0xf] }
 0x25c   : > { %v3107_v54 = vpack.c.b16 %v3106_v48, %v2900_v0 }
 0x25f   : > { %4201 = vmatmul.msk.bf16.gmra.mxu1 %vm2588_vm1, %v2903_v42 }
 0x261   : > { %v2683_v47 = vpop.f32.mrf.mxu2 }
 0x264   : > { %v2610_v61 = vpop.f32.mrf.mxu1 }
 0x265   : > { %4215 = vmatmul.msk.bf16.gmra.mxu2 %vm2588_vm1, %v2975_v37  ;;  %4238 = vmatmul.msk.bf16.gmra.mxu0 %vm2588_vm1, %v2575_v35  ;;  %v2791_v56 = vpop.f32.mrf.mxu3  ;;  %v2684_v14 = vadd.f32 %v2683_v47, %v2610_v61  ;;  %v3820_v47 = vunpack.c.l.bf16 %v4025_v58 }
 0x267   : > { %v2811_v34 = vadd.f32 %v2791_v56, %v2684_v14 }
 0x269   : > { %4227 = vmatmul.msk.bf16.gmra.mxu3 %vm2588_vm1, %v3039_v62  ;;  %v2685_v13 = vpop.f32.mrf.mxu2 }
 0x26c   : > { %v2612_v55 = vpop.f32.mrf.mxu1 }
 0x26d   : > { %v2793_v21 = vpop.f32.mrf.mxu3  ;;  %v2686_v6 = vadd.f32 %v2685_v13, %v2612_v55  ;;  %v5900_v13 = vld [vmem:[%s6441_s7 + $0x1] ss:$0 sm:$0xff] }
 0x26f   : > { %4202 = vmatmul.msk.bf16.gmra.mxu1 %vm2588_vm1, %v2904_v17  ;;  %v2812_v7 = vadd.f32 %v2793_v21, %v2686_v6  ;;  %v4026_v17 = vld [vmem:[%s4672_s28 + $0xf0] sm:$0xf]  ;;  %v4023_v6 = vld [vmem:[%s4672_s28 + $0xd8] sm:$0xf] }
 0x270   : > { %v3821_v61 = vunpack.c.l.bf16 %v4026_v17  ;;  %v3239_v21 = vld [vmem:[#allocation2] sm:$0xff] }
 0x275   : > { %4239 = vmatmul.msk.bf16.gmra.mxu0 %vm2588_vm1, %v3107_v54 }
 0x276   : > { %v2858_v10 = vpop.f32.mrf.mxu0 }
 0x277   : > { %v2878_v38 = vadd.f32 %v2858_v10, %v2811_v34  ;;  %v4364_v10 = vpack.i.bf16 %v3821_v61, %v3820_v47 }
 0x279   : > { %4365 = vrot.lane.b32.xlu0 %v4364_v10, %s4468_s21 }
 0x27c   : > { %v2688_v39 = vpop.f32.mrf.mxu2 }
 0x27e   : > { %v2860_v24 = vpop.f32.mrf.mxu0 }
 0x27f   : > { %4249 = vmatmul.msk.bf16.vlgmr.msra.gmra.mxu1 %vm2588_vm1, %v5620_v51  ;;  %v2879_v56 = vadd.f32 %v2860_v24, %v2812_v7 }
 0x280   : > { %v5837_v32 = vpop.f32.mrf.mxu3 }
 0x283   : > { %v2615_v5 = vpop.f32.mrf.mxu1 }
 0x284   : > { %v2690_v52 = vpop.f32.mrf.mxu2  ;;  %v2689_v57 = vadd.f32 %v2688_v39, %v2615_v5 }
 0x286   : > { %v2813_v39 = vadd.f32 %v5837_v32, %v2689_v57  ;;  %v3281_v32 = vmul.f32 %v5900_v13, %v3239_v21  ;;  %v4028_v57 = vld [vmem:[%s4672_s28 + $0x100] sm:$0xf] }
 0x288   : > { %v5843_v27 = vpop.f32.mrf.mxu3 }
 0x28b   : > { %v2617_v36 = vpop.f32.mrf.mxu1 }
 0x28c   : > { %v2691_v48 = vadd.f32 %v2690_v52, %v2617_v36  ;;  %v3240_v52 = vld [vmem:[#allocation2 + $0x8] sm:$0x3] }
 0x28d   : > { %v5841_v25 = vpop.f32.mrf.mxu0 }
 0x28e   : > { %v2814_v36 = vadd.f32 %v5843_v27, %v2691_v48  ;;  %v3282_v27 = vmul.f32 %v5900_v13, %v3240_v52 }
 0x28f   : > { %4250 = vmatmul.msk.bf16.gmra.mxu1 %vm2588_vm1, %v5710_v31 }
 0x290   : > { %v3314_v47 = vrot.slane %v3282_v27, 1 }
 0x293   : > { %v2693_v19 = vpop.f32.mrf.mxu2 }
 0x295   : > { %v5845_v51 = vpop.f32.mrf.mxu0 }
 0x298   : > { %v2801_v4 = vpop.f32.mrf.mxu3 }
 0x29a   : > { %v2620_v11 = vpop.f32.mrf.mxu1 }
 0x29b   : > { %v2695_v22 = vpop.f32.mrf.mxu2  ;;  %v2694_v54 = vadd.f32 %v2693_v19, %v2620_v11  ;;  %v2880_v19 = vadd.f32 %v5841_v25, %v2813_v39 }
 0x29d   : > { %v2815_v24 = vadd.f32 %v2801_v4, %v2694_v54  ;;  %v5917_v4 = vld [vmem:[%s6441_s7 + $0x2] ss:$0 sm:$0xff] }
 0x29f   : > { %4251 = vmatmul.msk.bf16.gmra.mxu1 %vm2588_vm1, %v5773_v49 }
 0x2a0   : > { %v5851_v3 = vpop.f32.mrf.mxu3 }
 0x2a2   : > { %v2622_v1 = vpop.f32.mrf.mxu1  ;;  %v5849_v29 = vpop.f32.mrf.mxu0 }
 0x2a3   : > { %v2696_v5 = vadd.f32 %v2695_v22, %v2622_v1  ;;  %v2881_v1 = vadd.f32 %v5845_v51, %v2814_v36  ;;  %v2882_v22 = vadd.f32 %v5849_v29, %v2815_v24  ;;  %v4027_v51 = vld [vmem:[%s4672_s28 + $0xf8] sm:$0xf]  ;;  %v3818_v29 = vunpack.c.l.bf16 %v4023_v6 }
 0x2a4   : > { %v3822_v58 = vunpack.c.l.bf16 %v4027_v51 }
 0x2a8   : > { %v2698_v9 = vpop.f32.mrf.mxu2 }
 0x2aa   : > { %v5855_v45 = vpop.f32.mrf.mxu0 }
 0x2ac   : > { %v2625_v31 = vpop.f32.mrf.mxu1  ;;  %v5859_v35 = vpop.f32.mrf.mxu3 }
 0x2ad   : > { %v2699_v11 = vadd.f32 %v2698_v9, %v2625_v31 }
 0x2af   : > { %4252 = vmatmul.msk.bf16.gmra.mxu1 %vm2588_vm1, %v5755_v15  ;;  %v2817_v17 = vadd.f32 %v5859_v35, %v2699_v11  ;;  %v3356_v35 = vmul.f32 %v5917_v4, %v3239_v21  ;;  %v4030_v11 = vld [vmem:[%s4672_s28 + $0x110] sm:$0xf] }
 0x2b0   : > { %v2700_v60 = vpop.f32.mrf.mxu2 }
 0x2b2   : > { %v5861_v43 = vpop.f32.mrf.mxu0 }
 0x2b4   : > { %v5857_v63 = vpop.f32.mrf.mxu1  ;;  %v5863_v26 = vpop.f32.mrf.mxu3 }
 0x2b5   : > { %v2701_v25 = vadd.f32 %v2700_v60, %v5857_v63  ;;  %v3823_v63 = vunpack.c.l.bf16 %v4028_v57  ;;  %v5937_v60 = vld [vmem:[%s6441_s7] ss:$0 sm:$0xff] }
 0x2b7   : > { %v4369_v10 = vpack.i.bf16 %v3823_v63, %v3822_v58  ;;  %v2818_v39 = vadd.f32 %v5863_v26, %v2701_v25  ;;  %v3262_v26 = vmul.f32 %v5937_v60, %v3239_v21 }
 0x2b8   : > { %v3009_v59 = vpop.f32.mrf.mxu2 }
 0x2b9   : > { %4370 = vrot.lane.b32.xlu1 %v4369_v10, %s4468_s21 }
 0x2ba   : > { %v5865_v8 = vpop.f32.mrf.mxu0 }
 0x2bc   : > { %v2938_v49 = vpop.f32.mrf.mxu1  ;;  %v3064_v18 = vpop.f32.mrf.mxu3 }
 0x2bd   : > { %v2958_v62 = vadd.f32 %v2938_v49, %v2878_v38  ;;  %v4024_v38 = vld [vmem:[%s4672_s28 + $0xe0] sm:$0xf] }
 0x2be   : > { %v3819_v7 = vunpack.c.l.bf16 %v4024_v38 }
 0x2bf   : > { %v3029_v14 = vadd.f32 %v3009_v59, %v2958_v62 }
 0x2c0   : > { %v3011_v30 = vpop.f32.mrf.mxu2 }
 0x2c1   : > { %v3084_v59 = vadd.f32 %v3064_v18, %v3029_v14 }
 0x2c2   : > { %v5867_v15 = vpop.f32.mrf.mxu0 }
 0x2c3   : > { %v3152_v48 = vadd.f32 %v5867_v15, %v3084_v59  ;;  %v3357_v15 = vmul.f32 %v5917_v4, %v3240_v52 }
 0x2c4   : > { %v2940_v33 = vpop.f32.mrf.mxu1  ;;  %v5869_v41 = vpop.f32.mrf.mxu3 }
 0x2c5   : > { %v2959_v49 = vadd.f32 %v2940_v33, %v2879_v56  ;;  %v2816_v33 = vadd.f32 %v5851_v3, %v2696_v5  ;;  %v5932_v3 = vld [vmem:[%s6440_s6] ss:$0 sm:$0xff]  ;;  %v2884_v56 = vadd.f32 %v5861_v43, %v2817_v17 }
 0x2c7   : > { %v3030_v31 = vadd.f32 %v3011_v30, %v2959_v49  ;;  %v2883_v61 = vadd.f32 %v5855_v45, %v2816_v33 }
 0x2c8   : > { %v5871_v44 = vpop.f32.mrf.mxu2 }
 0x2c9   : > { %v3085_v5 = vadd.f32 %v5869_v41, %v3030_v31 }
 0x2ca   : > { %v5873_v40 = vpop.f32.mrf.mxu0 }
 0x2cb   : > { %v3153_v59 = vadd.f32 %v5873_v40, %v3085_v5  ;;  %v5971_v40 = vld [vmem:[%s6441_s7 + $0x3] ss:$0 sm:$0xff] }
 0x2cc   : > { %v2943_v2 = vpop.f32.mrf.mxu1  ;;  %v5877_v42 = vpop.f32.mrf.mxu3 }
 0x2cd   : > { %v2960_v9 = vadd.f32 %v2943_v2, %v2880_v19  ;;  %v3313_v2 = vrot.slane %v3281_v32, 1  ;;  %v3388_v19 = vrot.slane %v3356_v35, 2 }
 0x2cf   : > { %v3031_v49 = vadd.f32 %v5871_v44, %v2960_v9  ;;  %v3315_v44 = vsel %vm1774_vm5, %v3313_v2, %v3314_v47 }
 0x2d0   : > { %v5879_v12 = vpop.f32.mrf.mxu2  ;;  %v3345_v33 = vadd.f32 %v3315_v44, %v3262_v26  ;;  %v6010_v26 = vld [vmem:[%s6441_s7 + $0x6] ss:$0 sm:$0xff]  ;;  %v6020_v44 = vld [vmem:[%s6441_s7 + $0x8] ss:$0 sm:$0xff] }
 0x2d2   : > { %v5883_v28 = vpop.f32.mrf.mxu0 }
 0x2d4   : > { %v2945_v20 = vpop.f32.mrf.mxu1  ;;  %v5885_v37 = vpop.f32.mrf.mxu3 }
 0x2d5   : > { %v2961_v62 = vadd.f32 %v2945_v20, %v2881_v1  ;;  %v4359_v20 = vpack.i.bf16 %v3819_v7, %v3818_v29  ;;  %v3825_v1 = vunpack.c.l.bf16 %v4030_v11 }
 0x2d7   : > { %v3032_v36 = vadd.f32 %v5879_v12, %v2961_v62  ;;  %4360 = vrot.lane.b32.xlu2 %v4359_v20, %s4468_s21  ;;  %v3389_v12 = vrot.slane %v3357_v15, 2 }
 0x2d8   : > { %v5887_v46 = vpop.f32.mrf.mxu2 }
 0x2d9   : > { %v3087_v21 = vadd.f32 %v5885_v37, %v3032_v36  ;;  %v3390_v6 = vsel %vm1850_vm6, %v3388_v19, %v3389_v12  ;;  %v5981_v37 = vld [vmem:[%s6441_s7 + $0x5] ss:$0 sm:$0xff] }
 0x2da   : > { %v5891_v16 = vpop.f32.mrf.mxu0  ;;  %v3420_v29 = vadd.f32 %v3390_v6, %v3345_v33 }
 0x2db   : > { %v5990_v7 = vadd.f32 %v5891_v16, %v3087_v21 }
 0x2dc   : > { %v5875_v23 = vpop.f32.mrf.mxu1  ;;  %v5893_v0 = vpop.f32.mrf.mxu3 }
 0x2dd   : > { %v2962_v52 = vadd.f32 %v5875_v23, %v2882_v22  ;;  %v4029_v23 = vld [vmem:[%s4672_s28 + $0x108] sm:$0xf]  ;;  %v3086_v22 = vadd.f32 %v5877_v42, %v3031_v49  ;;  %v5976_v42 = vld [vmem:[%s6441_s7 + $0x4] ss:$0 sm:$0xff]  ;;  %s3923_s28 = sshll.u32 %s3920_s26, 4  ;;  %s3924_s28 = int_to_ptr.hbm [resolvable:$true] %s3923_s28 }
 0x2de   : > { %v3824_v32 = vunpack.c.l.bf16 %v4029_v23  ;;  %s4415_s14 = sshra.s32 %s3924_s28, 4  ;;  %s4416_s14 = int_to_ptr.hbm [resolvable:$true] %s4415_s14 }
 0x2df   : > { %s4417_s16 = scalar_lea.hbm %s4416_s14, 32  ;;  %p4422_p2 = scmp.lt.s32.totalorder %s4416_s14, %s6443_s9 }
 0x2e0   : > { %v5905_v34 = vpop.f32.mrf.mxu2  ;;  %v4374_v38 = vpack.i.bf16 %v3825_v1, %v3824_v32  ;;  %p4418_p13 = scmp.ne.s32.totalorder %s4416_s14, %s4417_s16  ;;  %p4423_p3 = scmp.lt.s32.totalorder %s4421_s24, %s4417_s16 }
 0x2e2   : > { %v5921_v18 = vpop.f32.mrf.mxu0  ;;  %4375 = vrot.lane.b32.xlu2 %v4374_v38, %s4468_s21  ;;  %p4419_p0 = pnand %p4418_p13, %p4559_p6  ;;  %p4424_p4 = por %p4423_p3, %p4422_p2 }
 0x2e4   : > { %v5881_v50 = vpop.f32.mrf.mxu1  ;;  %v3076_v54 = vpop.f32.mrf.mxu3  ;;  %p4420_p1 = pneg %p4419_p0 }
 0x2e5   : > { %v2963_v45 = vadd.f32 %v5881_v50, %v2883_v61  ;;  %v2885_v50 = vadd.f32 %v5865_v8, %v2818_v39 }
 0x2e6   : > { %p4425_p5 = pnand %p4424_p4, %p4420_p1 }
 0x2e7   : > { %v3034_v25 = vadd.f32 %v5905_v34, %v2963_v45  ;;  %v3154_v34 = vadd.f32 %v5883_v28, %v3086_v22 }
 0x2e8   : > { %v3024_v24 = vpop.f32.mrf.mxu2 }
 0x2e9   : > { %v3089_v58 = vadd.f32 %v3076_v54, %v3034_v25 }
 0x2ea   : > { %v3144_v27 = vpop.f32.mrf.mxu0 }
 0x2ec   : > { %v5889_v53 = vpop.f32.mrf.mxu1  ;;  %v3079_v8 = vpop.f32.mrf.mxu3 }
 0x2ed   : > { %v2964_v41 = vadd.f32 %v5889_v53, %v2884_v56  ;;  %v3033_v53 = vadd.f32 %v5887_v46, %v2962_v52 }
 0x2ef   : > { %v3035_v31 = vadd.f32 %v3024_v24, %v2964_v41  ;;  %v3088_v57 = vadd.f32 %v5893_v0, %v3033_v53  ;;  %v6015_v41 = vld [vmem:[%s6441_s7 + $0x7] ss:$0 sm:$0xff] }
 0x2f0   : > { %v3026_v2 = vpop.f32.mrf.mxu2 }
 0x2f1   : > { %v3090_v17 = vadd.f32 %v3079_v8, %v3035_v31  ;;  %v6004_v36 = vadd.f32 %v5921_v18, %v3088_v57 }
 0x2f2   : > { %v3147_v52 = vpop.f32.mrf.mxu0 }
 0x2f3   : > { %v6031_v21 = vadd.f32 %v3147_v52, %v3090_v17 }
 0x2f4   : > { %v5902_v55 = vpop.f32.mrf.mxu1 }
 0x2f5   : > { %v2965_v46 = vadd.f32 %v5902_v55, %v2885_v50  ;;  %v6025_v50 = vadd.f32 %v3144_v27, %v3089_v58 }
 0x2f7   : > { %v3036_v16 = vadd.f32 %v3026_v2, %v2965_v46 }
 0x2fc   : > { %v3191_v30 = vpop.f32.mrf.mxu1 }
 0x2fd   : > { %v3211_v14 = vadd.f32 %v3191_v30, %v3152_v48 }
 0x2ff   : > { %v5951_v43 = vadd.f32 %v5932_v3, %v3211_v14 }
 0x301   : > { %3231 = vst.msk [vmem:[#allocation2 + $0x11] sm:$0xff] %vm786_vm0, %v5951_v43 }
 0x304   : > { %v3193_v9 = vpop.f32.mrf.mxu1 }
 0x305   : > { %v3212_v51 = vadd.f32 %v3193_v9, %v3153_v59  ;;  %v3081_v59 = vpop.f32.mrf.mxu3 }
 0x306   : > { %v6033_v53 = vadd.f32 %v3081_v59, %v3036_v16 }
 0x307   : > { %v5987_v62 = vadd.f32 %v5932_v3, %v3212_v51 }
 0x308   : > { %v3241_v48 = vld [vmem:[#allocation2 + $0x10] sm:$0xff]  ;;  %v3242_v63 = vld [vmem:[#allocation2 + $0x18] sm:$0x3] }
 0x309   : > { %3232 = vst.msk [vmem:[#allocation2 + $0x21] sm:$0xff] %vm786_vm0, %v5987_v62  ;;  %v3431_v55 = vmul.f32 %v5971_v40, %v3241_v48  ;;  %v3450_v28 = vmul.f32 %v5976_v42, %v3241_v48  ;;  %v3451_v30 = vmul.f32 %v5976_v42, %v3242_v63  ;;  %v3525_v20 = vmul.f32 %v5981_v37, %v3241_v48 }
 0x30a   : > { %v3526_v47 = vmul.f32 %v5981_v37, %v3242_v63  ;;  %v3283_v0 = vmul.f32 %v5900_v13, %v3241_v48  ;;  %v3284_v54 = vmul.f32 %v5900_v13, %v3242_v63  ;;  %v3358_v49 = vmul.f32 %v5917_v4, %v3241_v48 }
 0x30b   : > { %v3439_v35 = vadd.f32 %v3431_v55, %v3420_v29  ;;  %v3482_v15 = vrot.slane %v3450_v28, 1  ;;  %v3483_v61 = vrot.slane %v3451_v30, 1  ;;  %v3557_v56 = vrot.slane %v3525_v20, 2 }
 0x30c   : > { %v3196_v14 = vpop.f32.mrf.mxu1  ;;  %v3558_v10 = vrot.slane %v3526_v47, 2  ;;  %v3316_v39 = vrot.slane %v3283_v0, 1  ;;  %v3317_v5 = vrot.slane %v3284_v54, 1  ;;  %v3359_v18 = vmul.f32 %v5917_v4, %v3242_v63 }
 0x30d   : > { %v3213_v45 = vadd.f32 %v3196_v14, %v3154_v34  ;;  %v3484_v24 = vsel %vm1774_vm5, %v3482_v15, %v3483_v61  ;;  %v3263_v12 = vmul.f32 %v5937_v60, %v3241_v48  ;;  %v3391_v11 = vrot.slane %v3358_v49, 2  ;;  %v6060_v15 = vld [vmem:[%s6442_s8] ss:$0 sm:$0xff] }
 0x30e   : > { %v3514_v19 = vadd.f32 %v3484_v24, %v3439_v35  ;;  %v3318_v23 = vsel %vm1774_vm5, %v3316_v39, %v3317_v5  ;;  %v3559_v1 = vsel %vm1850_vm6, %v3557_v56, %v3558_v10  ;;  %v3392_v22 = vrot.slane %v3359_v18, 2 }
 0x30f   : > { %v6028_v32 = vadd.f32 %v5932_v3, %v3213_v45  ;;  %v3346_v9 = vadd.f32 %v3318_v23, %v3263_v12 }
 0x310   : > { %v3243_v33 = vld [vmem:[#allocation2 + $0x20] sm:$0xff]  ;;  %v6035_v25 = vld [vmem:[#allocation2 + $0x28] sm:$0x3]  ;;  %v3589_v31 = vadd.f32 %v3559_v1, %v3514_v19  ;;  %v3393_v46 = vsel %vm1850_vm6, %v3391_v11, %v3392_v22 }
 0x311   : > { %3233 = vst.msk [vmem:[#allocation2 + $0x31] sm:$0xff] %vm786_vm0, %v6028_v32  ;;  %v3600_v27 = vmul.f32 %v6010_v26, %v3243_v33  ;;  %v3619_v6 = vmul.f32 %v6015_v41, %v3243_v33  ;;  %v3620_v38 = vmul.f32 %v6015_v41, %v6035_v25  ;;  %v3694_v8 = vmul.f32 %v6020_v44, %v3243_v33 }
 0x312   : > { %v3695_v51 = vmul.f32 %v6020_v44, %v6035_v25  ;;  %v3432_v34 = vmul.f32 %v5971_v40, %v3243_v33  ;;  %v3452_v29 = vmul.f32 %v5976_v42, %v3243_v33  ;;  %v3421_v55 = vadd.f32 %v3393_v46, %v3346_v9 }
 0x313   : > { %v3608_v57 = vadd.f32 %v3600_v27, %v3589_v31  ;;  %v3651_v58 = vrot.slane %v3619_v6, 1  ;;  %v3652_v17 = vrot.slane %v3620_v38, 1  ;;  %v3726_v48 = vrot.slane %v3694_v8, 2 }
 0x314   : > { %v3198_v63 = vpop.f32.mrf.mxu1  ;;  %v3727_v2 = vrot.slane %v3695_v51, 2  ;;  %v3453_v28 = vmul.f32 %v5976_v42, %v6035_v25  ;;  %v3485_v30 = vrot.slane %v3452_v29, 1  ;;  %v3527_v47 = vmul.f32 %v5981_v37, %v3243_v33 }
 0x315   : > { %v3214_v20 = vadd.f32 %v3198_v63, %v5990_v7  ;;  %v3653_v16 = vsel %vm1774_vm5, %v3651_v58, %v3652_v17  ;;  %v3528_v0 = vmul.f32 %v5981_v37, %v6035_v25  ;;  %v3440_v61 = vadd.f32 %v3432_v34, %v3421_v55  ;;  %v3149_v63 = vpop.f32.mrf.mxu0 }
 0x316   : > { %v3683_v54 = vadd.f32 %v3653_v16, %v3608_v57  ;;  %v3728_v35 = vsel %vm1850_vm6, %v3726_v48, %v3727_v2  ;;  %v3486_v56 = vrot.slane %v3453_v28, 1  ;;  %v3560_v7 = vrot.slane %v3527_v47, 2 }
 0x317   : > { %v6063_v14 = vadd.f32 %v5932_v3, %v3214_v20  ;;  %v3561_v10 = vrot.slane %v3528_v0, 2  ;;  %v3264_v39 = vmul.f32 %v5937_v60, %v3243_v33  ;;  %v3285_v24 = vmul.f32 %v5900_v13, %v3243_v33 }
 0x318   : > { %v3758_v5 = vadd.f32 %v3728_v35, %v3683_v54  ;;  %v6066_v49 = vld [vmem:[#allocation2 + $0x30] sm:$0xff]  ;;  %v6068_v52 = vld [vmem:[#allocation2 + $0x38] sm:$0x3]  ;;  %v3487_v45 = vsel %vm1774_vm5, %v3485_v30, %v3486_v56  ;;  %v3286_v18 = vmul.f32 %v5900_v13, %v6035_v25  ;;  %v3360_v29 = vmul.f32 %v5917_v4, %v3243_v33 }
 0x319   : > { %3234 = vst.msk [vmem:[#allocation2 + $0x41] sm:$0xff] %vm786_vm0, %v6063_v14  ;;  %v3515_v19 = vadd.f32 %v3487_v45, %v3440_v61  ;;  %v3562_v12 = vsel %vm1850_vm6, %v3560_v7, %v3561_v10  ;;  %v3601_v23 = vmul.f32 %v6010_v26, %v6066_v49  ;;  %v3621_v11 = vmul.f32 %v6015_v41, %v6066_v49 }
 0x31a   : > { %v3770_v59 = vadd.f32 %v6060_v15, %v3758_v5  ;;  %v3622_v1 = vmul.f32 %v6015_v41, %v6068_v52  ;;  %v3696_v22 = vmul.f32 %v6020_v44, %v6066_v49  ;;  %v3697_v31 = vmul.f32 %v6020_v44, %v6068_v52 }
 0x31b   : > { %v3590_v9 = vadd.f32 %v3562_v12, %v3515_v19  ;;  %v3654_v27 = vrot.slane %v3621_v11, 1  ;;  %v3319_v6 = vrot.slane %v3285_v24, 1  ;;  %v3320_v38 = vrot.slane %v3286_v18, 1 }
 0x31c   : > { %3786 = vrot.lane.b32.xlu0 %v3770_v59, %s4466_s29  ;;  %v3201_v8 = vpop.f32.mrf.mxu1  ;;  %v3655_v51 = vrot.slane %v3622_v1, 1  ;;  %v3729_v46 = vrot.slane %v3696_v22, 2  ;;  %v3730_v34 = vrot.slane %v3697_v31, 2  ;;  %v3361_v48 = vmul.f32 %v5917_v4, %v6035_v25 }
 0x31d   : > { %v3215_v57 = vadd.f32 %v3201_v8, %v6004_v36  ;;  %v3609_v58 = vadd.f32 %v3601_v23, %v3590_v9  ;;  %v3321_v17 = vsel %vm1774_vm5, %v3319_v6, %v3320_v38  ;;  %v3394_v30 = vrot.slane %v3360_v29, 2 }
 0x31e   : > { %v3656_v2 = vsel %vm1774_vm5, %v3654_v27, %v3655_v51  ;;  %v3731_v55 = vsel %vm1850_vm6, %v3729_v46, %v3730_v34  ;;  %v3347_v28 = vadd.f32 %v3321_v17, %v3264_v39  ;;  %v3395_v33 = vrot.slane %v3361_v48, 2 }
 0x31f   : > { %v6097_v20 = vadd.f32 %v5932_v3, %v3215_v57  ;;  %v3684_v16 = vadd.f32 %v3656_v2, %v3609_v58  ;;  %v3433_v36 = vmul.f32 %v5971_v40, %v6066_v49  ;;  %v3454_v25 = vmul.f32 %v5976_v42, %v6066_v49 }
 0x320   : > { %v6101_v47 = vld [vmem:[#allocation2 + $0x40] sm:$0xff]  ;;  %v6103_v0 = vld [vmem:[#allocation2 + $0x48] sm:$0x3]  ;;  %v3455_v54 = vmul.f32 %v5976_v42, %v6068_v52  ;;  %v3529_v35 = vmul.f32 %v5981_v37, %v6066_v49  ;;  %v3530_v61 = vmul.f32 %v5981_v37, %v6068_v52  ;;  %v6114_v56 = vadd.f32 %v3149_v63, %v6033_v53 }
 0x321   : > { %3235 = vst.msk [vmem:[#allocation2 + $0x51] sm:$0xff] %vm786_vm0, %v6097_v20  ;;  %v3759_v7 = vadd.f32 %v3731_v55, %v3684_v16  ;;  %v3396_v10 = vsel %vm1850_vm6, %v3394_v30, %v3395_v33  ;;  %v3623_v39 = vmul.f32 %v6015_v41, %v6101_v47  ;;  %v3488_v45 = vrot.slane %v3454_v25, 1 }
 0x322   : > { %v3422_v5 = vadd.f32 %v3396_v10, %v3347_v28  ;;  %v3489_v24 = vrot.slane %v3455_v54, 1  ;;  %v3563_v18 = vrot.slane %v3529_v35, 2  ;;  %v3564_v12 = vrot.slane %v3530_v61, 2 }
 0x323   : > { %v3771_v19 = vadd.f32 %v6060_v15, %v3759_v7  ;;  %v3624_v53 = vmul.f32 %v6015_v41, %v6103_v0  ;;  %v3657_v23 = vrot.slane %v3623_v39, 1  ;;  %v3698_v22 = vmul.f32 %v6020_v44, %v6101_v47 }
 0x324   : > { %v3203_v11 = vpop.f32.mrf.mxu1  ;;  %v3441_v59 = vadd.f32 %v3433_v36, %v3422_v5  ;;  %v3490_v1 = vsel %vm1774_vm5, %v3488_v45, %v3489_v24  ;;  %v3699_v31 = vmul.f32 %v6020_v44, %v6103_v0  ;;  %v3565_v27 = vsel %vm1850_vm6, %v3563_v18, %v3564_v12 }
 0x325   : > { %3788 = vrot.lane.b32.xlu1 %v3771_v19, %s4466_s29  ;;  %v3216_v9 = vadd.f32 %v3203_v11, %v6025_v50  ;;  %v3602_v6 = vmul.f32 %v6010_v26, %v6101_v47  ;;  %v3658_v38 = vrot.slane %v3624_v53, 1  ;;  %v3732_v51 = vrot.slane %v3698_v22, 2 }
 0x326   : > { %v3516_v8 = vadd.f32 %v3490_v1, %v3441_v59  ;;  %v3733_v46 = vrot.slane %v3699_v31, 2  ;;  %v3287_v34 = vmul.f32 %v5900_v13, %v6066_v49  ;;  %v3265_v57 = vmul.f32 %v5937_v60, %v6066_v49 }
 0x327   : > { %v6137_v29 = vadd.f32 %v5932_v3, %v3216_v9  ;;  %v3288_v50 = vmul.f32 %v5900_v13, %v6068_v52  ;;  %v3362_v58 = vmul.f32 %v5917_v4, %v6066_v49  ;;  %v3659_v48 = vsel %vm1774_vm5, %v3657_v23, %v3658_v38 }
 0x328   : > { %v3591_v17 = vadd.f32 %v3565_v27, %v3516_v8  ;;  %v3322_v63 = vrot.slane %v3287_v34, 1  ;;  %v3363_v2 = vmul.f32 %v5917_v4, %v6068_v52  ;;  %v3734_v55 = vsel %vm1850_vm6, %v3732_v51, %v3733_v46  ;;  %v6153_v36 = vld [vmem:[#allocation2 + $0x50] sm:$0xff]  ;;  %v6159_v54 = vld [vmem:[#allocation2 + $0x58] sm:$0x3] }
 0x329   : > { %3236 = vst.msk [vmem:[#allocation2 + $0x61] sm:$0xff] %vm786_vm0, %v6137_v29  ;;  %v3323_v28 = vrot.slane %v3288_v50, 1  ;;  %v3397_v30 = vrot.slane %v3362_v58, 2  ;;  %v3456_v16 = vmul.f32 %v5976_v42, %v6101_v47  ;;  %v3457_v25 = vmul.f32 %v5976_v42, %v6103_v0 }
 0x32a   : > { %v3610_v33 = vadd.f32 %v3602_v6, %v3591_v17  ;;  %v3398_v49 = vrot.slane %v3363_v2, 2  ;;  %v3531_v52 = vmul.f32 %v5981_v37, %v6101_v47  ;;  %v3434_v61 = vmul.f32 %v5971_v40, %v6101_v47 }
 0x32b   : > { %v3324_v35 = vsel %vm1774_vm5, %v3322_v63, %v3323_v28  ;;  %v3491_v7 = vrot.slane %v3456_v16, 1  ;;  %v3532_v10 = vmul.f32 %v5981_v37, %v6103_v0  ;;  %v3492_v18 = vrot.slane %v3457_v25, 1 }
 0x32c   : > { %v3685_v39 = vadd.f32 %v3659_v48, %v3610_v33  ;;  %v3206_v5 = vpop.f32.mrf.mxu1  ;;  %v3348_v45 = vadd.f32 %v3324_v35, %v3265_v57  ;;  %v3399_v24 = vsel %vm1850_vm6, %v3397_v30, %v3398_v49  ;;  %v3566_v12 = vrot.slane %v3531_v52, 2 }
 0x32d   : > { %v3217_v19 = vadd.f32 %v3206_v5, %v6031_v21  ;;  %v3567_v53 = vrot.slane %v3532_v10, 2  ;;  %v3625_v23 = vmul.f32 %v6015_v41, %v6153_v36  ;;  %v3603_v1 = vmul.f32 %v6010_v26, %v6153_v36 }
 0x32e   : > { %v3760_v11 = vadd.f32 %v3734_v55, %v3685_v39  ;;  %v3423_v59 = vadd.f32 %v3399_v24, %v3348_v45  ;;  %v3626_v22 = vmul.f32 %v6015_v41, %v6159_v54  ;;  %v3493_v9 = vsel %vm1774_vm5, %v3491_v7, %v3492_v18 }
 0x32f   : > { %v6175_v31 = vadd.f32 %v5932_v3, %v3217_v19  ;;  %v3660_v27 = vrot.slane %v3625_v23, 1  ;;  %v3700_v21 = vmul.f32 %v6020_v44, %v6153_v36  ;;  %v3701_v51 = vmul.f32 %v6020_v44, %v6159_v54 }
 0x330   : > { %v3772_v6 = vadd.f32 %v6060_v15, %v3760_v11  ;;  %v3442_v38 = vadd.f32 %v3434_v61, %v3423_v59  ;;  %v3661_v8 = vrot.slane %v3626_v22, 1  ;;  %v3568_v46 = vsel %vm1850_vm6, %v3566_v12, %v3567_v53  ;;  %v6206_v39 = vld [vmem:[#allocation2 + $0x60] sm:$0xff] }
 0x331   : > { %3237 = vst.msk [vmem:[#allocation2 + $0x71] sm:$0xff] %vm786_vm0, %v6175_v31  ;;  %v3735_v34 = vrot.slane %v3700_v21, 2  ;;  %v3289_v57 = vmul.f32 %v5900_v13, %v6101_v47  ;;  %v3290_v50 = vmul.f32 %v5900_v13, %v6103_v0  ;;  %v3266_v48 = vmul.f32 %v5937_v60, %v6101_v47 }
 0x332   : > { %3790 = vrot.lane.b32.xlu2 %v3772_v6, %s4466_s29  ;;  %v3517_v58 = vadd.f32 %v3493_v9, %v3442_v38  ;;  %v3662_v17 = vsel %vm1774_vm5, %v3660_v27, %v3661_v8  ;;  %v3364_v63 = vmul.f32 %v5917_v4, %v6101_v47  ;;  %v3736_v2 = vrot.slane %v3701_v51, 2 }
 0x333   : > { %v3325_v55 = vrot.slane %v3289_v57, 1  ;;  %v3326_v28 = vrot.slane %v3290_v50, 1  ;;  %v3365_v30 = vmul.f32 %v5917_v4, %v6103_v0  ;;  %v3435_v25 = vmul.f32 %v5971_v40, %v6153_v36  ;;  %v6208_v0 = vld [vmem:[#allocation2 + $0x68] sm:$0x3] }
 0x334   : > { %v3592_v16 = vadd.f32 %v3568_v46, %v3517_v58  ;;  %v3208_v33 = vpop.f32.mrf.mxu1  ;;  %v3400_v49 = vrot.slane %v3364_v63, 2  ;;  %v3458_v52 = vmul.f32 %v5976_v42, %v6153_v36  ;;  %v3459_v7 = vmul.f32 %v5976_v42, %v6159_v54 }
 0x335   : > { %v3218_v35 = vadd.f32 %v3208_v33, %v6114_v56  ;;  %v3327_v61 = vsel %vm1774_vm5, %v3325_v55, %v3326_v28  ;;  %v3401_v47 = vrot.slane %v3365_v30, 2  ;;  %v3533_v24 = vmul.f32 %v5981_v37, %v6153_v36 }
 0x336   : > { %v3611_v10 = vadd.f32 %v3603_v1, %v3592_v16  ;;  %v3349_v5 = vadd.f32 %v3327_v61, %v3266_v48  ;;  %v3494_v45 = vrot.slane %v3458_v52, 1  ;;  %v3495_v19 = vrot.slane %v3459_v7, 1 }
 0x337   : > { %v6213_v18 = vadd.f32 %v5932_v3, %v3218_v35  ;;  %v3402_v56 = vsel %vm1850_vm6, %v3400_v49, %v3401_v47  ;;  %v3534_v12 = vmul.f32 %v5981_v37, %v6159_v54  ;;  %v3737_v23 = vsel %vm1850_vm6, %v3735_v34, %v3736_v2 }
 0x338   : > { %v3686_v53 = vadd.f32 %v3662_v17, %v3611_v10  ;;  %v3424_v11 = vadd.f32 %v3402_v56, %v3349_v5  ;;  %v3569_v59 = vrot.slane %v3533_v24, 2  ;;  %v3496_v1 = vsel %vm1774_vm5, %v3494_v45, %v3495_v19  ;;  %v6249_v47 = vld [vmem:[#allocation2 + $0x70] sm:$0xff] }
 0x339   : > { %3238 = vst.msk [vmem:[#allocation2 + $0x81] sm:$0xff] %vm786_vm0, %v6213_v18  ;;  %v3570_v22 = vrot.slane %v3534_v12, 2  ;;  %v3627_v3 = vmul.f32 %v6015_v41, %v6206_v39  ;;  %v3628_v9 = vmul.f32 %v6015_v41, %v6208_v0  ;;  %v3702_v6 = vmul.f32 %v6020_v44, %v6206_v39 }
 0x33a   : > { %v3761_v27 = vadd.f32 %v3737_v23, %v3686_v53  ;;  %v3443_v21 = vadd.f32 %v3435_v25, %v3424_v11  ;;  %v3703_v38 = vmul.f32 %v6020_v44, %v6208_v0  ;;  %v3604_v51 = vmul.f32 %v6010_v26, %v6206_v39 }
 0x33b   : > { %v3571_v8 = vsel %vm1850_vm6, %v3569_v59, %v3570_v22  ;;  %v3663_v46 = vrot.slane %v3627_v3, 1  ;;  %v3664_v34 = vrot.slane %v3628_v9, 1  ;;  %v3738_v58 = vrot.slane %v3702_v6, 2 }
 0x33c   : > { %v3773_v57 = vadd.f32 %v6060_v15, %v3761_v27  ;;  %v3518_v50 = vadd.f32 %v3496_v1, %v3443_v21  ;;  %v3739_v17 = vrot.slane %v3703_v38, 2  ;;  %v3267_v48 = vmul.f32 %v5937_v60, %v6153_v36 }
 0x33d   : > { %v3291_v63 = vmul.f32 %v5900_v13, %v6153_v36  ;;  %v3292_v2 = vmul.f32 %v5900_v13, %v6159_v54  ;;  %v3366_v55 = vmul.f32 %v5917_v4, %v6153_v36  ;;  %v3665_v30 = vsel %vm1774_vm5, %v3663_v46, %v3664_v34  ;;  %v6251_v36 = vld [vmem:[#allocation2 + $0x78] sm:$0x3] }
 0x33e   : > { %3792 = vrot.lane.b32.xlu0 %v3773_v57, %s4466_s29  ;;  %v3593_v28 = vadd.f32 %v3571_v8, %v3518_v50  ;;  %v3740_v16 = vsel %vm1850_vm6, %v3738_v58, %v3739_v17  ;;  %v3367_v33 = vmul.f32 %v5917_v4, %v6159_v54  ;;  %v3460_v35 = vmul.f32 %v5976_v42, %v6206_v39 }
 0x33f   : > { %v3328_v49 = vrot.slane %v3291_v63, 1  ;;  %v3329_v25 = vrot.slane %v3292_v2, 1  ;;  %v3403_v52 = vrot.slane %v3366_v55, 2  ;;  %v3461_v10 = vmul.f32 %v5976_v42, %v6208_v0 }
 0x340   : > { %v3612_v61 = vadd.f32 %v3604_v51, %v3593_v28  ;;  %v3404_v7 = vrot.slane %v3367_v33, 2  ;;  %v3535_v5 = vmul.f32 %v5981_v37, %v6206_v39  ;;  %v3436_v45 = vmul.f32 %v5971_v40, %v6206_v39 }
 0x341   : > { %v3330_v54 = vsel %vm1774_vm5, %v3328_v49, %v3329_v25  ;;  %v3497_v24 = vrot.slane %v3460_v35, 1  ;;  %v3536_v56 = vmul.f32 %v5981_v37, %v6208_v0  ;;  %v3498_v23 = vrot.slane %v3461_v10, 1  ;;  %v3255_v35 = vld [vmem:[#allocation2 + $0x80] sm:$0xff] }
 0x342   : > { %v3687_v19 = vadd.f32 %v3665_v30, %v3612_v61  ;;  %v3350_v12 = vadd.f32 %v3330_v54, %v3267_v48  ;;  %v3405_v53 = vsel %vm1850_vm6, %v3403_v52, %v3404_v7  ;;  %v3572_v11 = vrot.slane %v3535_v5, 2  ;;  %v3256_v5 = vld [vmem:[#allocation2 + $0x88] sm:$0x3] }
 0x343   : > { %v3573_v59 = vrot.slane %v3536_v56, 2  ;;  %v3629_v1 = vmul.f32 %v6015_v41, %v6249_v47  ;;  %v3630_v22 = vmul.f32 %v6015_v41, %v6251_v36  ;;  %v3605_v27 = vmul.f32 %v6010_v26, %v6249_v47 }
 0x344   : > { %v3762_v3 = vadd.f32 %v3740_v16, %v3687_v19  ;;  %v3425_v9 = vadd.f32 %v3405_v53, %v3350_v12  ;;  %v3704_v21 = vmul.f32 %v6020_v44, %v6249_v47  ;;  %v3499_v6 = vsel %vm1774_vm5, %v3497_v24, %v3498_v23 }
 0x345   : > { %v3666_v38 = vrot.slane %v3629_v1, 1  ;;  %v3667_v8 = vrot.slane %v3630_v22, 1  ;;  %v3705_v51 = vmul.f32 %v6020_v44, %v6251_v36  ;;  %v3574_v57 = vsel %vm1850_vm6, %v3572_v11, %v3573_v59 }
 0x346   : > { %v3774_v46 = vadd.f32 %v6060_v15, %v3762_v3  ;;  %v3444_v34 = vadd.f32 %v3436_v45, %v3425_v9  ;;  %v3741_v50 = vrot.slane %v3704_v21, 2  ;;  %v3268_v17 = vmul.f32 %v5937_v60, %v6206_v39 }
 0x347   : > { %v3668_v58 = vsel %vm1774_vm5, %v3666_v38, %v3667_v8  ;;  %v3293_v48 = vmul.f32 %v5900_v13, %v6206_v39  ;;  %v3294_v63 = vmul.f32 %v5900_v13, %v6208_v0  ;;  %v3742_v55 = vrot.slane %v3705_v51, 2 }
 0x348   : > { %3794 = vrot.lane.b32.xlu1 %v3774_v46, %s4466_s29  ;;  %v3519_v2 = vadd.f32 %v3499_v6, %v3444_v34  ;;  %v3368_v28 = vmul.f32 %v5917_v4, %v6206_v39  ;;  %v3369_v30 = vmul.f32 %v5917_v4, %v6208_v0  ;;  %v3437_v49 = vmul.f32 %v5971_v40, %v6249_v47 }
 0x349   : > { %v3331_v16 = vrot.slane %v3293_v48, 1  ;;  %v3332_v33 = vrot.slane %v3294_v63, 1  ;;  %v3462_v25 = vmul.f32 %v5976_v42, %v6249_v47  ;;  %v3463_v10 = vmul.f32 %v5976_v42, %v6251_v36 }
 0x34a   : > { %v3594_v52 = vadd.f32 %v3574_v57, %v3519_v2  ;;  %v3406_v61 = vrot.slane %v3368_v28, 2  ;;  %v3407_v7 = vrot.slane %v3369_v30, 2  ;;  %v3537_v0 = vmul.f32 %v5981_v37, %v6249_v47 }
 0x34b   : > { %v3333_v39 = vsel %vm1774_vm5, %v3331_v16, %v3332_v33  ;;  %v3500_v54 = vrot.slane %v3462_v25, 1  ;;  %v3538_v45 = vmul.f32 %v5981_v37, %v6251_v36  ;;  %v3743_v56 = vsel %vm1850_vm6, %v3741_v50, %v3742_v55 }
 0x34c   : > { %v3613_v24 = vadd.f32 %v3605_v27, %v3594_v52  ;;  %v3351_v19 = vadd.f32 %v3333_v39, %v3268_v17  ;;  %v3501_v12 = vrot.slane %v3463_v10, 1  ;;  %v3408_v53 = vsel %vm1850_vm6, %v3406_v61, %v3407_v7  ;;  %v3257_v52 = vld [vmem:[#allocation2 + $0x90] sm:$0xff] }
 0x34d   : > { %v3575_v23 = vrot.slane %v3537_v0, 2  ;;  %v3576_v11 = vrot.slane %v3538_v45, 2  ;;  %v3631_v59 = vmul.f32 %v6015_v41, %v3255_v35  ;;  %v3606_v3 = vmul.f32 %v6010_v26, %v3255_v35 }
 0x34e   : > { %v3688_v1 = vadd.f32 %v3668_v58, %v3613_v24  ;;  %v3426_v22 = vadd.f32 %v3408_v53, %v3351_v19  ;;  %v3632_v9 = vmul.f32 %v6015_v41, %v3256_v5  ;;  %v3502_v21 = vsel %vm1774_vm5, %v3500_v54, %v3501_v12  ;;  %v3258_v54 = vld [vmem:[#allocation2 + $0x98] sm:$0x3] }
 0x34f   : > { %v3669_v6 = vrot.slane %v3631_v59, 1  ;;  %v3706_v27 = vmul.f32 %v6020_v44, %v3255_v35  ;;  %v3707_v38 = vmul.f32 %v6020_v44, %v3256_v5  ;;  %v3577_v46 = vsel %vm1850_vm6, %v3575_v23, %v3576_v11 }
 0x350   : > { %v3763_v8 = vadd.f32 %v3743_v56, %v3688_v1  ;;  %v3445_v51 = vadd.f32 %v3437_v49, %v3426_v22  ;;  %v3670_v34 = vrot.slane %v3632_v9, 1  ;;  %v3269_v50 = vmul.f32 %v5937_v60, %v6249_v47 }
 0x351   : > { %v3744_v57 = vrot.slane %v3706_v27, 2  ;;  %v3295_v58 = vmul.f32 %v5900_v13, %v6249_v47  ;;  %v3296_v17 = vmul.f32 %v5900_v13, %v6251_v36  ;;  %v3745_v2 = vrot.slane %v3707_v38, 2 }
 0x352   : > { %v3775_v48 = vadd.f32 %v6060_v15, %v3763_v8  ;;  %v3520_v63 = vadd.f32 %v3502_v21, %v3445_v51  ;;  %v3370_v55 = vmul.f32 %v5917_v4, %v6249_v47  ;;  %v3671_v28 = vsel %vm1774_vm5, %v3669_v6, %v3670_v34 }
 0x353   : > { %v3334_v30 = vrot.slane %v3295_v58, 1  ;;  %v3335_v16 = vrot.slane %v3296_v17, 1  ;;  %v3371_v60 = vmul.f32 %v5917_v4, %v6251_v36  ;;  %v3438_v13 = vmul.f32 %v5971_v40, %v3255_v35 }
 0x354   : > { %3796 = vrot.lane.b32.xlu2 %v3775_v48, %s4466_s29  ;;  %v3595_v33 = vadd.f32 %v3577_v46, %v3520_v63  ;;  %v3409_v49 = vrot.slane %v3370_v55, 2  ;;  %v3464_v25 = vmul.f32 %v5976_v42, %v3255_v35  ;;  %v3465_v47 = vmul.f32 %v5976_v42, %v3256_v5  ;;  %v4361_v42 = vpop.permute.xlu2 %4360 }
 0x355   : > { %v3336_v61 = vsel %vm1774_vm5, %v3334_v30, %v3335_v16  ;;  %v3410_v7 = vrot.slane %v3371_v60, 2  ;;  %v3539_v10 = vmul.f32 %v5981_v37, %v3255_v35  ;;  %v3540_v36 = vmul.f32 %v5981_v37, %v3256_v5 }
 0x356   : > { %v3614_v39 = vadd.f32 %v3606_v3, %v3595_v33  ;;  %v3352_v0 = vadd.f32 %v3336_v61, %v3269_v50  ;;  %v3503_v4 = vrot.slane %v3464_v25, 1  ;;  %v3746_v45 = vsel %vm1850_vm6, %v3744_v57, %v3745_v2  ;;  %v4366_v2 = vpop.permute.xlu0 %4365 }
 0x357   : > { %v3411_v40 = vsel %vm1850_vm6, %v3409_v49, %v3410_v7  ;;  %v3504_v24 = vrot.slane %v3465_v47, 1  ;;  %v3578_v56 = vrot.slane %v3539_v10, 2  ;;  %v3579_v53 = vrot.slane %v3540_v36, 2 }
 0x358   : > { %v3689_v19 = vadd.f32 %v3671_v28, %v3614_v39  ;;  %v3427_v12 = vadd.f32 %v3411_v40, %v3352_v0  ;;  %v3633_v23 = vmul.f32 %v6015_v41, %v3257_v52  ;;  %v3634_v11 = vmul.f32 %v6015_v41, %v3258_v54 }
 0x359   : > { %v3505_v35 = vsel %vm1774_vm5, %v3503_v4, %v3504_v24  ;;  %v3708_v59 = vmul.f32 %v6020_v44, %v3257_v52  ;;  %v3709_v37 = vmul.f32 %v6020_v44, %v3258_v54  ;;  %v3607_v6 = vmul.f32 %v6010_v26, %v3257_v52 }
 0x35a   : > { %v3764_v5 = vadd.f32 %v3746_v45, %v3689_v19  ;;  %v3446_v1 = vadd.f32 %v3438_v13, %v3427_v12  ;;  %v3672_v22 = vrot.slane %v3633_v23, 1  ;;  %v3673_v3 = vrot.slane %v3634_v11, 1  ;;  %v4371_v13 = vpop.permute.xlu1 %4370 }
 0x35b   : > { %v3580_v27 = vsel %vm1850_vm6, %v3578_v56, %v3579_v53  ;;  %v3747_v38 = vrot.slane %v3708_v59, 2  ;;  %v3748_v8 = vrot.slane %v3709_v37, 2  ;;  %v4367_v55 = vunpack.i.l.bf16 %v4366_v2 }
 0x35c   : > { %v3776_v9 = vadd.f32 %v6060_v15, %v3764_v5  ;;  %v3521_v21 = vadd.f32 %v3505_v35, %v3446_v1  ;;  %v3674_v51 = vsel %vm1774_vm5, %v3672_v22, %v3673_v3  ;;  %v4376_v44 = vpop.permute.xlu2 %4375  ;;  %v4362_v28 = vunpack.i.l.bf16 %v4361_v42 }
 0x35d   : > { %v3749_v34 = vsel %vm1850_vm6, %v3747_v38, %v3748_v8  ;;  %v4378_v57 = vunpack.i.h.bf16 %v4376_v44  ;;  %v4377_v50 = vunpack.i.l.bf16 %v4376_v44  ;;  %v3861_v30 = vsel %vm3858_vm2, 0.0, %v4367_v55 }
 0x35e   : > { %3798 = vrot.lane.b32.xlu0 %v3776_v9, %s4466_s29  ;;  %v3596_v41 = vadd.f32 %v3580_v27, %v3521_v21  ;;  %v3859_v16 = vsel %vm3858_vm2, 0.0, %v4362_v28  ;;  %v3870_v60 = vsel %vm3867_vm3, %v3861_v30, 0.0  ;;  %v4363_v61 = vunpack.i.h.bf16 %v4361_v42 }
 0x35f   : > { %v6341_v17 = vsel %vm3858_vm2, 0.0, %v4378_v57  ;;  %v6344_v26 = vsel %vm3858_vm2, 0.0, %v4377_v50  ;;  %v3868_v25 = vsel %vm3867_vm3, %v3859_v16, 0.0  ;;  %v4373_v56 = vunpack.i.h.bf16 %v4371_v13 }
 0x360   : > { %v3615_v46 = vadd.f32 %v3607_v6, %v3596_v41  ;;  %v3860_v0 = vsel %vm3858_vm2, 0.0, %v4363_v61  ;;  %v4368_v19 = vunpack.i.h.bf16 %v4366_v2  ;;  %v4372_v5 = vunpack.i.l.bf16 %v4371_v13 }
 0x361   : > { %v3869_v4 = vsel %vm3867_vm3, %v3860_v0, 0.0  ;;  %v3864_v12 = vsel %vm3858_vm2, 0.0, %v4373_v56 }
 0x362   : > { %v3690_v58 = vadd.f32 %v3674_v51, %v3615_v46  ;;  %v3862_v53 = vsel %vm3858_vm2, 0.0, %v4368_v19  ;;  %v3873_v23 = vsel %vm3867_vm3, %v3864_v12, 0.0  ;;  %v3863_v21 = vsel %vm3858_vm2, 0.0, %v4372_v5 }
 0x363   : > { %v3874_v46 = vsel %vm3867_vm3, %v6344_v26, 0.0 }
 0x364   : > { %v3765_v48 = vadd.f32 %v3749_v34, %v3690_v58  ;;  %v3875_v58 = vsel %vm3867_vm3, %v6341_v17, 0.0 }
 0x366   : > { %v3777_v63 = vadd.f32 %v6060_v15, %v3765_v48 }
 0x368   : > { %3800 = vrot.lane.b32.xlu1 %v3777_v63, %s4466_s29  ;;  %s6358_s29 = scalar_lea.vmem [#allocation5], %s3997_s23 }
 0x369   : > { %s3921_s27 = sshll.u32 %s6358_s29, 4  ;;  %s3922_s27 = int_to_ptr.vmem [resolvable:$true] %s3921_s27 }
 0x38c   : > { %v3791_v33 = vpop.permute.xlu2 %3790 }
 0x38d   : > { %v3812_v49 = vsel %vm786_vm0, %v6028_v32, %v3791_v33 }
 0x38e   : > { %v3878_v15 = vadd.f32 %v3870_v60, %v3812_v49  ;;  %v3787_v52 = vpop.permute.xlu0 %3786 }
 0x38f   : > { %v3810_v7 = vsel %vm786_vm0, %v5951_v43, %v3787_v52 }
 0x390   : > { %v3886_v47 = vmax.f32 %v3878_v15, 0.0  ;;  %v3876_v10 = vadd.f32 %v3868_v25, %v3810_v7 }
 0x392   : > { %v3894_v39 = vpack.c.bf16 %v3886_v47, %v3886_v47  ;;  %v3884_v54 = vmax.f32 %v3876_v10, 0.0 }
 0x394   : > { %3902 = vst.msk [vmem:[%s6358_s29 + $0x8] sm:$0xf] %vm808_vm7, %v3894_v39  ;;  %v3892_v32 = vpack.c.bf16 %v3884_v54, %v3884_v54 }
 0x396   : > { %3900 = vst.msk [vmem:[%s6358_s29] sm:$0xf] %vm808_vm7, %v3892_v32 }
 0x397   : > { %v3789_v36 = vpop.permute.xlu1 %3788 }
 0x398   : > { %v3811_v43 = vsel %vm786_vm0, %v5987_v62, %v3789_v36  ;;  %v3871_v62 = vsel %vm3867_vm3, %v3862_v53, 0.0 }
 0x399   : > { %v3877_v45 = vadd.f32 %v3869_v4, %v3811_v43 }
 0x39b   : > { %v3885_v40 = vmax.f32 %v3877_v45, 0.0 }
 0x39d   : > { %v3893_v24 = vpack.c.bf16 %v3885_v40, %v3885_v40 }
 0x39f   : > { %3901 = vst.msk [vmem:[%s6358_s29 + $0x4] sm:$0xf] %vm808_vm7, %v3893_v24 }
 0x3ae   : > { %v3797_v42 = vpop.permute.xlu2 %3796 }
 0x3af   : > { %v3815_v35 = vsel %vm786_vm0, %v6137_v29, %v3797_v42  ;;  %v3872_v29 = vsel %vm3867_vm3, %v3863_v21, 0.0 }
 0x3b0   : > { %v3881_v11 = vadd.f32 %v3873_v23, %v3815_v35  ;;  %v3793_v59 = vpop.permute.xlu0 %3792 }
 0x3b1   : > { %v3813_v37 = vsel %vm786_vm0, %v6063_v14, %v3793_v59 }
 0x3b2   : > { %v3889_v1 = vmax.f32 %v3881_v11, 0.0  ;;  %v3879_v22 = vadd.f32 %v3871_v62, %v3813_v37 }
 0x3b4   : > { %v3897_v3 = vpack.c.bf16 %v3889_v1, %v3889_v1  ;;  %v3887_v9 = vmax.f32 %v3879_v22, 0.0 }
 0x3b6   : > { %3905 = vst.msk [vmem:[%s6358_s29 + $0x14] sm:$0xf] %vm808_vm7, %v3897_v3  ;;  %v3895_v6 = vpack.c.bf16 %v3887_v9, %v3887_v9 }
 0x3b8   : > { %3903 = vst.msk [vmem:[%s6358_s29 + $0xc] sm:$0xf] %vm808_vm7, %v3895_v6 }
 0x3ba   : > { %v3795_v27 = vpop.permute.xlu1 %3794 }
 0x3bb   : > { %v3814_v14 = vsel %vm786_vm0, %v6097_v20, %v3795_v27 }
 0x3bc   : > { %v3880_v38 = vadd.f32 %v3872_v29, %v3814_v14 }
 0x3be   : > { %v3888_v8 = vmax.f32 %v3880_v38, 0.0 }
 0x3c0   : > { %v3896_v41 = vpack.c.bf16 %v3888_v8, %v3888_v8 }
 0x3c2   : > { %3904 = vst.msk [vmem:[%s6358_s29 + $0x10] sm:$0xf] %vm808_vm7, %v3896_v41 }
 0x3d0   : > { %v3799_v51 = vpop.permute.xlu0 %3798 }
 0x3d1   : > { %v3816_v44 = vsel %vm786_vm0, %v6175_v31, %v3799_v51 }
 0x3d2   : > { %v3882_v34 = vadd.f32 %v3874_v46, %v3816_v44 }
 0x3d4   : > { %v3890_v57 = vmax.f32 %v3882_v34, 0.0 }
 0x3d6   : > { %v3898_v50 = vpack.c.bf16 %v3890_v57, %v3890_v57 }
 0x3d8   : > { %3906 = vst.msk [vmem:[%s6358_s29 + $0x18] sm:$0xf] %vm808_vm7, %v3898_v50 }
 0x3da   : > { %v3801_v20 = vpop.permute.xlu1 %3800 }
 0x3db   : > { %v3817_v31 = vsel %vm786_vm0, %v6213_v18, %v3801_v20 }
 0x3dc   : > { %v3883_v26 = vadd.f32 %v3875_v58, %v3817_v31 }
 0x3de   : > { %v3891_v48 = vmax.f32 %v3883_v26, 0.0 }
 0x3e0   : > { %v3899_v63 = vpack.c.bf16 %v3891_v48, %v3891_v48 }
 0x3e2   : > { %3907 = vst.msk [vmem:[%s6358_s29 + $0x1c] sm:$0xf] %vm808_vm7, %v3899_v63 }
 0x3e3   : > { %4428 = shalt.err (!%p4425_p5)
}
 0x3e4   : > { %s4469_s17 = smov 64   ;;  %s4470_s29 = smov 4  }
 0x3e5   : > { %4299 = dma.vmem_to_hbm [thread:$0]  (%p4559_p6), %s3922_s27, 512, %s3924_s28, %s3909_s13, %s4469_s17, %s4469_s17, %s4470_s29  }
 0x3e6 PF: > { %s3938_s26 = sand.u32 1, %s4451_s30   ;;  %p4302_p7 = pnand %p3994_p9, %p4563_p8 }
 0x3e7   : > { %s3939_s22 = scalar_lea.sflag [#allocation6], %s3938_s26 }
 0x3e8   : > { %p4303_p10 = pneg %p4302_p7 }
 0x3ea   : > { %4446 = dma.done.wait (%p4303_p10), %s3939_s22, 512  }
 0x3eb   : > { %4448 = vsyncadd (%p4303_p10), %s3939_s22, 4294966784  ;;  %p19_p11 = scmp.ge.s32.totalorder %s4544_s15, 4   ;;  %s6454_s30 = smov %s4455_s10 }
 0x3ec   : > { %s6455_s10 = smov %s4459_s11  ;;  %s6456_s11 = smov %s4557_s18 }
 0x3ed   : > { %s6457_s12 = smov %s4544_s15  ;;  %21 = sbr.rel (!%p19_p11) target bundleno = 3 (0x3), region = 142 }
 0x3f2   :  { %3945 = vsyncpa [#allocation6], 1 }
 0x3f3   :  { %3947 = vsyncpa [#allocation6 + $0x1], 1 }

</bundles_post_ra>
